<compile_context>
chip_gen: v7x
topology: tpu7x:2x2x1
jax: 0.10.0
libtpu: 0.0.40
codegen_flags: <defaults>
</compile_context>

<pallas_src>
import functools
import math

import jax
import jax.numpy as jnp
import numpy as np
from jax.experimental import pallas as pl
from jax.experimental.pallas import tpu as pltpu

# ---------------------------------------------------------------------------
# Small-model configuration (InformerStack defaults, shrunk for the demo).
CFG = dict(
    enc_in=7, dec_in=7, c_out=7,
    seq_len=16, label_len=8, pred_len=8,
    factor=5, d_model=32, n_heads=4,
    e_layers=(2, 1), d_layers=1, d_ff=32,
    distil=True, mix=True, activation="gelu",
)
CFG["inp_lens"] = tuple(range(len(CFG["e_layers"])))


def _round_up(n, m):
    return ((n + m - 1) // m) * m


def _apply_activation(y, activation):
    if activation == "relu":
        return jnp.maximum(y, 0.0)
    if activation == "gelu":
        # TODO(synk): PyTorch F.gelu uses the exact erf form; tanh approximation used here.
        c = math.sqrt(2.0 / math.pi)
        return 0.5 * y * (1.0 + jnp.tanh(c * (y + 0.044715 * y * y * y)))
    return y


# ---------------------------------------------------------------------------
# Shared row-tiled pallas_call launcher.
#   row_inputs   : list of (M, d_i) arrays, tiled along rows
#   const_inputs : list of small 2-D arrays kept resident (full block) across
#                  all grid steps (weights, biases, LN gains)
def _run_rowwise(kernel, row_inputs, const_inputs, d_out, out_dtype, row_tile=512):
    M = row_inputs[0].shape[0]
    tile = min(row_tile, _round_up(M, 8))
    Mp = _round_up(M, tile)
    if Mp != M:
        row_inputs = [jnp.pad(a, ((0, Mp - M), (0, 0))) for a in row_inputs]

    row_specs = [pl.BlockSpec((tile, a.shape[1]), lambda i: (i, 0)) for a in row_inputs]
    const_specs = [
        pl.BlockSpec(a.shape, lambda i, nd=a.ndim: (0,) * nd) for a in const_inputs
    ]

    out = pl.pallas_call(
        kernel,
        out_shape=jax.ShapeDtypeStruct((Mp, d_out), out_dtype),
        grid_spec=pltpu.PrefetchScalarGridSpec(
            num_scalar_prefetch=0,
            grid=(Mp // tile,),
            in_specs=row_specs + const_specs,
            out_specs=pl.BlockSpec((tile, d_out), lambda i: (i, 0)),
        ),
        compiler_params=pltpu.CompilerParams(dimension_semantics=("parallel",)),
    )(*row_inputs, *const_inputs)
    return out[:M]


# ---------------------------------------------------------------------------
# Pallas kernel 1: fused  y = act(x @ W + b)
def _linear_kernel(x_ref, w_ref, b_ref, o_ref, *, activation):
    y = jnp.dot(x_ref[...], w_ref[...], preferred_element_type=jnp.float32)
    y = y + b_ref[...].astype(jnp.float32)
    y = _apply_activation(y, activation)
    o_ref[...] = y.astype(o_ref.dtype)


def pallas_linear(x, w, b=None, activation=None, row_tile=512):
    """x: (..., d_in) @ w: (d_in, d_out) + b, with optional fused activation."""
    *lead, d_in = x.shape
    d_out = w.shape[1]
    M = int(np.prod(lead)) if lead else 1
    if b is None:
        b = jnp.zeros((d_out,), x.dtype)
    out = _run_rowwise(
        functools.partial(_linear_kernel, activation=activation),
        [x.reshape(M, d_in)],
        [w, b.reshape(1, d_out)],
        d_out, x.dtype, row_tile)
    return out.reshape(*lead, d_out)


# ---------------------------------------------------------------------------
# Pallas kernel 2: fused FFN  y = act(x @ W1 + b1) @ W2 + b2  (d_ff stays in VMEM)
def _ffn_kernel(x_ref, w1_ref, b1_ref, w2_ref, b2_ref, o_ref, *, activation):
    h = jnp.dot(x_ref[...], w1_ref[...], preferred_element_type=jnp.float32)
    h = h + b1_ref[...].astype(jnp.float32)
    h = _apply_activation(h, activation)
    y = jnp.dot(h.astype(w2_ref.dtype), w2_ref[...],
                preferred_element_type=jnp.float32)
    y = y + b2_ref[...].astype(jnp.float32)
    o_ref[...] = y.astype(o_ref.dtype)


def pallas_ffn(x, w1, b1, w2, b2, activation, row_tile=512):
    *lead, d_in = x.shape
    d_ff = w1.shape[1]
    d_out = w2.shape[1]
    M = int(np.prod(lead)) if lead else 1
    out = _run_rowwise(
        functools.partial(_ffn_kernel, activation=activation),
        [x.reshape(M, d_in)],
        [w1, b1.reshape(1, d_ff), w2, b2.reshape(1, d_out)],
        d_out, x.dtype, row_tile)
    return out.reshape(*lead, d_out)


# ---------------------------------------------------------------------------
# Pallas kernel 3: LayerNorm (eps = 1e-5, like torch), with optional fused
# residual add:  out = LN(x [+ r]) * g + b
def _layernorm_kernel(x_ref, g_ref, b_ref, o_ref):
    s = x_ref[...].astype(jnp.float32)
    mu = jnp.mean(s, axis=-1, keepdims=True)
    sc = s - mu
    var = jnp.mean(sc * sc, axis=-1, keepdims=True)
    y = sc * jax.lax.rsqrt(var + 1e-5)
    y = y * g_ref[...].astype(jnp.float32) + b_ref[...].astype(jnp.float32)
    o_ref[...] = y.astype(o_ref.dtype)


def _add_layernorm_kernel(x_ref, r_ref, g_ref, b_ref, o_ref):
    s = x_ref[...].astype(jnp.float32) + r_ref[...].astype(jnp.float32)
    mu = jnp.mean(s, axis=-1, keepdims=True)
    sc = s - mu
    var = jnp.mean(sc * sc, axis=-1, keepdims=True)
    y = sc * jax.lax.rsqrt(var + 1e-5)
    y = y * g_ref[...].astype(jnp.float32) + b_ref[...].astype(jnp.float32)
    o_ref[...] = y.astype(o_ref.dtype)


def pallas_layer_norm(x, gamma, beta, row_tile=512):
    *lead, d = x.shape
    M = int(np.prod(lead)) if lead else 1
    out = _run_rowwise(_layernorm_kernel, [x.reshape(M, d)],
                       [gamma.reshape(1, d), beta.reshape(1, d)],
                       d, x.dtype, row_tile)
    return out.reshape(*lead, d)


def pallas_add_layer_norm(x, r, gamma, beta, row_tile=512):
    """out = LayerNorm(x + r); fuses the residual add into the norm kernel."""
    *lead, d = x.shape
    M = int(np.prod(lead)) if lead else 1
    out = _run_rowwise(_add_layernorm_kernel,
                       [x.reshape(M, d), r.reshape(M, d)],
                       [gamma.reshape(1, d), beta.reshape(1, d)],
                       d, x.dtype, row_tile)
    return out.reshape(*lead, d)


# ---------------------------------------------------------------------------
# Pallas kernel 4: full (unmasked) softmax attention, batched over (B*H).
def _full_attn_kernel(q_ref, k_ref, v_ref, o_ref, *, scale):
    q = q_ref[...]
    k = k_ref[...]
    v = v_ref[...]
    s = jnp.einsum("bqe,bke->bqk", q, k, preferred_element_type=jnp.float32) * scale
    m = jnp.max(s, axis=-1, keepdims=True)
    e = jnp.exp(s - m)
    p = e / jnp.sum(e, axis=-1, keepdims=True)
    o = jnp.einsum("bqk,bkd->bqd", p.astype(v.dtype), v,
                   preferred_element_type=jnp.float32)
    o_ref[...] = o.astype(o_ref.dtype)


def pallas_full_attention(q, k, v, *, scale):
    """q: (B, Lq, H, E); k, v: (B, Lk, H, E)  ->  (B, Lq, H, E)."""
    B, Lq, H, E = q.shape
    Lk = k.shape[1]
    BH = B * H
    qh = jnp.transpose(q, (0, 2, 1, 3)).reshape(BH, Lq, E)
    kh = jnp.transpose(k, (0, 2, 1, 3)).reshape(BH, Lk, E)
    vh = jnp.transpose(v, (0, 2, 1, 3)).reshape(BH, Lk, E)
    bh_tile = BH  # all (batch, head) pairs fit comfortably in VMEM at these sizes
    out = pl.pallas_call(
        functools.partial(_full_attn_kernel, scale=scale),
        out_shape=jax.ShapeDtypeStruct((BH, Lq, E), q.dtype),
        grid_spec=pltpu.PrefetchScalarGridSpec(
            num_scalar_prefetch=0,
            grid=(BH // bh_tile,),
            in_specs=[
                pl.BlockSpec((bh_tile, Lq, E), lambda i: (i, 0, 0)),
                pl.BlockSpec((bh_tile, Lk, E), lambda i: (i, 0, 0)),
                pl.BlockSpec((bh_tile, Lk, E), lambda i: (i, 0, 0)),
            ],
            out_specs=pl.BlockSpec((bh_tile, Lq, E), lambda i: (i, 0, 0)),
        ),
        compiler_params=pltpu.CompilerParams(dimension_semantics=("parallel",)),
    )(qh, kh, vh)
    return jnp.transpose(out.reshape(B, H, Lq, E), (0, 2, 1, 3))


# ---------------------------------------------------------------------------
# ProbSparse attention (Informer's ProbAttention), plain JAX.
# TODO(synk): data-dependent top-k query selection / gather / scatter has no
# clean Pallas equivalent (would need manual DMA gather), so it stays in JAX.
def prob_attention(q, k, v, *, factor, mask_flag, rng_key):
    """q, k, v: (B, L, H, E).  Returns (B, Lq, H, E)."""
    B, L_Q, H, E = q.shape
    L_K = k.shape[1]
    Q = jnp.transpose(q, (0, 2, 1, 3))  # (B,H,Lq,E)
    K = jnp.transpose(k, (0, 2, 1, 3))
    V = jnp.transpose(v, (0, 2, 1, 3))

    U_part = min(int(factor * math.ceil(math.log(L_K))), L_K)
    u = min(int(factor * math.ceil(math.log(L_Q))), L_Q)

    index_sample = jax.random.randint(rng_key, (L_Q, U_part), 0, L_K)
    K_sample = K[:, :, index_sample, :]                        # (B,H,Lq,U_part,E)
    Q_K_sample = jnp.einsum("bhle,bhlse->bhls", Q, K_sample)
    M = Q_K_sample.max(axis=-1) - Q_K_sample.sum(axis=-1) / L_K
    _, M_top = jax.lax.top_k(M, u)                             # (B,H,u)

    Q_reduce = jnp.take_along_axis(Q, M_top[..., None], axis=2)  # (B,H,u,E)
    scores = jnp.einsum("bhue,bhke->bhuk", Q_reduce, K) * (1.0 / math.sqrt(E))

    if mask_flag:
        context = jnp.cumsum(V, axis=2)                        # masked: running sum of V
        causal = jnp.triu(jnp.ones((L_Q, L_K), dtype=bool), k=1)
        scores = jnp.where(causal[M_top], -jnp.inf, scores)
    else:
        context = jnp.broadcast_to(V.mean(axis=2, keepdims=True),
                                   (B, H, L_Q, V.shape[-1]))

    attn = jax.nn.softmax(scores, axis=-1)
    update = jnp.einsum("bhuk,bhkd->bhud", attn, V)
    b_idx = jnp.arange(B)[:, None, None]
    h_idx = jnp.arange(H)[None, :, None]
    context = context.at[b_idx, h_idx, M_top, :].set(update)
    return jnp.transpose(context, (0, 2, 1, 3))


# ---------------------------------------------------------------------------
# Model building blocks (forward only, dropout = 0.0 -> identity).
def attention_layer_fwd(p, q_in, k_in, v_in, *, attn_type, mask_flag, mix, rng_key):
    B, L, _ = q_in.shape
    S = k_in.shape[1]
    H = CFG["n_heads"]
    d_model = CFG["d_model"]
    d_head = d_model // H

    if (q_in is k_in) and (k_in is v_in):
        # self-attention: one fused QKV matmul
        qkv = pallas_linear(q_in, p["w_qkv"], p["b_qkv"])
        q, k, v = jnp.split(qkv, 3, axis=-1)
    else:
        # cross-attention: Q from the decoder stream, fused KV from the encoder
        q = pallas_linear(q_in, p["w_qkv"][:, :d_model], p["b_qkv"][:d_model])
        kv = pallas_linear(k_in, p["w_qkv"][:, d_model:], p["b_qkv"][d_model:])
        k, v = jnp.split(kv, 2, axis=-1)

    q = q.reshape(B, L, H, d_head)
    k = k.reshape(B, S, H, d_head)
    v = v.reshape(B, S, H, d_head)

    if attn_type == "prob":
        out = prob_attention(q, k, v, factor=CFG["factor"],
                             mask_flag=mask_flag, rng_key=rng_key)
    else:
        out = pallas_full_attention(q, k, v, scale=1.0 / math.sqrt(d_head))
    if mix:
        out = jnp.transpose(out, (0, 2, 1, 3))  # replicate torch's .transpose(2,1).view
    out = out.reshape(B, L, d_model)
    return pallas_linear(out, p["wo"], p["bo"])


def encoder_layer_fwd(p, x, *, rng_key):
    new_x = attention_layer_fwd(p["attn"], x, x, x, attn_type="prob",
                                mask_flag=False, mix=False, rng_key=rng_key)
    x = pallas_add_layer_norm(x, new_x, p["norm1"]["g"], p["norm1"]["b"])
    y = pallas_ffn(x, p["conv1_w"], p["conv1_b"], p["conv2_w"], p["conv2_b"],
                   activation=CFG["activation"])
    return pallas_add_layer_norm(x, y, p["norm2"]["g"], p["norm2"]["b"])


def conv_layer_fwd(p, x):
    """Distilling ConvLayer: circular k=3 conv -> BatchNorm -> ELU -> MaxPool(3,2,1)."""
    # kernel-3 circular Conv1d as im2col + fused Pallas matmul
    xp = jnp.concatenate([jnp.roll(x, 1, axis=1), x, jnp.roll(x, -1, axis=1)], axis=-1)
    h = pallas_linear(xp, p["w"], p["b"])
    # TODO(synk): BatchNorm1d uses training-mode batch statistics here (module default);
    # batch statistics + ELU + MaxPool stay in plain JAX.
    mean = jnp.mean(h, axis=(0, 1), keepdims=True)
    var = jnp.var(h, axis=(0, 1), keepdims=True)
    h = (h - mean) * jax.lax.rsqrt(var + 1e-5) * p["bn_g"] + p["bn_b"]
    h = jnp.where(h > 0, h, jnp.expm1(h))  # ELU
    # MaxPool1d(kernel_size=3, stride=2, padding=1) along the sequence axis
    B, L, C = h.shape
    hp = jnp.pad(h, ((0, 0), (1, 1), (0, 0)), constant_values=-jnp.inf)
    L_out = (L + 2 - 3) // 2 + 1
    idx = jnp.arange(L_out) * 2
    return jnp.maximum(jnp.maximum(hp[:, idx, :], hp[:, idx + 1, :]), hp[:, idx + 2, :])


def decoder_layer_fwd(p, x, cross, *, rng_key):
    sa = attention_layer_fwd(p["self_attn"], x, x, x, attn_type="prob",
                             mask_flag=True, mix=CFG["mix"], rng_key=rng_key)
    x = pallas_add_layer_norm(x, sa, p["norm1"]["g"], p["norm1"]["b"])
    ca = attention_layer_fwd(p["cross_attn"], x, cross, cross, attn_type="full",
                             mask_flag=False, mix=False, rng_key=None)
    x = pallas_add_layer_norm(x, ca, p["norm2"]["g"], p["norm2"]["b"])
    y = pallas_ffn(x, p["conv1_w"], p["conv1_b"], p["conv2_w"], p["conv2_b"],
                   activation=CFG["activation"])
    return pallas_add_layer_norm(x, y, p["norm3"]["g"], p["norm3"]["b"])


def data_embedding_fwd(p, x, x_mark, pos_table, temp_tables):
    # TokenEmbedding: kernel-3 circular Conv1d (bias-free) as im2col + matmul
    xp = jnp.concatenate([jnp.roll(x, 1, axis=1), x, jnp.roll(x, -1, axis=1)], axis=-1)
    val = pallas_linear(xp, p["token_w"], None)
    L = x.shape[1]
    pos = pos_table[:L][None]
    # TODO(synk): embedding table lookups (FixedEmbedding) stay in plain JAX.
    temp = (temp_tables["month"][x_mark[..., 0]]
            + temp_tables["day"][x_mark[..., 1]]
            + temp_tables["weekday"][x_mark[..., 2]]
            + temp_tables["hour"][x_mark[..., 3]])
    return val + pos + temp


def informer_stack_forward(params, x_enc, x_mark_enc, x_dec, x_mark_dec, rng_key):
    enc_out = data_embedding_fwd(params["enc_embed"], x_enc, x_mark_enc,
                                 params["pos_table"], params["temporal"])

    # EncoderStack: encoder i consumes the last (seq_len / 2**i) steps.
    x_stack = []
    call_id = 0
    for i_len, p_enc in zip(CFG["inp_lens"], params["encoders"]):
        inp_len = enc_out.shape[1] // (2 ** i_len)
        x = enc_out[:, -inp_len:, :]
        n_conv = len(p_enc["convs"])
        for li in range(n_conv):
            x = encoder_layer_fwd(p_enc["layers"][li], x,
                                  rng_key=jax.random.fold_in(rng_key, call_id))
            call_id += 1
            x = conv_layer_fwd(p_enc["convs"][li], x)
        x = encoder_layer_fwd(p_enc["layers"][-1], x,
                              rng_key=jax.random.fold_in(rng_key, call_id))
        call_id += 1
        x = pallas_layer_norm(x, p_enc["norm"]["g"], p_enc["norm"]["b"])
        x_stack.append(x)
    enc_out = jnp.concatenate(x_stack, axis=1)

    dec_out = data_embedding_fwd(params["dec_embed"], x_dec, x_mark_dec,
                                 params["pos_table"], params["temporal"])
    for li, p_layer in enumerate(params["decoder"]["layers"]):
        dec_out = decoder_layer_fwd(p_layer, dec_out, enc_out,
                                    rng_key=jax.random.fold_in(rng_key, 1000 + li))
    dec_out = pallas_layer_norm(dec_out, params["decoder"]["norm"]["g"],
                                params["decoder"]["norm"]["b"])
    dec_out = pallas_linear(dec_out, params["projection"]["w"], params["projection"]["b"])
    return dec_out[:, -CFG["pred_len"]:, :]


# ---------------------------------------------------------------------------
# Parameter / table construction.
def _sinusoid_table(n, d):
    pos = np.arange(n, dtype=np.float32)[:, None]
    div = np.exp(np.arange(0, d, 2, dtype=np.float32) * -(math.log(10000.0) / d))
    tab = np.zeros((n, d), dtype=np.float32)
    tab[:, 0::2] = np.sin(pos * div)
    tab[:, 1::2] = np.cos(pos * div)
    return jnp.asarray(tab)


class _KeyGen:
    def __init__(self, key):
        self._key = key
        self._i = 0

    def __call__(self):
        self._i += 1
        return jax.random.fold_in(self._key, self._i)


def init_params(key):
    d_model, d_ff = CFG["d_model"], CFG["d_ff"]
    kg = _KeyGen(key)

    def dense(d_in, d_out):
        w = jax.random.normal(kg(), (d_in, d_out), jnp.float32) / math.sqrt(d_in)
        b = jax.random.uniform(kg(), (d_out,), jnp.float32, -1.0, 1.0) / math.sqrt(d_in)
        return w, b

    def layer_norm():
        return {"g": jnp.ones((d_model,), jnp.float32),
                "b": jnp.zeros((d_model,), jnp.float32)}

    def attn_block():
        # Pre-fused QKV weights: [Wq | Wk | Wv]  (each column block is an
        # independent d_model x d_model projection, matching 3 nn.Linear's).
        w_qkv, b_qkv = dense(d_model, 3 * d_model)
        wo, bo = dense(d_model, d_model)
        return {"w_qkv": w_qkv, "b_qkv": b_qkv, "wo": wo, "bo": bo}

    def enc_layer():
        c1w, c1b = dense(d_model, d_ff)
        c2w, c2b = dense(d_ff, d_model)
        return {"attn": attn_block(), "conv1_w": c1w, "conv1_b": c1b,
                "conv2_w": c2w, "conv2_b": c2b,
                "norm1": layer_norm(), "norm2": layer_norm()}

    def distil_conv():
        w, b = dense(3 * d_model, d_model)
        return {"w": w, "b": b,
                "bn_g": jnp.ones((d_model,), jnp.float32),
                "bn_b": jnp.zeros((d_model,), jnp.float32)}

    def dec_layer():
        c1w, c1b = dense(d_model, d_ff)
        c2w, c2b = dense(d_ff, d_model)
        return {"self_attn": attn_block(), "cross_attn": attn_block(),
                "conv1_w": c1w, "conv1_b": c1b, "conv2_w": c2w, "conv2_b": c2b,
                "norm1": layer_norm(), "norm2": layer_norm(), "norm3": layer_norm()}

    encoders = []
    for el in CFG["e_layers"]:
        encoders.append({
            "layers": [enc_layer() for _ in range(el)],
            "convs": [distil_conv() for _ in range(el - 1)] if CFG["distil"] else [],
            "norm": layer_norm(),
        })

    pw, pb = dense(d_model, CFG["c_out"])
    return {
        "enc_embed": {"token_w": jax.random.normal(kg(), (3 * CFG["enc_in"], d_model),
                                                   jnp.float32) / math.sqrt(3 * CFG["enc_in"])},
        "dec_embed": {"token_w": jax.random.normal(kg(), (3 * CFG["dec_in"], d_model),
                                                   jnp.float32) / math.sqrt(3 * CFG["dec_in"])},
        "pos_table": _sinusoid_table(64, d_model),
        "temporal": {"month": _sinusoid_table(13, d_model),
                     "day": _sinusoid_table(32, d_model),
                     "weekday": _sinusoid_table(7, d_model),
                     "hour": _sinusoid_table(24, d_model)},
        "encoders": encoders,
        "decoder": {"layers": [dec_layer() for _ in range(CFG["d_layers"])],
                    "norm": layer_norm()},
        "projection": {"w": pw, "b": pb},
    }


# ---------------------------------------------------------------------------
if __name__ == "__main__":
    root = jax.random.PRNGKey(0)
    k_params, k_xe, k_xd, k_me, k_md, k_attn = jax.random.split(root, 6)

    params = init_params(k_params)

    B = 2
    Ld = CFG["label_len"] + CFG["pred_len"]
    x_enc = jax.random.normal(k_xe, (B, CFG["seq_len"], CFG["enc_in"]), jnp.float32)
    x_dec = jax.random.normal(k_xd, (B, Ld, CFG["dec_in"]), jnp.float32)

    def make_marks(k, L):
        k1, k2, k3, k4 = jax.random.split(k, 4)
        month = jax.random.randint(k1, (B, L), 0, 13)
        day = jax.random.randint(k2, (B, L), 0, 32)
        weekday = jax.random.randint(k3, (B, L), 0, 7)
        hour = jax.random.randint(k4, (B, L), 0, 24)
        return jnp.stack([month, day, weekday, hour], axis=-1)

    x_mark_enc = make_marks(k_me, CFG["seq_len"])
    x_mark_dec = make_marks(k_md, Ld)

    forward = jax.jit(informer_stack_forward)
    out = forward(params, x_enc, x_mark_enc, x_dec, x_mark_dec, k_attn)
    out = jax.block_until_ready(out)

    assert out.shape == (B, CFG["pred_len"], CFG["c_out"]), out.shape
    assert bool(jnp.all(jnp.isfinite(out))), "non-finite values in output"
    print("KERNEL_OK")
</pallas_src>

<mosaic_0001>
module attributes {stable_mosaic.version = 11 : i64} {
  func.func @_linear_kernel(%arg0: i32, %arg1: memref<32x21xf32, #tpu.memory_space<vmem>>, %arg2: memref<21x32xf32, #tpu.memory_space<vmem>>, %arg3: memref<1x32xf32, #tpu.memory_space<vmem>>, %arg4: memref<32x32xf32, #tpu.memory_space<vmem>>) attributes {dimension_semantics = [#tpu.dimension_semantics<parallel>], iteration_bounds = array<i64: 1>, scalar_prefetch = 0 : i64, scratch_operands = 0 : i64, tpu.core_type = #tpu.core_type<tc>, window_params = [{transform_indices = @transform_0, window_bounds = array<i64: 32, 21>}, {pipeline_mode = #tpu.pipeline_mode<synchronous>, transform_indices = @transform_1, window_bounds = array<i64: 21, 32>}, {pipeline_mode = #tpu.pipeline_mode<synchronous>, transform_indices = @transform_2, window_bounds = array<i64: 1, 32>}, {transform_indices = @transform_3, window_bounds = array<i64: 32, 32>}]} {
    %c0 = arith.constant 0 : index
    %c0_0 = arith.constant 0 : index
    %0 = vector.load %arg1[%c0, %c0_0] : memref<32x21xf32, #tpu.memory_space<vmem>>, vector<32x21xf32>
    %c0_1 = arith.constant 0 : index
    %c0_2 = arith.constant 0 : index
    %1 = vector.load %arg2[%c0_1, %c0_2] : memref<21x32xf32, #tpu.memory_space<vmem>>, vector<21x32xf32>
    %cst = arith.constant dense<0.000000e+00> : vector<32x32xf32>
    %2 = tpu.matmul %0, %1, %cst {dimension_numbers = #tpu.dot_dimension_numbers<[1], [0], [0], [1], [0, 0, 1, 1], [], []>} : vector<32x21xf32>, vector<21x32xf32>, vector<32x32xf32> -> vector<32x32xf32>
    %c0_3 = arith.constant 0 : index
    %c0_4 = arith.constant 0 : index
    %3 = vector.load %arg3[%c0_3, %c0_4] : memref<1x32xf32, #tpu.memory_space<vmem>>, vector<1x32xf32>
    %4 = vector.broadcast %3 : vector<1x32xf32> to vector<32x32xf32>
    %5 = arith.addf %2, %4 : vector<32x32xf32>
    %c0_5 = arith.constant 0 : index
    %c0_6 = arith.constant 0 : index
    %6 = vector.load %arg4[%c0_5, %c0_6] : memref<32x32xf32, #tpu.memory_space<vmem>>, vector<32x32xf32>
    tpu.vector_store %arg4[%c0_5, %c0_6], %5 {strides = array<i32>} : memref<32x32xf32, #tpu.memory_space<vmem>>, vector<32x32xf32>,
    return
  }
  func.func @transform_0(%arg0: i32) -> (i32, i32) {
    %c0_i32 = arith.constant 0 : i32
    %c0_i32_0 = arith.constant 0 : i32
    return %arg0, %c0_i32 : i32, i32
  }
  func.func @transform_1(%arg0: i32) -> (i32, i32) {
    %c0_i32 = arith.constant 0 : i32
    %c0_i32_0 = arith.constant 0 : i32
    %c0_i32_1 = arith.constant 0 : i32
    return %c0_i32, %c0_i32_0 : i32, i32
  }
  func.func @transform_2(%arg0: i32) -> (i32, i32) {
    %c0_i32 = arith.constant 0 : i32
    %c0_i32_0 = arith.constant 0 : i32
    %c0_i32_1 = arith.constant 0 : i32
    return %c0_i32, %c0_i32_0 : i32, i32
  }
  func.func @transform_3(%arg0: i32) -> (i32, i32) {
    %c0_i32 = arith.constant 0 : i32
    %c0_i32_0 = arith.constant 0 : i32
    return %arg0, %c0_i32 : i32, i32
  }
}

module attributes {stable_mosaic.version = 11 : i64} {
  func.func @_linear_kernel(%arg0: i32, %arg1: memref<32x32xf32, #tpu.memory_space<vmem>>, %arg2: memref<32x96xf32, #tpu.memory_space<vmem>>, %arg3: memref<1x96xf32, #tpu.memory_space<vmem>>, %arg4: memref<32x96xf32, #tpu.memory_space<vmem>>) attributes {dimension_semantics = [#tpu.dimension_semantics<parallel>], iteration_bounds = array<i64: 1>, scalar_prefetch = 0 : i64, scratch_operands = 0 : i64, tpu.core_type = #tpu.core_type<tc>, window_params = [{transform_indices = @transform_0, window_bounds = array<i64: 32, 32>}, {pipeline_mode = #tpu.pipeline_mode<synchronous>, transform_indices = @transform_1, window_bounds = array<i64: 32, 96>}, {pipeline_mode = #tpu.pipeline_mode<synchronous>, transform_indices = @transform_2, window_bounds = array<i64: 1, 96>}, {transform_indices = @transform_3, window_bounds = array<i64: 32, 96>}]} {
    %c0 = arith.constant 0 : index
    %c0_0 = arith.constant 0 : index
    %0 = vector.load %arg1[%c0, %c0_0] : memref<32x32xf32, #tpu.memory_space<vmem>>, vector<32x32xf32>
    %c0_1 = arith.constant 0 : index
    %c0_2 = arith.constant 0 : index
    %1 = vector.load %arg2[%c0_1, %c0_2] : memref<32x96xf32, #tpu.memory_space<vmem>>, vector<32x96xf32>
    %cst = arith.constant dense<0.000000e+00> : vector<32x96xf32>
    %2 = tpu.matmul %0, %1, %cst {dimension_numbers = #tpu.dot_dimension_numbers<[1], [0], [0], [1], [0, 0, 1, 1], [], []>} : vector<32x32xf32>, vector<32x96xf32>, vector<32x96xf32> -> vector<32x96xf32>
    %c0_3 = arith.constant 0 : index
    %c0_4 = arith.constant 0 : index
    %3 = vector.load %arg3[%c0_3, %c0_4] : memref<1x96xf32, #tpu.memory_space<vmem>>, vector<1x96xf32>
    %4 = vector.broadcast %3 : vector<1x96xf32> to vector<32x96xf32>
    %5 = arith.addf %2, %4 : vector<32x96xf32>
    %c0_5 = arith.constant 0 : index
    %c0_6 = arith.constant 0 : index
    %6 = vector.load %arg4[%c0_5, %c0_6] : memref<32x96xf32, #tpu.memory_space<vmem>>, vector<32x96xf32>
    tpu.vector_store %arg4[%c0_5, %c0_6], %5 {strides = array<i32>} : memref<32x96xf32, #tpu.memory_space<vmem>>, vector<32x96xf32>,
    return
  }
  func.func @transform_0(%arg0: i32) -> (i32, i32) {
    %c0_i32 = arith.constant 0 : i32
    %c0_i32_0 = arith.constant 0 : i32
    return %arg0, %c0_i32 : i32, i32
  }
  func.func @transform_1(%arg0: i32) -> (i32, i32) {
    %c0_i32 = arith.constant 0 : i32
    %c0_i32_0 = arith.constant 0 : i32
    %c0_i32_1 = arith.constant 0 : i32
    return %c0_i32, %c0_i32_0 : i32, i32
  }
  func.func @transform_2(%arg0: i32) -> (i32, i32) {
    %c0_i32 = arith.constant 0 : i32
    %c0_i32_0 = arith.constant 0 : i32
    %c0_i32_1 = arith.constant 0 : i32
    return %c0_i32, %c0_i32_0 : i32, i32
  }
  func.func @transform_3(%arg0: i32) -> (i32, i32) {
    %c0_i32 = arith.constant 0 : i32
    %c0_i32_0 = arith.constant 0 : i32
    return %arg0, %c0_i32 : i32, i32
  }
}

module attributes {stable_mosaic.version = 11 : i64} {
  func.func @_linear_kernel(%arg0: i32, %arg1: memref<32x32xf32, #tpu.memory_space<vmem>>, %arg2: memref<32x32xf32, #tpu.memory_space<vmem>>, %arg3: memref<1x32xf32, #tpu.memory_space<vmem>>, %arg4: memref<32x32xf32, #tpu.memory_space<vmem>>) attributes {dimension_semantics = [#tpu.dimension_semantics<parallel>], iteration_bounds = array<i64: 1>, scalar_prefetch = 0 : i64, scratch_operands = 0 : i64, tpu.core_type = #tpu.core_type<tc>, window_params = [{transform_indices = @transform_0, window_bounds = array<i64: 32, 32>}, {pipeline_mode = #tpu.pipeline_mode<synchronous>, transform_indices = @transform_1, window_bounds = array<i64: 32, 32>}, {pipeline_mode = #tpu.pipeline_mode<synchronous>, transform_indices = @transform_2, window_bounds = array<i64: 1, 32>}, {transform_indices = @transform_3, window_bounds = array<i64: 32, 32>}]} {
    %c0 = arith.constant 0 : index
    %c0_0 = arith.constant 0 : index
    %0 = vector.load %arg1[%c0, %c0_0] : memref<32x32xf32, #tpu.memory_space<vmem>>, vector<32x32xf32>
    %c0_1 = arith.constant 0 : index
    %c0_2 = arith.constant 0 : index
    %1 = vector.load %arg2[%c0_1, %c0_2] : memref<32x32xf32, #tpu.memory_space<vmem>>, vector<32x32xf32>
    %cst = arith.constant dense<0.000000e+00> : vector<32x32xf32>
    %2 = tpu.matmul %0, %1, %cst {dimension_numbers = #tpu.dot_dimension_numbers<[1], [0], [0], [1], [0, 0, 1, 1], [], []>} : vector<32x32xf32>, vector<32x32xf32>, vector<32x32xf32> -> vector<32x32xf32>
    %c0_3 = arith.constant 0 : index
    %c0_4 = arith.constant 0 : index
    %3 = vector.load %arg3[%c0_3, %c0_4] : memref<1x32xf32, #tpu.memory_space<vmem>>, vector<1x32xf32>
    %4 = vector.broadcast %3 : vector<1x32xf32> to vector<32x32xf32>
    %5 = arith.addf %2, %4 : vector<32x32xf32>
    %c0_5 = arith.constant 0 : index
    %c0_6 = arith.constant 0 : index
    %6 = vector.load %arg4[%c0_5, %c0_6] : memref<32x32xf32, #tpu.memory_space<vmem>>, vector<32x32xf32>
    tpu.vector_store %arg4[%c0_5, %c0_6], %5 {strides = array<i32>} : memref<32x32xf32, #tpu.memory_space<vmem>>, vector<32x32xf32>,
    return
  }
  func.func @transform_0(%arg0: i32) -> (i32, i32) {
    %c0_i32 = arith.constant 0 : i32
    %c0_i32_0 = arith.constant 0 : i32
    return %arg0, %c0_i32 : i32, i32
  }
  func.func @transform_1(%arg0: i32) -> (i32, i32) {
    %c0_i32 = arith.constant 0 : i32
    %c0_i32_0 = arith.constant 0 : i32
    %c0_i32_1 = arith.constant 0 : i32
    return %c0_i32, %c0_i32_0 : i32, i32
  }
  func.func @transform_2(%arg0: i32) -> (i32, i32) {
    %c0_i32 = arith.constant 0 : i32
    %c0_i32_0 = arith.constant 0 : i32
    %c0_i32_1 = arith.constant 0 : i32
    return %c0_i32, %c0_i32_0 : i32, i32
  }
  func.func @transform_3(%arg0: i32) -> (i32, i32) {
    %c0_i32 = arith.constant 0 : i32
    %c0_i32_0 = arith.constant 0 : i32
    return %arg0, %c0_i32 : i32, i32
  }
}

module attributes {stable_mosaic.version = 11 : i64} {
  func.func @_add_layernorm_kernel(%arg0: i32, %arg1: memref<32x32xf32, #tpu.memory_space<vmem>>, %arg2: memref<32x32xf32, #tpu.memory_space<vmem>>, %arg3: memref<1x32xf32, #tpu.memory_space<vmem>>, %arg4: memref<1x32xf32, #tpu.memory_space<vmem>>, %arg5: memref<32x32xf32, #tpu.memory_space<vmem>>) attributes {dimension_semantics = [#tpu.dimension_semantics<parallel>], iteration_bounds = array<i64: 1>, scalar_prefetch = 0 : i64, scratch_operands = 0 : i64, tpu.core_type = #tpu.core_type<tc>, window_params = [{transform_indices = @transform_0, window_bounds = array<i64: 32, 32>}, {transform_indices = @transform_1, window_bounds = array<i64: 32, 32>}, {pipeline_mode = #tpu.pipeline_mode<synchronous>, transform_indices = @transform_2, window_bounds = array<i64: 1, 32>}, {pipeline_mode = #tpu.pipeline_mode<synchronous>, transform_indices = @transform_3, window_bounds = array<i64: 1, 32>}, {transform_indices = @transform_4, window_bounds = array<i64: 32, 32>}]} {
    %c0 = arith.constant 0 : index
    %c0_0 = arith.constant 0 : index
    %0 = vector.load %arg1[%c0, %c0_0] : memref<32x32xf32, #tpu.memory_space<vmem>>, vector<32x32xf32>
    %c0_1 = arith.constant 0 : index
    %c0_2 = arith.constant 0 : index
    %1 = vector.load %arg2[%c0_1, %c0_2] : memref<32x32xf32, #tpu.memory_space<vmem>>, vector<32x32xf32>
    %2 = arith.addf %0, %1 : vector<32x32xf32>
    %cst = arith.constant dense<0.000000e+00> : vector<32xf32>
    %3 = vector.multi_reduction <add>, %2, %cst [1] : vector<32x32xf32> to vector<32xf32>
    %4 = vector.shape_cast %3 : vector<32xf32> to vector<32x1xf32>
    %cst_3 = arith.constant 3.200000e+01 : f32
    %5 = vector.broadcast %cst_3 : f32 to vector<32x1xf32>
    %6 = arith.divf %4, %5 : vector<32x1xf32>
    %7 = vector.broadcast %6 : vector<32x1xf32> to vector<32x32xf32>
    %8 = arith.subf %2, %7 : vector<32x32xf32>
    %9 = arith.mulf %8, %8 : vector<32x32xf32>
    %cst_4 = arith.constant dense<0.000000e+00> : vector<32xf32>
    %10 = vector.multi_reduction <add>, %9, %cst_4 [1] : vector<32x32xf32> to vector<32xf32>
    %11 = vector.shape_cast %10 : vector<32xf32> to vector<32x1xf32>
    %cst_5 = arith.constant 3.200000e+01 : f32
    %12 = vector.broadcast %cst_5 : f32 to vector<32x1xf32>
    %13 = arith.divf %11, %12 : vector<32x1xf32>
    %cst_6 = arith.constant 9.99999974E-6 : f32
    %14 = vector.broadcast %cst_6 : f32 to vector<32x1xf32>
    %15 = arith.addf %13, %14 : vector<32x1xf32>
    %16 = math.rsqrt %15 : vector<32x1xf32>
    %17 = vector.broadcast %16 : vector<32x1xf32> to vector<32x32xf32>
    %18 = arith.mulf %8, %17 : vector<32x32xf32>
    %c0_7 = arith.constant 0 : index
    %c0_8 = arith.constant 0 : index
    %19 = vector.load %arg3[%c0_7, %c0_8] : memref<1x32xf32, #tpu.memory_space<vmem>>, vector<1x32xf32>
    %20 = vector.broadcast %19 : vector<1x32xf32> to vector<32x32xf32>
    %21 = arith.mulf %18, %20 : vector<32x32xf32>
    %c0_9 = arith.constant 0 : index
    %c0_10 = arith.constant 0 : index
    %22 = vector.load %arg4[%c0_9, %c0_10] : memref<1x32xf32, #tpu.memory_space<vmem>>, vector<1x32xf32>
    %23 = vector.broadcast %22 : vector<1x32xf32> to vector<32x32xf32>
    %24 = arith.addf %21, %23 : vector<32x32xf32>
    %c0_11 = arith.constant 0 : index
    %c0_12 = arith.constant 0 : index
    %25 = vector.load %arg5[%c0_11, %c0_12] : memref<32x32xf32, #tpu.memory_space<vmem>>, vector<32x32xf32>
    tpu.vector_store %arg5[%c0_11, %c0_12], %24 {strides = array<i32>} : memref<32x32xf32, #tpu.memory_space<vmem>>, vector<32x32xf32>,
    return
  }
  func.func @transform_0(%arg0: i32) -> (i32, i32) {
    %c0_i32 = arith.constant 0 : i32
    %c0_i32_0 = arith.constant 0 : i32
    return %arg0, %c0_i32 : i32, i32
  }
  func.func @transform_1(%arg0: i32) -> (i32, i32) {
    %c0_i32 = arith.constant 0 : i32
    %c0_i32_0 = arith.constant 0 : i32
    return %arg0, %c0_i32 : i32, i32
  }
  func.func @transform_2(%arg0: i32) -> (i32, i32) {
    %c0_i32 = arith.constant 0 : i32
    %c0_i32_0 = arith.constant 0 : i32
    %c0_i32_1 = arith.constant 0 : i32
    return %c0_i32, %c0_i32_0 : i32, i32
  }
  func.func @transform_3(%arg0: i32) -> (i32, i32) {
    %c0_i32 = arith.constant 0 : i32
    %c0_i32_0 = arith.constant 0 : i32
    %c0_i32_1 = arith.constant 0 : i32
    return %c0_i32, %c0_i32_0 : i32, i32
  }
  func.func @transform_4(%arg0: i32) -> (i32, i32) {
    %c0_i32 = arith.constant 0 : i32
    %c0_i32_0 = arith.constant 0 : i32
    return %arg0, %c0_i32 : i32, i32
  }
}

module attributes {stable_mosaic.version = 11 : i64} {
  func.func @_ffn_kernel(%arg0: i32, %arg1: memref<32x32xf32, #tpu.memory_space<vmem>>, %arg2: memref<32x32xf32, #tpu.memory_space<vmem>>, %arg3: memref<1x32xf32, #tpu.memory_space<vmem>>, %arg4: memref<32x32xf32, #tpu.memory_space<vmem>>, %arg5: memref<1x32xf32, #tpu.memory_space<vmem>>, %arg6: memref<32x32xf32, #tpu.memory_space<vmem>>) attributes {dimension_semantics = [#tpu.dimension_semantics<parallel>], iteration_bounds = array<i64: 1>, scalar_prefetch = 0 : i64, scratch_operands = 0 : i64, tpu.core_type = #tpu.core_type<tc>, window_params = [{transform_indices = @transform_0, window_bounds = array<i64: 32, 32>}, {pipeline_mode = #tpu.pipeline_mode<synchronous>, transform_indices = @transform_1, window_bounds = array<i64: 32, 32>}, {pipeline_mode = #tpu.pipeline_mode<synchronous>, transform_indices = @transform_2, window_bounds = array<i64: 1, 32>}, {pipeline_mode = #tpu.pipeline_mode<synchronous>, transform_indices = @transform_3, window_bounds = array<i64: 32, 32>}, {pipeline_mode = #tpu.pipeline_mode<synchronous>, transform_indices = @transform_4, window_bounds = array<i64: 1, 32>}, {transform_indices = @transform_5, window_bounds = array<i64: 32, 32>}]} {
    %c0 = arith.constant 0 : index
    %c0_0 = arith.constant 0 : index
    %0 = vector.load %arg1[%c0, %c0_0] : memref<32x32xf32, #tpu.memory_space<vmem>>, vector<32x32xf32>
    %c0_1 = arith.constant 0 : index
    %c0_2 = arith.constant 0 : index
    %1 = vector.load %arg2[%c0_1, %c0_2] : memref<32x32xf32, #tpu.memory_space<vmem>>, vector<32x32xf32>
    %cst = arith.constant dense<0.000000e+00> : vector<32x32xf32>
    %2 = tpu.matmul %0, %1, %cst {dimension_numbers = #tpu.dot_dimension_numbers<[1], [0], [0], [1], [0, 0, 1, 1], [], []>} : vector<32x32xf32>, vector<32x32xf32>, vector<32x32xf32> -> vector<32x32xf32>
    %c0_3 = arith.constant 0 : index
    %c0_4 = arith.constant 0 : index
    %3 = vector.load %arg3[%c0_3, %c0_4] : memref<1x32xf32, #tpu.memory_space<vmem>>, vector<1x32xf32>
    %4 = vector.broadcast %3 : vector<1x32xf32> to vector<32x32xf32>
    %5 = arith.addf %2, %4 : vector<32x32xf32>
    %cst_5 = arith.constant 5.000000e-01 : f32
    %6 = vector.broadcast %cst_5 : f32 to vector<32x32xf32>
    %7 = arith.mulf %6, %5 : vector<32x32xf32>
    %cst_6 = arith.constant 4.471500e-02 : f32
    %8 = vector.broadcast %cst_6 : f32 to vector<32x32xf32>
    %9 = arith.mulf %8, %5 : vector<32x32xf32>
    %10 = arith.mulf %9, %5 : vector<32x32xf32>
    %11 = arith.mulf %10, %5 : vector<32x32xf32>
    %12 = arith.addf %5, %11 : vector<32x32xf32>
    %cst_7 = arith.constant 0.797884583 : f32
    %13 = vector.broadcast %cst_7 : f32 to vector<32x32xf32>
    %14 = arith.mulf %13, %12 : vector<32x32xf32>
    %15 = math.tanh %14 : vector<32x32xf32>
    %cst_8 = arith.constant 1.000000e+00 : f32
    %16 = vector.broadcast %cst_8 : f32 to vector<32x32xf32>
    %17 = arith.addf %16, %15 : vector<32x32xf32>
    %18 = arith.mulf %7, %17 : vector<32x32xf32>
    %c0_9 = arith.constant 0 : index
    %c0_10 = arith.constant 0 : index
    %19 = vector.load %arg4[%c0_9, %c0_10] : memref<32x32xf32, #tpu.memory_space<vmem>>, vector<32x32xf32>
    %cst_11 = arith.constant dense<0.000000e+00> : vector<32x32xf32>
    %20 = tpu.matmul %18, %19, %cst_11 {dimension_numbers = #tpu.dot_dimension_numbers<[1], [0], [0], [1], [0, 0, 1, 1], [], []>} : vector<32x32xf32>, vector<32x32xf32>, vector<32x32xf32> -> vector<32x32xf32>
    %c0_12 = arith.constant 0 : index
    %c0_13 = arith.constant 0 : index
    %21 = vector.load %arg5[%c0_12, %c0_13] : memref<1x32xf32, #tpu.memory_space<vmem>>, vector<1x32xf32>
    %22 = vector.broadcast %21 : vector<1x32xf32> to vector<32x32xf32>
    %23 = arith.addf %20, %22 : vector<32x32xf32>
    %c0_14 = arith.constant 0 : index
    %c0_15 = arith.constant 0 : index
    %24 = vector.load %arg6[%c0_14, %c0_15] : memref<32x32xf32, #tpu.memory_space<vmem>>, vector<32x32xf32>
    tpu.vector_store %arg6[%c0_14, %c0_15], %23 {strides = array<i32>} : memref<32x32xf32, #tpu.memory_space<vmem>>, vector<32x32xf32>,
    return
  }
  func.func @transform_0(%arg0: i32) -> (i32, i32) {
    %c0_i32 = arith.constant 0 : i32
    %c0_i32_0 = arith.constant 0 : i32
    return %arg0, %c0_i32 : i32, i32
  }
  func.func @transform_1(%arg0: i32) -> (i32, i32) {
    %c0_i32 = arith.constant 0 : i32
    %c0_i32_0 = arith.constant 0 : i32
    %c0_i32_1 = arith.constant 0 : i32
    return %c0_i32, %c0_i32_0 : i32, i32
  }
  func.func @transform_2(%arg0: i32) -> (i32, i32) {
    %c0_i32 = arith.constant 0 : i32
    %c0_i32_0 = arith.constant 0 : i32
    %c0_i32_1 = arith.constant 0 : i32
    return %c0_i32, %c0_i32_0 : i32, i32
  }
  func.func @transform_3(%arg0: i32) -> (i32, i32) {
    %c0_i32 = arith.constant 0 : i32
    %c0_i32_0 = arith.constant 0 : i32
    %c0_i32_1 = arith.constant 0 : i32
    return %c0_i32, %c0_i32_0 : i32, i32
  }
  func.func @transform_4(%arg0: i32) -> (i32, i32) {
    %c0_i32 = arith.constant 0 : i32
    %c0_i32_0 = arith.constant 0 : i32
    %c0_i32_1 = arith.constant 0 : i32
    return %c0_i32, %c0_i32_0 : i32, i32
  }
  func.func @transform_5(%arg0: i32) -> (i32, i32) {
    %c0_i32 = arith.constant 0 : i32
    %c0_i32_0 = arith.constant 0 : i32
    return %arg0, %c0_i32 : i32, i32
  }
}

module attributes {stable_mosaic.version = 11 : i64} {
  func.func @_linear_kernel(%arg0: i32, %arg1: memref<32x96xf32, #tpu.memory_space<vmem>>, %arg2: memref<96x32xf32, #tpu.memory_space<vmem>>, %arg3: memref<1x32xf32, #tpu.memory_space<vmem>>, %arg4: memref<32x32xf32, #tpu.memory_space<vmem>>) attributes {dimension_semantics = [#tpu.dimension_semantics<parallel>], iteration_bounds = array<i64: 1>, scalar_prefetch = 0 : i64, scratch_operands = 0 : i64, tpu.core_type = #tpu.core_type<tc>, window_params = [{transform_indices = @transform_0, window_bounds = array<i64: 32, 96>}, {pipeline_mode = #tpu.pipeline_mode<synchronous>, transform_indices = @transform_1, window_bounds = array<i64: 96, 32>}, {pipeline_mode = #tpu.pipeline_mode<synchronous>, transform_indices = @transform_2, window_bounds = array<i64: 1, 32>}, {transform_indices = @transform_3, window_bounds = array<i64: 32, 32>}]} {
    %c0 = arith.constant 0 : index
    %c0_0 = arith.constant 0 : index
    %0 = vector.load %arg1[%c0, %c0_0] : memref<32x96xf32, #tpu.memory_space<vmem>>, vector<32x96xf32>
    %c0_1 = arith.constant 0 : index
    %c0_2 = arith.constant 0 : index
    %1 = vector.load %arg2[%c0_1, %c0_2] : memref<96x32xf32, #tpu.memory_space<vmem>>, vector<96x32xf32>
    %cst = arith.constant dense<0.000000e+00> : vector<32x32xf32>
    %2 = tpu.matmul %0, %1, %cst {dimension_numbers = #tpu.dot_dimension_numbers<[1], [0], [0], [1], [0, 0, 1, 1], [], []>} : vector<32x96xf32>, vector<96x32xf32>, vector<32x32xf32> -> vector<32x32xf32>
    %c0_3 = arith.constant 0 : index
    %c0_4 = arith.constant 0 : index
    %3 = vector.load %arg3[%c0_3, %c0_4] : memref<1x32xf32, #tpu.memory_space<vmem>>, vector<1x32xf32>
    %4 = vector.broadcast %3 : vector<1x32xf32> to vector<32x32xf32>
    %5 = arith.addf %2, %4 : vector<32x32xf32>
    %c0_5 = arith.constant 0 : index
    %c0_6 = arith.constant 0 : index
    %6 = vector.load %arg4[%c0_5, %c0_6] : memref<32x32xf32, #tpu.memory_space<vmem>>, vector<32x32xf32>
    tpu.vector_store %arg4[%c0_5, %c0_6], %5 {strides = array<i32>} : memref<32x32xf32, #tpu.memory_space<vmem>>, vector<32x32xf32>,
    return
  }
  func.func @transform_0(%arg0: i32) -> (i32, i32) {
    %c0_i32 = arith.constant 0 : i32
    %c0_i32_0 = arith.constant 0 : i32
    return %arg0, %c0_i32 : i32, i32
  }
  func.func @transform_1(%arg0: i32) -> (i32, i32) {
    %c0_i32 = arith.constant 0 : i32
    %c0_i32_0 = arith.constant 0 : i32
    %c0_i32_1 = arith.constant 0 : i32
    return %c0_i32, %c0_i32_0 : i32, i32
  }
  func.func @transform_2(%arg0: i32) -> (i32, i32) {
    %c0_i32 = arith.constant 0 : i32
    %c0_i32_0 = arith.constant 0 : i32
    %c0_i32_1 = arith.constant 0 : i32
    return %c0_i32, %c0_i32_0 : i32, i32
  }
  func.func @transform_3(%arg0: i32) -> (i32, i32) {
    %c0_i32 = arith.constant 0 : i32
    %c0_i32_0 = arith.constant 0 : i32
    return %arg0, %c0_i32 : i32, i32
  }
}

module attributes {stable_mosaic.version = 11 : i64} {
  func.func @_linear_kernel(%arg0: i32, %arg1: memref<16x32xf32, #tpu.memory_space<vmem>>, %arg2: memref<32x96xf32, #tpu.memory_space<vmem>>, %arg3: memref<1x96xf32, #tpu.memory_space<vmem>>, %arg4: memref<16x96xf32, #tpu.memory_space<vmem>>) attributes {dimension_semantics = [#tpu.dimension_semantics<parallel>], iteration_bounds = array<i64: 1>, scalar_prefetch = 0 : i64, scratch_operands = 0 : i64, tpu.core_type = #tpu.core_type<tc>, window_params = [{transform_indices = @transform_0, window_bounds = array<i64: 16, 32>}, {pipeline_mode = #tpu.pipeline_mode<synchronous>, transform_indices = @transform_1, window_bounds = array<i64: 32, 96>}, {pipeline_mode = #tpu.pipeline_mode<synchronous>, transform_indices = @transform_2, window_bounds = array<i64: 1, 96>}, {transform_indices = @transform_3, window_bounds = array<i64: 16, 96>}]} {
    %c0 = arith.constant 0 : index
    %c0_0 = arith.constant 0 : index
    %0 = vector.load %arg1[%c0, %c0_0] : memref<16x32xf32, #tpu.memory_space<vmem>>, vector<16x32xf32>
    %c0_1 = arith.constant 0 : index
    %c0_2 = arith.constant 0 : index
    %1 = vector.load %arg2[%c0_1, %c0_2] : memref<32x96xf32, #tpu.memory_space<vmem>>, vector<32x96xf32>
    %cst = arith.constant dense<0.000000e+00> : vector<16x96xf32>
    %2 = tpu.matmul %0, %1, %cst {dimension_numbers = #tpu.dot_dimension_numbers<[1], [0], [0], [1], [0, 0, 1, 1], [], []>} : vector<16x32xf32>, vector<32x96xf32>, vector<16x96xf32> -> vector<16x96xf32>
    %c0_3 = arith.constant 0 : index
    %c0_4 = arith.constant 0 : index
    %3 = vector.load %arg3[%c0_3, %c0_4] : memref<1x96xf32, #tpu.memory_space<vmem>>, vector<1x96xf32>
    %4 = vector.broadcast %3 : vector<1x96xf32> to vector<16x96xf32>
    %5 = arith.addf %2, %4 : vector<16x96xf32>
    %c0_5 = arith.constant 0 : index
    %c0_6 = arith.constant 0 : index
    %6 = vector.load %arg4[%c0_5, %c0_6] : memref<16x96xf32, #tpu.memory_space<vmem>>, vector<16x96xf32>
    tpu.vector_store %arg4[%c0_5, %c0_6], %5 {strides = array<i32>} : memref<16x96xf32, #tpu.memory_space<vmem>>, vector<16x96xf32>,
    return
  }
  func.func @transform_0(%arg0: i32) -> (i32, i32) {
    %c0_i32 = arith.constant 0 : i32
    %c0_i32_0 = arith.constant 0 : i32
    return %arg0, %c0_i32 : i32, i32
  }
  func.func @transform_1(%arg0: i32) -> (i32, i32) {
    %c0_i32 = arith.constant 0 : i32
    %c0_i32_0 = arith.constant 0 : i32
    %c0_i32_1 = arith.constant 0 : i32
    return %c0_i32, %c0_i32_0 : i32, i32
  }
  func.func @transform_2(%arg0: i32) -> (i32, i32) {
    %c0_i32 = arith.constant 0 : i32
    %c0_i32_0 = arith.constant 0 : i32
    %c0_i32_1 = arith.constant 0 : i32
    return %c0_i32, %c0_i32_0 : i32, i32
  }
  func.func @transform_3(%arg0: i32) -> (i32, i32) {
    %c0_i32 = arith.constant 0 : i32
    %c0_i32_0 = arith.constant 0 : i32
    return %arg0, %c0_i32 : i32, i32
  }
}

module attributes {stable_mosaic.version = 11 : i64} {
  func.func @_linear_kernel(%arg0: i32, %arg1: memref<16x32xf32, #tpu.memory_space<vmem>>, %arg2: memref<32x32xf32, #tpu.memory_space<vmem>>, %arg3: memref<1x32xf32, #tpu.memory_space<vmem>>, %arg4: memref<16x32xf32, #tpu.memory_space<vmem>>) attributes {dimension_semantics = [#tpu.dimension_semantics<parallel>], iteration_bounds = array<i64: 1>, scalar_prefetch = 0 : i64, scratch_operands = 0 : i64, tpu.core_type = #tpu.core_type<tc>, window_params = [{transform_indices = @transform_0, window_bounds = array<i64: 16, 32>}, {pipeline_mode = #tpu.pipeline_mode<synchronous>, transform_indices = @transform_1, window_bounds = array<i64: 32, 32>}, {pipeline_mode = #tpu.pipeline_mode<synchronous>, transform_indices = @transform_2, window_bounds = array<i64: 1, 32>}, {transform_indices = @transform_3, window_bounds = array<i64: 16, 32>}]} {
    %c0 = arith.constant 0 : index
    %c0_0 = arith.constant 0 : index
    %0 = vector.load %arg1[%c0, %c0_0] : memref<16x32xf32, #tpu.memory_space<vmem>>, vector<16x32xf32>
    %c0_1 = arith.constant 0 : index
    %c0_2 = arith.constant 0 : index
    %1 = vector.load %arg2[%c0_1, %c0_2] : memref<32x32xf32, #tpu.memory_space<vmem>>, vector<32x32xf32>
    %cst = arith.constant dense<0.000000e+00> : vector<16x32xf32>
    %2 = tpu.matmul %0, %1, %cst {dimension_numbers = #tpu.dot_dimension_numbers<[1], [0], [0], [1], [0, 0, 1, 1], [], []>} : vector<16x32xf32>, vector<32x32xf32>, vector<16x32xf32> -> vector<16x32xf32>
    %c0_3 = arith.constant 0 : index
    %c0_4 = arith.constant 0 : index
    %3 = vector.load %arg3[%c0_3, %c0_4] : memref<1x32xf32, #tpu.memory_space<vmem>>, vector<1x32xf32>
    %4 = vector.broadcast %3 : vector<1x32xf32> to vector<16x32xf32>
    %5 = arith.addf %2, %4 : vector<16x32xf32>
    %c0_5 = arith.constant 0 : index
    %c0_6 = arith.constant 0 : index
    %6 = vector.load %arg4[%c0_5, %c0_6] : memref<16x32xf32, #tpu.memory_space<vmem>>, vector<16x32xf32>
    tpu.vector_store %arg4[%c0_5, %c0_6], %5 {strides = array<i32>} : memref<16x32xf32, #tpu.memory_space<vmem>>, vector<16x32xf32>,
    return
  }
  func.func @transform_0(%arg0: i32) -> (i32, i32) {
    %c0_i32 = arith.constant 0 : i32
    %c0_i32_0 = arith.constant 0 : i32
    return %arg0, %c0_i32 : i32, i32
  }
  func.func @transform_1(%arg0: i32) -> (i32, i32) {
    %c0_i32 = arith.constant 0 : i32
    %c0_i32_0 = arith.constant 0 : i32
    %c0_i32_1 = arith.constant 0 : i32
    return %c0_i32, %c0_i32_0 : i32, i32
  }
  func.func @transform_2(%arg0: i32) -> (i32, i32) {
    %c0_i32 = arith.constant 0 : i32
    %c0_i32_0 = arith.constant 0 : i32
    %c0_i32_1 = arith.constant 0 : i32
    return %c0_i32, %c0_i32_0 : i32, i32
  }
  func.func @transform_3(%arg0: i32) -> (i32, i32) {
    %c0_i32 = arith.constant 0 : i32
    %c0_i32_0 = arith.constant 0 : i32
    return %arg0, %c0_i32 : i32, i32
  }
}

module attributes {stable_mosaic.version = 11 : i64} {
  func.func @_add_layernorm_kernel(%arg0: i32, %arg1: memref<16x32xf32, #tpu.memory_space<vmem>>, %arg2: memref<16x32xf32, #tpu.memory_space<vmem>>, %arg3: memref<1x32xf32, #tpu.memory_space<vmem>>, %arg4: memref<1x32xf32, #tpu.memory_space<vmem>>, %arg5: memref<16x32xf32, #tpu.memory_space<vmem>>) attributes {dimension_semantics = [#tpu.dimension_semantics<parallel>], iteration_bounds = array<i64: 1>, scalar_prefetch = 0 : i64, scratch_operands = 0 : i64, tpu.core_type = #tpu.core_type<tc>, window_params = [{transform_indices = @transform_0, window_bounds = array<i64: 16, 32>}, {transform_indices = @transform_1, window_bounds = array<i64: 16, 32>}, {pipeline_mode = #tpu.pipeline_mode<synchronous>, transform_indices = @transform_2, window_bounds = array<i64: 1, 32>}, {pipeline_mode = #tpu.pipeline_mode<synchronous>, transform_indices = @transform_3, window_bounds = array<i64: 1, 32>}, {transform_indices = @transform_4, window_bounds = array<i64: 16, 32>}]} {
    %c0 = arith.constant 0 : index
    %c0_0 = arith.constant 0 : index
    %0 = vector.load %arg1[%c0, %c0_0] : memref<16x32xf32, #tpu.memory_space<vmem>>, vector<16x32xf32>
    %c0_1 = arith.constant 0 : index
    %c0_2 = arith.constant 0 : index
    %1 = vector.load %arg2[%c0_1, %c0_2] : memref<16x32xf32, #tpu.memory_space<vmem>>, vector<16x32xf32>
    %2 = arith.addf %0, %1 : vector<16x32xf32>
    %cst = arith.constant dense<0.000000e+00> : vector<16xf32>
    %3 = vector.multi_reduction <add>, %2, %cst [1] : vector<16x32xf32> to vector<16xf32>
    %4 = vector.shape_cast %3 : vector<16xf32> to vector<16x1xf32>
    %cst_3 = arith.constant 3.200000e+01 : f32
    %5 = vector.broadcast %cst_3 : f32 to vector<16x1xf32>
    %6 = arith.divf %4, %5 : vector<16x1xf32>
    %7 = vector.broadcast %6 : vector<16x1xf32> to vector<16x32xf32>
    %8 = arith.subf %2, %7 : vector<16x32xf32>
    %9 = arith.mulf %8, %8 : vector<16x32xf32>
    %cst_4 = arith.constant dense<0.000000e+00> : vector<16xf32>
    %10 = vector.multi_reduction <add>, %9, %cst_4 [1] : vector<16x32xf32> to vector<16xf32>
    %11 = vector.shape_cast %10 : vector<16xf32> to vector<16x1xf32>
    %cst_5 = arith.constant 3.200000e+01 : f32
    %12 = vector.broadcast %cst_5 : f32 to vector<16x1xf32>
    %13 = arith.divf %11, %12 : vector<16x1xf32>
    %cst_6 = arith.constant 9.99999974E-6 : f32
    %14 = vector.broadcast %cst_6 : f32 to vector<16x1xf32>
    %15 = arith.addf %13, %14 : vector<16x1xf32>
    %16 = math.rsqrt %15 : vector<16x1xf32>
    %17 = vector.broadcast %16 : vector<16x1xf32> to vector<16x32xf32>
    %18 = arith.mulf %8, %17 : vector<16x32xf32>
    %c0_7 = arith.constant 0 : index
    %c0_8 = arith.constant 0 : index
    %19 = vector.load %arg3[%c0_7, %c0_8] : memref<1x32xf32, #tpu.memory_space<vmem>>, vector<1x32xf32>
    %20 = vector.broadcast %19 : vector<1x32xf32> to vector<16x32xf32>
    %21 = arith.mulf %18, %20 : vector<16x32xf32>
    %c0_9 = arith.constant 0 : index
    %c0_10 = arith.constant 0 : index
    %22 = vector.load %arg4[%c0_9, %c0_10] : memref<1x32xf32, #tpu.memory_space<vmem>>, vector<1x32xf32>
    %23 = vector.broadcast %22 : vector<1x32xf32> to vector<16x32xf32>
    %24 = arith.addf %21, %23 : vector<16x32xf32>
    %c0_11 = arith.constant 0 : index
    %c0_12 = arith.constant 0 : index
    %25 = vector.load %arg5[%c0_11, %c0_12] : memref<16x32xf32, #tpu.memory_space<vmem>>, vector<16x32xf32>
    tpu.vector_store %arg5[%c0_11, %c0_12], %24 {strides = array<i32>} : memref<16x32xf32, #tpu.memory_space<vmem>>, vector<16x32xf32>,
    return
  }
  func.func @transform_0(%arg0: i32) -> (i32, i32) {
    %c0_i32 = arith.constant 0 : i32
    %c0_i32_0 = arith.constant 0 : i32
    return %arg0, %c0_i32 : i32, i32
  }
  func.func @transform_1(%arg0: i32) -> (i32, i32) {
    %c0_i32 = arith.constant 0 : i32
    %c0_i32_0 = arith.constant 0 : i32
    return %arg0, %c0_i32 : i32, i32
  }
  func.func @transform_2(%arg0: i32) -> (i32, i32) {
    %c0_i32 = arith.constant 0 : i32
    %c0_i32_0 = arith.constant 0 : i32
    %c0_i32_1 = arith.constant 0 : i32
    return %c0_i32, %c0_i32_0 : i32, i32
  }
  func.func @transform_3(%arg0: i32) -> (i32, i32) {
    %c0_i32 = arith.constant 0 : i32
    %c0_i32_0 = arith.constant 0 : i32
    %c0_i32_1 = arith.constant 0 : i32
    return %c0_i32, %c0_i32_0 : i32, i32
  }
  func.func @transform_4(%arg0: i32) -> (i32, i32) {
    %c0_i32 = arith.constant 0 : i32
    %c0_i32_0 = arith.constant 0 : i32
    return %arg0, %c0_i32 : i32, i32
  }
}

module attributes {stable_mosaic.version = 11 : i64} {
  func.func @_ffn_kernel(%arg0: i32, %arg1: memref<16x32xf32, #tpu.memory_space<vmem>>, %arg2: memref<32x32xf32, #tpu.memory_space<vmem>>, %arg3: memref<1x32xf32, #tpu.memory_space<vmem>>, %arg4: memref<32x32xf32, #tpu.memory_space<vmem>>, %arg5: memref<1x32xf32, #tpu.memory_space<vmem>>, %arg6: memref<16x32xf32, #tpu.memory_space<vmem>>) attributes {dimension_semantics = [#tpu.dimension_semantics<parallel>], iteration_bounds = array<i64: 1>, scalar_prefetch = 0 : i64, scratch_operands = 0 : i64, tpu.core_type = #tpu.core_type<tc>, window_params = [{transform_indices = @transform_0, window_bounds = array<i64: 16, 32>}, {pipeline_mode = #tpu.pipeline_mode<synchronous>, transform_indices = @transform_1, window_bounds = array<i64: 32, 32>}, {pipeline_mode = #tpu.pipeline_mode<synchronous>, transform_indices = @transform_2, window_bounds = array<i64: 1, 32>}, {pipeline_mode = #tpu.pipeline_mode<synchronous>, transform_indices = @transform_3, window_bounds = array<i64: 32, 32>}, {pipeline_mode = #tpu.pipeline_mode<synchronous>, transform_indices = @transform_4, window_bounds = array<i64: 1, 32>}, {transform_indices = @transform_5, window_bounds = array<i64: 16, 32>}]} {
    %c0 = arith.constant 0 : index
    %c0_0 = arith.constant 0 : index
    %0 = vector.load %arg1[%c0, %c0_0] : memref<16x32xf32, #tpu.memory_space<vmem>>, vector<16x32xf32>
    %c0_1 = arith.constant 0 : index
    %c0_2 = arith.constant 0 : index
    %1 = vector.load %arg2[%c0_1, %c0_2] : memref<32x32xf32, #tpu.memory_space<vmem>>, vector<32x32xf32>
    %cst = arith.constant dense<0.000000e+00> : vector<16x32xf32>
    %2 = tpu.matmul %0, %1, %cst {dimension_numbers = #tpu.dot_dimension_numbers<[1], [0], [0], [1], [0, 0, 1, 1], [], []>} : vector<16x32xf32>, vector<32x32xf32>, vector<16x32xf32> -> vector<16x32xf32>
    %c0_3 = arith.constant 0 : index
    %c0_4 = arith.constant 0 : index
    %3 = vector.load %arg3[%c0_3, %c0_4] : memref<1x32xf32, #tpu.memory_space<vmem>>, vector<1x32xf32>
    %4 = vector.broadcast %3 : vector<1x32xf32> to vector<16x32xf32>
    %5 = arith.addf %2, %4 : vector<16x32xf32>
    %cst_5 = arith.constant 5.000000e-01 : f32
    %6 = vector.broadcast %cst_5 : f32 to vector<16x32xf32>
    %7 = arith.mulf %6, %5 : vector<16x32xf32>
    %cst_6 = arith.constant 4.471500e-02 : f32
    %8 = vector.broadcast %cst_6 : f32 to vector<16x32xf32>
    %9 = arith.mulf %8, %5 : vector<16x32xf32>
    %10 = arith.mulf %9, %5 : vector<16x32xf32>
    %11 = arith.mulf %10, %5 : vector<16x32xf32>
    %12 = arith.addf %5, %11 : vector<16x32xf32>
    %cst_7 = arith.constant 0.797884583 : f32
    %13 = vector.broadcast %cst_7 : f32 to vector<16x32xf32>
    %14 = arith.mulf %13, %12 : vector<16x32xf32>
    %15 = math.tanh %14 : vector<16x32xf32>
    %cst_8 = arith.constant 1.000000e+00 : f32
    %16 = vector.broadcast %cst_8 : f32 to vector<16x32xf32>
    %17 = arith.addf %16, %15 : vector<16x32xf32>
    %18 = arith.mulf %7, %17 : vector<16x32xf32>
    %c0_9 = arith.constant 0 : index
    %c0_10 = arith.constant 0 : index
    %19 = vector.load %arg4[%c0_9, %c0_10] : memref<32x32xf32, #tpu.memory_space<vmem>>, vector<32x32xf32>
    %cst_11 = arith.constant dense<0.000000e+00> : vector<16x32xf32>
    %20 = tpu.matmul %18, %19, %cst_11 {dimension_numbers = #tpu.dot_dimension_numbers<[1], [0], [0], [1], [0, 0, 1, 1], [], []>} : vector<16x32xf32>, vector<32x32xf32>, vector<16x32xf32> -> vector<16x32xf32>
    %c0_12 = arith.constant 0 : index
    %c0_13 = arith.constant 0 : index
    %21 = vector.load %arg5[%c0_12, %c0_13] : memref<1x32xf32, #tpu.memory_space<vmem>>, vector<1x32xf32>
    %22 = vector.broadcast %21 : vector<1x32xf32> to vector<16x32xf32>
    %23 = arith.addf %20, %22 : vector<16x32xf32>
    %c0_14 = arith.constant 0 : index
    %c0_15 = arith.constant 0 : index
    %24 = vector.load %arg6[%c0_14, %c0_15] : memref<16x32xf32, #tpu.memory_space<vmem>>, vector<16x32xf32>
    tpu.vector_store %arg6[%c0_14, %c0_15], %23 {strides = array<i32>} : memref<16x32xf32, #tpu.memory_space<vmem>>, vector<16x32xf32>,
    return
  }
  func.func @transform_0(%arg0: i32) -> (i32, i32) {
    %c0_i32 = arith.constant 0 : i32
    %c0_i32_0 = arith.constant 0 : i32
    return %arg0, %c0_i32 : i32, i32
  }
  func.func @transform_1(%arg0: i32) -> (i32, i32) {
    %c0_i32 = arith.constant 0 : i32
    %c0_i32_0 = arith.constant 0 : i32
    %c0_i32_1 = arith.constant 0 : i32
    return %c0_i32, %c0_i32_0 : i32, i32
  }
  func.func @transform_2(%arg0: i32) -> (i32, i32) {
    %c0_i32 = arith.constant 0 : i32
    %c0_i32_0 = arith.constant 0 : i32
    %c0_i32_1 = arith.constant 0 : i32
    return %c0_i32, %c0_i32_0 : i32, i32
  }
  func.func @transform_3(%arg0: i32) -> (i32, i32) {
    %c0_i32 = arith.constant 0 : i32
    %c0_i32_0 = arith.constant 0 : i32
    %c0_i32_1 = arith.constant 0 : i32
    return %c0_i32, %c0_i32_0 : i32, i32
  }
  func.func @transform_4(%arg0: i32) -> (i32, i32) {
    %c0_i32 = arith.constant 0 : i32
    %c0_i32_0 = arith.constant 0 : i32
    %c0_i32_1 = arith.constant 0 : i32
    return %c0_i32, %c0_i32_0 : i32, i32
  }
  func.func @transform_5(%arg0: i32) -> (i32, i32) {
    %c0_i32 = arith.constant 0 : i32
    %c0_i32_0 = arith.constant 0 : i32
    return %arg0, %c0_i32 : i32, i32
  }
}

module attributes {stable_mosaic.version = 11 : i64} {
  func.func @_layernorm_kernel(%arg0: i32, %arg1: memref<16x32xf32, #tpu.memory_space<vmem>>, %arg2: memref<1x32xf32, #tpu.memory_space<vmem>>, %arg3: memref<1x32xf32, #tpu.memory_space<vmem>>, %arg4: memref<16x32xf32, #tpu.memory_space<vmem>>) attributes {dimension_semantics = [#tpu.dimension_semantics<parallel>], iteration_bounds = array<i64: 1>, scalar_prefetch = 0 : i64, scratch_operands = 0 : i64, tpu.core_type = #tpu.core_type<tc>, window_params = [{transform_indices = @transform_0, window_bounds = array<i64: 16, 32>}, {pipeline_mode = #tpu.pipeline_mode<synchronous>, transform_indices = @transform_1, window_bounds = array<i64: 1, 32>}, {pipeline_mode = #tpu.pipeline_mode<synchronous>, transform_indices = @transform_2, window_bounds = array<i64: 1, 32>}, {transform_indices = @transform_3, window_bounds = array<i64: 16, 32>}]} {
    %c0 = arith.constant 0 : index
    %c0_0 = arith.constant 0 : index
    %0 = vector.load %arg1[%c0, %c0_0] : memref<16x32xf32, #tpu.memory_space<vmem>>, vector<16x32xf32>
    %cst = arith.constant dense<0.000000e+00> : vector<16xf32>
    %1 = vector.multi_reduction <add>, %0, %cst [1] : vector<16x32xf32> to vector<16xf32>
    %2 = vector.shape_cast %1 : vector<16xf32> to vector<16x1xf32>
    %cst_1 = arith.constant 3.200000e+01 : f32
    %3 = vector.broadcast %cst_1 : f32 to vector<16x1xf32>
    %4 = arith.divf %2, %3 : vector<16x1xf32>
    %5 = vector.broadcast %4 : vector<16x1xf32> to vector<16x32xf32>
    %6 = arith.subf %0, %5 : vector<16x32xf32>
    %7 = arith.mulf %6, %6 : vector<16x32xf32>
    %cst_2 = arith.constant dense<0.000000e+00> : vector<16xf32>
    %8 = vector.multi_reduction <add>, %7, %cst_2 [1] : vector<16x32xf32> to vector<16xf32>
    %9 = vector.shape_cast %8 : vector<16xf32> to vector<16x1xf32>
    %cst_3 = arith.constant 3.200000e+01 : f32
    %10 = vector.broadcast %cst_3 : f32 to vector<16x1xf32>
    %11 = arith.divf %9, %10 : vector<16x1xf32>
    %cst_4 = arith.constant 9.99999974E-6 : f32
    %12 = vector.broadcast %cst_4 : f32 to vector<16x1xf32>
    %13 = arith.addf %11, %12 : vector<16x1xf32>
    %14 = math.rsqrt %13 : vector<16x1xf32>
    %15 = vector.broadcast %14 : vector<16x1xf32> to vector<16x32xf32>
    %16 = arith.mulf %6, %15 : vector<16x32xf32>
    %c0_5 = arith.constant 0 : index
    %c0_6 = arith.constant 0 : index
    %17 = vector.load %arg2[%c0_5, %c0_6] : memref<1x32xf32, #tpu.memory_space<vmem>>, vector<1x32xf32>
    %18 = vector.broadcast %17 : vector<1x32xf32> to vector<16x32xf32>
    %19 = arith.mulf %16, %18 : vector<16x32xf32>
    %c0_7 = arith.constant 0 : index
    %c0_8 = arith.constant 0 : index
    %20 = vector.load %arg3[%c0_7, %c0_8] : memref<1x32xf32, #tpu.memory_space<vmem>>, vector<1x32xf32>
    %21 = vector.broadcast %20 : vector<1x32xf32> to vector<16x32xf32>
    %22 = arith.addf %19, %21 : vector<16x32xf32>
    %c0_9 = arith.constant 0 : index
    %c0_10 = arith.constant 0 : index
    %23 = vector.load %arg4[%c0_9, %c0_10] : memref<16x32xf32, #tpu.memory_space<vmem>>, vector<16x32xf32>
    tpu.vector_store %arg4[%c0_9, %c0_10], %22 {strides = array<i32>} : memref<16x32xf32, #tpu.memory_space<vmem>>, vector<16x32xf32>,
    return
  }
  func.func @transform_0(%arg0: i32) -> (i32, i32) {
    %c0_i32 = arith.constant 0 : i32
    %c0_i32_0 = arith.constant 0 : i32
    return %arg0, %c0_i32 : i32, i32
  }
  func.func @transform_1(%arg0: i32) -> (i32, i32) {
    %c0_i32 = arith.constant 0 : i32
    %c0_i32_0 = arith.constant 0 : i32
    %c0_i32_1 = arith.constant 0 : i32
    return %c0_i32, %c0_i32_0 : i32, i32
  }
  func.func @transform_2(%arg0: i32) -> (i32, i32) {
    %c0_i32 = arith.constant 0 : i32
    %c0_i32_0 = arith.constant 0 : i32
    %c0_i32_1 = arith.constant 0 : i32
    return %c0_i32, %c0_i32_0 : i32, i32
  }
  func.func @transform_3(%arg0: i32) -> (i32, i32) {
    %c0_i32 = arith.constant 0 : i32
    %c0_i32_0 = arith.constant 0 : i32
    return %arg0, %c0_i32 : i32, i32
  }
}

module attributes {stable_mosaic.version = 11 : i64} {
  func.func @_linear_kernel(%arg0: i32, %arg1: memref<32x32xf32, #tpu.memory_space<vmem>>, %arg2: memref<32x64xf32, #tpu.memory_space<vmem>>, %arg3: memref<1x64xf32, #tpu.memory_space<vmem>>, %arg4: memref<32x64xf32, #tpu.memory_space<vmem>>) attributes {dimension_semantics = [#tpu.dimension_semantics<parallel>], iteration_bounds = array<i64: 1>, scalar_prefetch = 0 : i64, scratch_operands = 0 : i64, tpu.core_type = #tpu.core_type<tc>, window_params = [{transform_indices = @transform_0, window_bounds = array<i64: 32, 32>}, {pipeline_mode = #tpu.pipeline_mode<synchronous>, transform_indices = @transform_1, window_bounds = array<i64: 32, 64>}, {pipeline_mode = #tpu.pipeline_mode<synchronous>, transform_indices = @transform_2, window_bounds = array<i64: 1, 64>}, {transform_indices = @transform_3, window_bounds = array<i64: 32, 64>}]} {
    %c0 = arith.constant 0 : index
    %c0_0 = arith.constant 0 : index
    %0 = vector.load %arg1[%c0, %c0_0] : memref<32x32xf32, #tpu.memory_space<vmem>>, vector<32x32xf32>
    %c0_1 = arith.constant 0 : index
    %c0_2 = arith.constant 0 : index
    %1 = vector.load %arg2[%c0_1, %c0_2] : memref<32x64xf32, #tpu.memory_space<vmem>>, vector<32x64xf32>
    %cst = arith.constant dense<0.000000e+00> : vector<32x64xf32>
    %2 = tpu.matmul %0, %1, %cst {dimension_numbers = #tpu.dot_dimension_numbers<[1], [0], [0], [1], [0, 0, 1, 1], [], []>} : vector<32x32xf32>, vector<32x64xf32>, vector<32x64xf32> -> vector<32x64xf32>
    %c0_3 = arith.constant 0 : index
    %c0_4 = arith.constant 0 : index
    %3 = vector.load %arg3[%c0_3, %c0_4] : memref<1x64xf32, #tpu.memory_space<vmem>>, vector<1x64xf32>
    %4 = vector.broadcast %3 : vector<1x64xf32> to vector<32x64xf32>
    %5 = arith.addf %2, %4 : vector<32x64xf32>
    %c0_5 = arith.constant 0 : index
    %c0_6 = arith.constant 0 : index
    %6 = vector.load %arg4[%c0_5, %c0_6] : memref<32x64xf32, #tpu.memory_space<vmem>>, vector<32x64xf32>
    tpu.vector_store %arg4[%c0_5, %c0_6], %5 {strides = array<i32>} : memref<32x64xf32, #tpu.memory_space<vmem>>, vector<32x64xf32>,
    return
  }
  func.func @transform_0(%arg0: i32) -> (i32, i32) {
    %c0_i32 = arith.constant 0 : i32
    %c0_i32_0 = arith.constant 0 : i32
    return %arg0, %c0_i32 : i32, i32
  }
  func.func @transform_1(%arg0: i32) -> (i32, i32) {
    %c0_i32 = arith.constant 0 : i32
    %c0_i32_0 = arith.constant 0 : i32
    %c0_i32_1 = arith.constant 0 : i32
    return %c0_i32, %c0_i32_0 : i32, i32
  }
  func.func @transform_2(%arg0: i32) -> (i32, i32) {
    %c0_i32 = arith.constant 0 : i32
    %c0_i32_0 = arith.constant 0 : i32
    %c0_i32_1 = arith.constant 0 : i32
    return %c0_i32, %c0_i32_0 : i32, i32
  }
  func.func @transform_3(%arg0: i32) -> (i32, i32) {
    %c0_i32 = arith.constant 0 : i32
    %c0_i32_0 = arith.constant 0 : i32
    return %arg0, %c0_i32 : i32, i32
  }
}

module attributes {stable_mosaic.version = 11 : i64} {
  func.func @_full_attn_kernel(%arg0: i32, %arg1: memref<8x16x8xf32, #tpu.memory_space<vmem>>, %arg2: memref<8x16x8xf32, #tpu.memory_space<vmem>>, %arg3: memref<8x16x8xf32, #tpu.memory_space<vmem>>, %arg4: memref<8x16x8xf32, #tpu.memory_space<vmem>>) attributes {dimension_semantics = [#tpu.dimension_semantics<parallel>], iteration_bounds = array<i64: 1>, scalar_prefetch = 0 : i64, scratch_operands = 0 : i64, tpu.core_type = #tpu.core_type<tc>, window_params = [{transform_indices = @transform_0, window_bounds = array<i64: 8, 16, 8>}, {transform_indices = @transform_1, window_bounds = array<i64: 8, 16, 8>}, {transform_indices = @transform_2, window_bounds = array<i64: 8, 16, 8>}, {transform_indices = @transform_3, window_bounds = array<i64: 8, 16, 8>}]} {
    %c0 = arith.constant 0 : index
    %c0_0 = arith.constant 0 : index
    %c0_1 = arith.constant 0 : index
    %0 = vector.load %arg1[%c0, %c0_0, %c0_1] : memref<8x16x8xf32, #tpu.memory_space<vmem>>, vector<8x16x8xf32>
    %c0_2 = arith.constant 0 : index
    %c0_3 = arith.constant 0 : index
    %c0_4 = arith.constant 0 : index
    %1 = vector.load %arg2[%c0_2, %c0_3, %c0_4] : memref<8x16x8xf32, #tpu.memory_space<vmem>>, vector<8x16x8xf32>
    %c0_5 = arith.constant 0 : index
    %c0_6 = arith.constant 0 : index
    %c0_7 = arith.constant 0 : index
    %2 = vector.load %arg3[%c0_5, %c0_6, %c0_7] : memref<8x16x8xf32, #tpu.memory_space<vmem>>, vector<8x16x8xf32>
    "tpu.trace_start"() <{level = 10 : i32, message = "bqe,bke->bqk"}> : () -> ()
    %cst = arith.constant dense<0.000000e+00> : vector<8x16x16xf32>
    %3 = tpu.matmul %0, %1, %cst {dimension_numbers = #tpu.dot_dimension_numbers<[2], [2], [1], [1], [0, 0, 0, 1, 1, 1], [0], [0]>} : vector<8x16x8xf32>, vector<8x16x8xf32>, vector<8x16x16xf32> -> vector<8x16x16xf32>
    "tpu.trace_stop"() : () -> ()
    %cst_8 = arith.constant 0.353553385 : f32
    %4 = vector.broadcast %cst_8 : f32 to vector<8x16x16xf32>
    %5 = arith.mulf %3, %4 : vector<8x16x16xf32>
    %cst_9 = arith.constant dense<0xFF800000> : vector<8x16xf32>
    %6 = vector.multi_reduction <maximumf>, %5, %cst_9 [2] : vector<8x16x16xf32> to vector<8x16xf32>
    %7 = vector.shape_cast %6 : vector<8x16xf32> to vector<8x16x1xf32>
    %8 = vector.broadcast %7 : vector<8x16x1xf32> to vector<8x16x16xf32>
    %9 = arith.subf %5, %8 : vector<8x16x16xf32>
    %10 = math.exp %9 : vector<8x16x16xf32>
    %cst_10 = arith.constant dense<0.000000e+00> : vector<8x16xf32>
    %11 = vector.multi_reduction <add>, %10, %cst_10 [2] : vector<8x16x16xf32> to vector<8x16xf32>
    %12 = vector.shape_cast %11 : vector<8x16xf32> to vector<8x16x1xf32>
    %13 = vector.broadcast %12 : vector<8x16x1xf32> to vector<8x16x16xf32>
    %14 = arith.divf %10, %13 : vector<8x16x16xf32>
    "tpu.trace_start"() <{level = 10 : i32, message = "bqk,bkd->bqd"}> : () -> ()
    %cst_11 = arith.constant dense<0.000000e+00> : vector<8x16x8xf32>
    %15 = tpu.matmul %14, %2, %cst_11 {dimension_numbers = #tpu.dot_dimension_numbers<[2], [1], [1], [2], [0, 0, 0, 1, 1, 2], [0], [0]>} : vector<8x16x16xf32>, vector<8x16x8xf32>, vector<8x16x8xf32> -> vector<8x16x8xf32>
    "tpu.trace_stop"() : () -> ()
    %c0_12 = arith.constant 0 : index
    %c0_13 = arith.constant 0 : index
    %c0_14 = arith.constant 0 : index
    %16 = vector.load %arg4[%c0_12, %c0_13, %c0_14] : memref<8x16x8xf32, #tpu.memory_space<vmem>>, vector<8x16x8xf32>
    tpu.vector_store %arg4[%c0_12, %c0_13, %c0_14], %15 {strides = array<i32>} : memref<8x16x8xf32, #tpu.memory_space<vmem>>, vector<8x16x8xf32>,
    return
  }
  func.func @transform_0(%arg0: i32) -> (i32, i32, i32) {
    %c0_i32 = arith.constant 0 : i32
    %c0_i32_0 = arith.constant 0 : i32
    %c0_i32_1 = arith.constant 0 : i32
    return %arg0, %c0_i32, %c0_i32_0 : i32, i32, i32
  }
  func.func @transform_1(%arg0: i32) -> (i32, i32, i32) {
    %c0_i32 = arith.constant 0 : i32
    %c0_i32_0 = arith.constant 0 : i32
    %c0_i32_1 = arith.constant 0 : i32
    return %arg0, %c0_i32, %c0_i32_0 : i32, i32, i32
  }
  func.func @transform_2(%arg0: i32) -> (i32, i32, i32) {
    %c0_i32 = arith.constant 0 : i32
    %c0_i32_0 = arith.constant 0 : i32
    %c0_i32_1 = arith.constant 0 : i32
    return %arg0, %c0_i32, %c0_i32_0 : i32, i32, i32
  }
  func.func @transform_3(%arg0: i32) -> (i32, i32, i32) {
    %c0_i32 = arith.constant 0 : i32
    %c0_i32_0 = arith.constant 0 : i32
    %c0_i32_1 = arith.constant 0 : i32
    return %arg0, %c0_i32, %c0_i32_0 : i32, i32, i32
  }
}

module attributes {stable_mosaic.version = 11 : i64} {
  func.func @_layernorm_kernel(%arg0: i32, %arg1: memref<32x32xf32, #tpu.memory_space<vmem>>, %arg2: memref<1x32xf32, #tpu.memory_space<vmem>>, %arg3: memref<1x32xf32, #tpu.memory_space<vmem>>, %arg4: memref<32x32xf32, #tpu.memory_space<vmem>>) attributes {dimension_semantics = [#tpu.dimension_semantics<parallel>], iteration_bounds = array<i64: 1>, scalar_prefetch = 0 : i64, scratch_operands = 0 : i64, tpu.core_type = #tpu.core_type<tc>, window_params = [{transform_indices = @transform_0, window_bounds = array<i64: 32, 32>}, {pipeline_mode = #tpu.pipeline_mode<synchronous>, transform_indices = @transform_1, window_bounds = array<i64: 1, 32>}, {pipeline_mode = #tpu.pipeline_mode<synchronous>, transform_indices = @transform_2, window_bounds = array<i64: 1, 32>}, {transform_indices = @transform_3, window_bounds = array<i64: 32, 32>}]} {
    %c0 = arith.constant 0 : index
    %c0_0 = arith.constant 0 : index
    %0 = vector.load %arg1[%c0, %c0_0] : memref<32x32xf32, #tpu.memory_space<vmem>>, vector<32x32xf32>
    %cst = arith.constant dense<0.000000e+00> : vector<32xf32>
    %1 = vector.multi_reduction <add>, %0, %cst [1] : vector<32x32xf32> to vector<32xf32>
    %2 = vector.shape_cast %1 : vector<32xf32> to vector<32x1xf32>
    %cst_1 = arith.constant 3.200000e+01 : f32
    %3 = vector.broadcast %cst_1 : f32 to vector<32x1xf32>
    %4 = arith.divf %2, %3 : vector<32x1xf32>
    %5 = vector.broadcast %4 : vector<32x1xf32> to vector<32x32xf32>
    %6 = arith.subf %0, %5 : vector<32x32xf32>
    %7 = arith.mulf %6, %6 : vector<32x32xf32>
    %cst_2 = arith.constant dense<0.000000e+00> : vector<32xf32>
    %8 = vector.multi_reduction <add>, %7, %cst_2 [1] : vector<32x32xf32> to vector<32xf32>
    %9 = vector.shape_cast %8 : vector<32xf32> to vector<32x1xf32>
    %cst_3 = arith.constant 3.200000e+01 : f32
    %10 = vector.broadcast %cst_3 : f32 to vector<32x1xf32>
    %11 = arith.divf %9, %10 : vector<32x1xf32>
    %cst_4 = arith.constant 9.99999974E-6 : f32
    %12 = vector.broadcast %cst_4 : f32 to vector<32x1xf32>
    %13 = arith.addf %11, %12 : vector<32x1xf32>
    %14 = math.rsqrt %13 : vector<32x1xf32>
    %15 = vector.broadcast %14 : vector<32x1xf32> to vector<32x32xf32>
    %16 = arith.mulf %6, %15 : vector<32x32xf32>
    %c0_5 = arith.constant 0 : index
    %c0_6 = arith.constant 0 : index
    %17 = vector.load %arg2[%c0_5, %c0_6] : memref<1x32xf32, #tpu.memory_space<vmem>>, vector<1x32xf32>
    %18 = vector.broadcast %17 : vector<1x32xf32> to vector<32x32xf32>
    %19 = arith.mulf %16, %18 : vector<32x32xf32>
    %c0_7 = arith.constant 0 : index
    %c0_8 = arith.constant 0 : index
    %20 = vector.load %arg3[%c0_7, %c0_8] : memref<1x32xf32, #tpu.memory_space<vmem>>, vector<1x32xf32>
    %21 = vector.broadcast %20 : vector<1x32xf32> to vector<32x32xf32>
    %22 = arith.addf %19, %21 : vector<32x32xf32>
    %c0_9 = arith.constant 0 : index
    %c0_10 = arith.constant 0 : index
    %23 = vector.load %arg4[%c0_9, %c0_10] : memref<32x32xf32, #tpu.memory_space<vmem>>, vector<32x32xf32>
    tpu.vector_store %arg4[%c0_9, %c0_10], %22 {strides = array<i32>} : memref<32x32xf32, #tpu.memory_space<vmem>>, vector<32x32xf32>,
    return
  }
  func.func @transform_0(%arg0: i32) -> (i32, i32) {
    %c0_i32 = arith.constant 0 : i32
    %c0_i32_0 = arith.constant 0 : i32
    return %arg0, %c0_i32 : i32, i32
  }
  func.func @transform_1(%arg0: i32) -> (i32, i32) {
    %c0_i32 = arith.constant 0 : i32
    %c0_i32_0 = arith.constant 0 : i32
    %c0_i32_1 = arith.constant 0 : i32
    return %c0_i32, %c0_i32_0 : i32, i32
  }
  func.func @transform_2(%arg0: i32) -> (i32, i32) {
    %c0_i32 = arith.constant 0 : i32
    %c0_i32_0 = arith.constant 0 : i32
    %c0_i32_1 = arith.constant 0 : i32
    return %c0_i32, %c0_i32_0 : i32, i32
  }
  func.func @transform_3(%arg0: i32) -> (i32, i32) {
    %c0_i32 = arith.constant 0 : i32
    %c0_i32_0 = arith.constant 0 : i32
    return %arg0, %c0_i32 : i32, i32
  }
}

module attributes {stable_mosaic.version = 11 : i64} {
  func.func @_linear_kernel(%arg0: i32, %arg1: memref<32x32xf32, #tpu.memory_space<vmem>>, %arg2: memref<32x7xf32, #tpu.memory_space<vmem>>, %arg3: memref<1x7xf32, #tpu.memory_space<vmem>>, %arg4: memref<32x7xf32, #tpu.memory_space<vmem>>) attributes {dimension_semantics = [#tpu.dimension_semantics<parallel>], iteration_bounds = array<i64: 1>, scalar_prefetch = 0 : i64, scratch_operands = 0 : i64, tpu.core_type = #tpu.core_type<tc>, window_params = [{transform_indices = @transform_0, window_bounds = array<i64: 32, 32>}, {pipeline_mode = #tpu.pipeline_mode<synchronous>, transform_indices = @transform_1, window_bounds = array<i64: 32, 7>}, {pipeline_mode = #tpu.pipeline_mode<synchronous>, transform_indices = @transform_2, window_bounds = array<i64: 1, 7>}, {transform_indices = @transform_3, window_bounds = array<i64: 32, 7>}]} {
    %c0 = arith.constant 0 : index
    %c0_0 = arith.constant 0 : index
    %0 = vector.load %arg1[%c0, %c0_0] : memref<32x32xf32, #tpu.memory_space<vmem>>, vector<32x32xf32>
    %c0_1 = arith.constant 0 : index
    %c0_2 = arith.constant 0 : index
    %1 = vector.load %arg2[%c0_1, %c0_2] : memref<32x7xf32, #tpu.memory_space<vmem>>, vector<32x7xf32>
    %cst = arith.constant dense<0.000000e+00> : vector<32x7xf32>
    %2 = tpu.matmul %0, %1, %cst {dimension_numbers = #tpu.dot_dimension_numbers<[1], [0], [0], [1], [0, 0, 1, 1], [], []>} : vector<32x32xf32>, vector<32x7xf32>, vector<32x7xf32> -> vector<32x7xf32>
    %c0_3 = arith.constant 0 : index
    %c0_4 = arith.constant 0 : index
    %3 = vector.load %arg3[%c0_3, %c0_4] : memref<1x7xf32, #tpu.memory_space<vmem>>, vector<1x7xf32>
    %4 = vector.broadcast %3 : vector<1x7xf32> to vector<32x7xf32>
    %5 = arith.addf %2, %4 : vector<32x7xf32>
    %c0_5 = arith.constant 0 : index
    %c0_6 = arith.constant 0 : index
    %6 = vector.load %arg4[%c0_5, %c0_6] : memref<32x7xf32, #tpu.memory_space<vmem>>, vector<32x7xf32>
    tpu.vector_store %arg4[%c0_5, %c0_6], %5 {strides = array<i32>} : memref<32x7xf32, #tpu.memory_space<vmem>>, vector<32x7xf32>,
    return
  }
  func.func @transform_0(%arg0: i32) -> (i32, i32) {
    %c0_i32 = arith.constant 0 : i32
    %c0_i32_0 = arith.constant 0 : i32
    return %arg0, %c0_i32 : i32, i32
  }
  func.func @transform_1(%arg0: i32) -> (i32, i32) {
    %c0_i32 = arith.constant 0 : i32
    %c0_i32_0 = arith.constant 0 : i32
    %c0_i32_1 = arith.constant 0 : i32
    return %c0_i32, %c0_i32_0 : i32, i32
  }
  func.func @transform_2(%arg0: i32) -> (i32, i32) {
    %c0_i32 = arith.constant 0 : i32
    %c0_i32_0 = arith.constant 0 : i32
    %c0_i32_1 = arith.constant 0 : i32
    return %c0_i32, %c0_i32_0 : i32, i32
  }
  func.func @transform_3(%arg0: i32) -> (i32, i32) {
    %c0_i32 = arith.constant 0 : i32
    %c0_i32_0 = arith.constant 0 : i32
    return %arg0, %c0_i32 : i32, i32
  }
}

</mosaic_0001>

<bundles_post_ra>
// kernel: informer_stack_forward.40
= control target key start
LH: loop header
LB: loop body
LE: loop exit
PB: predicated region body
PF: predicated region fallthrough
CT: control target
= control target key end

     0   :  { %vm29_vm0 = vcmask 261120   ;;  %vm127_vm1 = vcmask 785408   ;;  %s238_s1 = inlined_call_operand.vmem [shape: f32[32,96], index: 1, kind: input, shape index: {}]   ;;  %s239_s0 = inlined_call_operand.vmem [shape: f32[32,32], index: 0, kind: input, shape index: {}]   ;;  %s240_s2 = inlined_call_operand.vmem [shape: f32[1,96], index: 2, kind: input, shape index: {}]   ;;  %s241_s3 = inlined_call_operand.vmem [shape: f32[32,96], index: 3, kind: output, shape index: {}]  }
   0x1   :  { %v18_v0 = vld [vmem:[%s238_s1] sm:$0xff]  ;;  %v19_v1 = vld [vmem:[%s238_s1 + $0x8] sm:$0xff]  ;;  %v20_v2 = vld [vmem:[%s238_s1 + $0x10] sm:$0xff] }
   0x2   :  { %v163_v3 = vpack.c.bf16 %v19_v1, %v18_v0  ;;  %v21_v4 = vld [vmem:[%s238_s1 + $0x18] sm:$0xff]  ;;  %v14_v5 = vld [vmem:[%s239_s0] sm:$0xff]  ;;  %v16_v6 = vld [vmem:[%s239_s0 + $0x10] sm:$0xff] }
   0x3   :  { %v167_v7 = vpack.c.bf16 %v21_v4, %v20_v2  ;;  %157 = vmatprep.mubr.msk.f32.mxu0 %vm29_vm0, %v14_v5  ;;  %160 = vmatprep.mubr.msk.f32.mxu1 %vm29_vm0, %v16_v6  ;;  %v15_v8 = vld [vmem:[%s239_s0 + $0x8] sm:$0xff]  ;;  %v17_v9 = vld [vmem:[%s239_s0 + $0x18] sm:$0xff]  ;;  %v136_v10 = vld [vmem:[%s240_s2] ss:$0 sm:$0xff] }
   0x4   :  { %164 = vmatprep.subr.bf16.mxu0 %v163_v3  ;;  %171 = vmatprep.subr.bf16.mxu1 %v163_v3 }
   0x5   :  { %166 = vmatpush3.bf16.msra.mxu0 %v163_v3  ;;  %173 = vmatpush3.bf16.msra.mxu1 %v163_v3 }
   0x6   :  { %168 = vmatprep.subr.bf16.mxu0 %v167_v7  ;;  %172 = vmatprep.subr.bf16.mxu1 %v167_v7 }
   0x9   :  { %170 = vmatpush3.bf16.msra.mxu0 %v167_v7  ;;  %174 = vmatpush3.bf16.msra.mxu1 %v167_v7 }
   0xc   :  { %158 = vmatmul.mubr.msk.f32.vlgmr.msra.gmra.mrb[0].mxu0 %vm29_vm0, %v15_v8  ;;  %161 = vmatmul.mubr.msk.f32.vlgmr.msra.gmra.mrb[0].mxu1 %vm29_vm0, %v17_v9 }
  0xdf   :  { %v159_v11 = vpop.f32.mrb[0].mxu0  ;;  %v162_v12 = vpop.f32.mrb[0].mxu1 }
  0xe0   :  { %v114_v13 = vadd.f32 %v159_v11, %v136_v10  ;;  %v124_v14 = vadd.f32 %v162_v12, %v136_v10  ;;  %v108_v15 = vpop.f32.mrb[1].mxu0  ;;  %v118_v16 = vpop.f32.mrb[1].mxu1 }
  0xe1   :  { %v109_v17 = vadd.f32 %v136_v10, %v108_v15  ;;  %v119_v18 = vadd.f32 %v136_v10, %v118_v16 }
  0xe2   :  { %129 = vst.msk [vmem:[%s241_s3 + $0x8] sm:$0xff] %vm127_vm1, %v114_v13  ;;  %131 = vst.msk [vmem:[%s241_s3 + $0x18] sm:$0xff] %vm127_vm1, %v124_v14 }
  0xe3   :  { %128 = vst.msk [vmem:[%s241_s3] sm:$0xff] %vm127_vm1, %v109_v17  ;;  %130 = vst.msk [vmem:[%s241_s3 + $0x10] sm:$0xff] %vm127_vm1, %v119_v18 }

// kernel: informer_stack_forward.39
= control target key start
LH: loop header
LB: loop body
LE: loop exit
PB: predicated region body
PF: predicated region fallthrough
CT: control target
= control target key end

     0   :  { %vm28_vm0 = vcmask 171008   ;;  %vm41_vm1 = vcmask 1044480   ;;  %vm130_vm2 = vcmask 261120   ;;  %s232_s1 = inlined_call_operand.vmem [shape: f32[21,32], index: 1, kind: input, shape index: {}]   ;;  %s233_s0 = inlined_call_operand.vmem [shape: f32[32,21], index: 0, kind: input, shape index: {}]   ;;  %s234_s2 = inlined_call_operand.vmem [shape: f32[1,32], index: 2, kind: input, shape index: {}]   ;;  %s235_s3 = inlined_call_operand.vmem [shape: f32[32,32], index: 3, kind: output, shape index: {}]  }
   0x1   :  { %v18_v0 = vld [vmem:[%s232_s1] sm:$0xff]  ;;  %v19_v1 = vld [vmem:[%s232_s1 + $0x8] sm:$0xff]  ;;  %v16_v4 = vld [vmem:[%s233_s0 + $0x10] sm:$0xff] }
   0x2   :  { %v164_v2 = vpack.c.bf16 %v19_v1, %v18_v0  ;;  %v14_v3 = vld [vmem:[%s233_s0] sm:$0xff]  ;;  %v20_v5 = vld [vmem:[%s232_s1 + $0x10] sm:$0x1f]  ;;  %161 = vmatprep.mubr.msk.f32.mxu1 %vm28_vm0, %v16_v4  ;;  %v15_v6 = vld [vmem:[%s233_s0 + $0x8] sm:$0xff] }
   0x3   :  { %158 = vmatprep.mubr.msk.f32.mxu0 %vm28_vm0, %v14_v3  ;;  %v17_v7 = vld [vmem:[%s233_s0 + $0x18] sm:$0xff]  ;;  %v139_v8 = vld [vmem:[%s234_s2] ss:$0 sm:$0xff] }
   0x4   :  { %165 = vmatprep.subr.bf16.mxu0 %v164_v2  ;;  %168 = vmatprep.subr.bf16.mxu1 %v164_v2 }
   0x5   :  { %167 = vmatpush3.bf16.msra.mxu0 %v164_v2  ;;  %170 = vmatpush3.bf16.msra.mxu1 %v164_v2 }
   0x6   :  { %156 = vmatprep.subr.msk.mxu0 %vm41_vm1, %v20_v5  ;;  %169 = vmatprep.subr.msk.mxu1 %vm41_vm1, %v20_v5 }
   0x9   :  { %157 = vmatpush3.msk.msra.mxu0 %vm41_vm1, %v20_v5  ;;  %171 = vmatpush3.msk.msra.mxu1 %vm41_vm1, %v20_v5 }
   0xa   :  { %159 = vmatmul.mubr.msk.f32.vlgmr.msra.gmra.mrb[0].mxu0 %vm28_vm0, %v15_v6  ;;  %162 = vmatmul.mubr.msk.f32.vlgmr.msra.gmra.mrb[0].mxu1 %vm28_vm0, %v17_v7 }
  0xdd   :  { %v160_v9 = vpop.f32.mrb[0].mxu0  ;;  %v163_v10 = vpop.f32.mrb[0].mxu1 }
  0xde   :  { %v117_v11 = vadd.f32 %v160_v9, %v139_v8  ;;  %v127_v12 = vadd.f32 %v163_v10, %v139_v8  ;;  %v111_v13 = vpop.f32.mrb[1].mxu0  ;;  %v121_v14 = vpop.f32.mrb[1].mxu1 }
  0xdf   :  { %v112_v15 = vadd.f32 %v139_v8, %v111_v13  ;;  %v122_v16 = vadd.f32 %v139_v8, %v121_v14 }
  0xe0   :  { %132 = vst.msk [vmem:[%s235_s3 + $0x8] sm:$0xff] %vm130_vm2, %v117_v11  ;;  %134 = vst.msk [vmem:[%s235_s3 + $0x18] sm:$0xff] %vm130_vm2, %v127_v12 }
  0xe1   :  { %131 = vst.msk [vmem:[%s235_s3] sm:$0xff] %vm130_vm2, %v112_v15  ;;  %133 = vst.msk [vmem:[%s235_s3 + $0x10] sm:$0xff] %vm130_vm2, %v122_v16 }

// kernel: informer_stack_forward.41
= control target key start
LH: loop header
LB: loop body
LE: loop exit
PB: predicated region body
PF: predicated region fallthrough
CT: control target
= control target key end

     0   :  { %vm29_vm0 = vcmask 261120   ;;  %s241_s1 = inlined_call_operand.vmem [shape: f32[32,32], index: 1, kind: input, shape index: {}]   ;;  %s242_s0 = inlined_call_operand.vmem [shape: f32[32,32], index: 0, kind: input, shape index: {}]   ;;  %s243_s2 = inlined_call_operand.vmem [shape: f32[1,32], index: 2, kind: input, shape index: {}]   ;;  %s244_s3 = inlined_call_operand.vmem [shape: f32[32,32], index: 3, kind: output, shape index: {}]  }
   0x1   :  { %v18_v0 = vld [vmem:[%s241_s1] sm:$0xff]  ;;  %v19_v1 = vld [vmem:[%s241_s1 + $0x8] sm:$0xff]  ;;  %v20_v2 = vld [vmem:[%s241_s1 + $0x10] sm:$0xff] }
   0x2   :  { %v162_v3 = vpack.c.bf16 %v19_v1, %v18_v0  ;;  %v21_v4 = vld [vmem:[%s241_s1 + $0x18] sm:$0xff]  ;;  %v14_v5 = vld [vmem:[%s242_s0] sm:$0xff]  ;;  %v16_v6 = vld [vmem:[%s242_s0 + $0x10] sm:$0xff] }
   0x3   :  { %v166_v7 = vpack.c.bf16 %v21_v4, %v20_v2  ;;  %156 = vmatprep.mubr.msk.f32.mxu0 %vm29_vm0, %v14_v5  ;;  %159 = vmatprep.mubr.msk.f32.mxu1 %vm29_vm0, %v16_v6  ;;  %v15_v8 = vld [vmem:[%s242_s0 + $0x8] sm:$0xff]  ;;  %v17_v9 = vld [vmem:[%s242_s0 + $0x18] sm:$0xff]  ;;  %v135_v10 = vld [vmem:[%s243_s2] ss:$0 sm:$0xff] }
   0x4   :  { %163 = vmatprep.subr.bf16.mxu0 %v162_v3  ;;  %170 = vmatprep.subr.bf16.mxu1 %v162_v3 }
   0x5   :  { %165 = vmatpush3.bf16.msra.mxu0 %v162_v3  ;;  %172 = vmatpush3.bf16.msra.mxu1 %v162_v3 }
   0x6   :  { %167 = vmatprep.subr.bf16.mxu0 %v166_v7  ;;  %171 = vmatprep.subr.bf16.mxu1 %v166_v7 }
   0x9   :  { %169 = vmatpush3.bf16.msra.mxu0 %v166_v7  ;;  %173 = vmatpush3.bf16.msra.mxu1 %v166_v7 }
   0xc   :  { %157 = vmatmul.mubr.msk.f32.vlgmr.msra.gmra.mrb[0].mxu0 %vm29_vm0, %v15_v8  ;;  %160 = vmatmul.mubr.msk.f32.vlgmr.msra.gmra.mrb[0].mxu1 %vm29_vm0, %v17_v9 }
  0xdf   :  { %v158_v11 = vpop.f32.mrb[0].mxu0  ;;  %v161_v12 = vpop.f32.mrb[0].mxu1 }
  0xe0   :  { %v114_v13 = vadd.f32 %v158_v11, %v135_v10  ;;  %v124_v14 = vadd.f32 %v161_v12, %v135_v10  ;;  %v108_v15 = vpop.f32.mrb[1].mxu0  ;;  %v118_v16 = vpop.f32.mrb[1].mxu1 }
  0xe1   :  { %v109_v17 = vadd.f32 %v135_v10, %v108_v15  ;;  %v119_v18 = vadd.f32 %v135_v10, %v118_v16 }
  0xe2   :  { %128 = vst.msk [vmem:[%s244_s3 + $0x8] sm:$0xff] %vm29_vm0, %v114_v13  ;;  %130 = vst.msk [vmem:[%s244_s3 + $0x18] sm:$0xff] %vm29_vm0, %v124_v14 }
  0xe3   :  { %127 = vst.msk [vmem:[%s244_s3] sm:$0xff] %vm29_vm0, %v109_v17  ;;  %129 = vst.msk [vmem:[%s244_s3 + $0x10] sm:$0xff] %vm29_vm0, %v119_v18 }

// kernel: informer_stack_forward.42
= control target key start
LH: loop header
LB: loop body
LE: loop exit
PB: predicated region body
PF: predicated region fallthrough
CT: control target
= control target key end

     0   :  { %vm29_vm0 = vcmask 261120   ;;  %s202_s0 = inlined_call_operand.vmem [shape: f32[32,32], index: 0, kind: input, shape index: {}]   ;;  %s203_s1 = inlined_call_operand.vmem [shape: f32[32,32], index: 1, kind: input, shape index: {}]   ;;  %s204_s2 = inlined_call_operand.vmem [shape: f32[1,32], index: 2, kind: input, shape index: {}]   ;;  %s205_s3 = inlined_call_operand.vmem [shape: f32[1,32], index: 3, kind: input, shape index: {}]   ;;  %s206_s4 = inlined_call_operand.vmem [shape: f32[32,32], index: 4, kind: output, shape index: {}]  }
   0x1   :  { %v17_v0 = vld [vmem:[%s202_s0] sm:$0xff]  ;;  %v19_v2 = vld [vmem:[%s202_s0 + $0x10] sm:$0xff]  ;;  %v18_v5 = vld [vmem:[%s202_s0 + $0x8] sm:$0xff] }
   0x2   :  { %v21_v1 = vld [vmem:[%s203_s1] sm:$0xff]  ;;  %v23_v4 = vld [vmem:[%s203_s1 + $0x10] sm:$0xff]  ;;  %v22_v6 = vld [vmem:[%s203_s1 + $0x8] sm:$0xff] }
   0x3   :  { %v25_v3 = vadd.f32 %v21_v1, %v17_v0  ;;  %v27_v7 = vadd.f32 %v23_v4, %v19_v2  ;;  %v26_v8 = vadd.f32 %v22_v6, %v18_v5  ;;  %v20_v9 = vld [vmem:[%s202_s0 + $0x18] sm:$0xff]  ;;  %v113_v49 = vld [vmem:[%s204_s2] ss:$0 sm:$0xff] }
   0x4   :  { %v24_v10 = vld [vmem:[%s203_s1 + $0x18] sm:$0xff]  ;;  %v114_v51 = vld [vmem:[%s205_s3] ss:$0 sm:$0xff] }
   0x5   :  { %v30_v11 = vsel %vm29_vm0, %v25_v3, 0.0  ;;  %v28_v12 = vadd.f32 %v24_v10, %v20_v9  ;;  %v36_v13 = vsel %vm29_vm0, %v27_v7, 0.0  ;;  %v33_v14 = vsel %vm29_vm0, %v26_v8, 0.0 }
   0x6   :  { %31 = vadd.xlane.f32.xlu0 %v30_v11  ;;  %37 = vadd.xlane.f32.xlu1 %v36_v13 }
   0x7   :  { %v39_v15 = vsel %vm29_vm0, %v28_v12, 0.0 }
   0xa   :  { %34 = vadd.xlane.f32.xlu0 %v33_v14  ;;  %40 = vadd.xlane.f32.xlu1 %v39_v15 }
  0x93   :  { %v32_v16 = vpop.xlane.xlu0 %31  ;;  %v38_v18 = vpop.xlane.xlu1 %37 }
  0x94   :  { %v43_v17 = vmul.f32 0.03125, %v32_v16  ;;  %v45_v19 = vmul.f32 0.03125, %v38_v18 }
  0x96   :  { %v47_v20 = vsub.f32 %v25_v3, %v43_v17  ;;  %v49_v21 = vsub.f32 %v27_v7, %v45_v19 }
  0x97   :  { %v35_v22 = vpop.xlane.xlu0 %34  ;;  %v41_v24 = vpop.xlane.xlu1 %40 }
  0x98   :  { %v44_v23 = vmul.f32 0.03125, %v35_v22  ;;  %v51_v25 = vmul.f32 %v47_v20, %v47_v20  ;;  %v46_v26 = vmul.f32 0.03125, %v41_v24  ;;  %v53_v27 = vmul.f32 %v49_v21, %v49_v21 }
  0x9a   :  { %v48_v28 = vsub.f32 %v26_v8, %v44_v23  ;;  %v55_v29 = vsel %vm29_vm0, %v51_v25, 0.0  ;;  %v50_v30 = vsub.f32 %v28_v12, %v46_v26  ;;  %v61_v31 = vsel %vm29_vm0, %v53_v27, 0.0 }
  0x9b   :  { %56 = vadd.xlane.f32.xlu0 %v55_v29 }
  0x9c   :  { %v52_v32 = vmul.f32 %v48_v28, %v48_v28  ;;  %v54_v33 = vmul.f32 %v50_v30, %v50_v30 }
  0x9e   :  { %v58_v34 = vsel %vm29_vm0, %v52_v32, 0.0  ;;  %v64_v35 = vsel %vm29_vm0, %v54_v33, 0.0 }
  0x9f   :  { %62 = vadd.xlane.f32.xlu0 %v61_v31  ;;  %59 = vadd.xlane.f32.xlu1 %v58_v34 }
  0xa3   :  { %65 = vadd.xlane.f32.xlu1 %v64_v35 }
 0x128   :  { %v57_v36 = vpop.xlane.xlu0 %56 }
 0x129   :  { %v67_v37 = vmul.f32 0.03125, %v57_v36 }
 0x12b   :  { %v71_v38 = vadd.f32 1e-05, %v67_v37 }
 0x12c   :  { %v60_v39 = vpop.xlane.xlu1 %59  ;;  %v63_v40 = vpop.xlane.xlu0 %62 }
 0x12d   :  { %115 = vrsqrt.f32 %v71_v38  ;;  %v68_v41 = vmul.f32 0.03125, %v60_v39  ;;  %v69_v42 = vmul.f32 0.03125, %v63_v40 }
 0x12f   :  { %v72_v43 = vadd.f32 1e-05, %v68_v41  ;;  %v73_v44 = vadd.f32 1e-05, %v69_v42 }
 0x130   :  { %v66_v45 = vpop.xlane.xlu1 %65 }
 0x131   :  { %117 = vrsqrt.f32 %v72_v43  ;;  %v70_v46 = vmul.f32 0.03125, %v66_v45 }
 0x132   :  { %119 = vrsqrt.f32 %v73_v44 }
 0x133   :  { %v74_v47 = vadd.f32 1e-05, %v70_v46 }
 0x135   :  { %121 = vrsqrt.f32 %v74_v47 }
 0x137   :  { %v116_v48 = vpop.eup %115 }
 0x138   :  { %v79_v50 = vmul.f32 %v116_v48, %v47_v20 }
 0x13a   :  { %v90_v52 = vmul.f32 %v113_v49, %v79_v50 }
 0x13b   :  { %v118_v53 = vpop.eup %117 }
 0x13c   :  { %v120_v54 = vpop.eup %119  ;;  %v101_v55 = vadd.f32 %v114_v51, %v90_v52  ;;  %v80_v56 = vmul.f32 %v118_v53, %v48_v28 }
 0x13d   :  { %v81_v57 = vmul.f32 %v120_v54, %v49_v21 }
 0x13e   :  { %105 = vst.msk [vmem:[%s206_s4] sm:$0xff] %vm29_vm0, %v101_v55  ;;  %v91_v58 = vmul.f32 %v113_v49, %v80_v56 }
 0x13f   :  { %v122_v59 = vpop.eup %121  ;;  %v92_v60 = vmul.f32 %v113_v49, %v81_v57 }
 0x140   :  { %v102_v61 = vadd.f32 %v114_v51, %v91_v58  ;;  %v82_v62 = vmul.f32 %v122_v59, %v50_v30 }
 0x141   :  { %v103_v63 = vadd.f32 %v114_v51, %v92_v60 }
 0x142   :  { %106 = vst.msk [vmem:[%s206_s4 + $0x8] sm:$0xff] %vm29_vm0, %v102_v61  ;;  %v93_v0 = vmul.f32 %v113_v49, %v82_v62 }
 0x143   :  { %107 = vst.msk [vmem:[%s206_s4 + $0x10] sm:$0xff] %vm29_vm0, %v103_v63 }
 0x144   :  { %v104_v1 = vadd.f32 %v114_v51, %v93_v0 }
 0x146   :  { %108 = vst.msk [vmem:[%s206_s4 + $0x18] sm:$0xff] %vm29_vm0, %v104_v1 }

// kernel: informer_stack_forward.43
= control target key start
LH: loop header
LB: loop body
LE: loop exit
PB: predicated region body
PF: predicated region fallthrough
CT: control target
= control target key end

     0   :  { %vm35_vm0 = vcmask 261120   ;;  %s459_s1 = inlined_call_operand.vmem [shape: f32[32,32], index: 1, kind: input, shape index: {}]   ;;  %s460_s0 = inlined_call_operand.vmem [shape: f32[32,32], index: 0, kind: input, shape index: {}]   ;;  %s461_s3 = inlined_call_operand.vmem [shape: f32[32,32], index: 3, kind: input, shape index: {}]   ;;  %s462_s2 = inlined_call_operand.vmem [shape: f32[1,32], index: 2, kind: input, shape index: {}]   ;;  %s463_s4 = inlined_call_operand.vmem [shape: f32[1,32], index: 4, kind: input, shape index: {}]   ;;  %s464_s5 = inlined_call_operand.vmem [shape: f32[32,32], index: 5, kind: output, shape index: {}]  }
   0x1   :  { %v24_v0 = vld [vmem:[%s459_s1] sm:$0xff]  ;;  %v25_v1 = vld [vmem:[%s459_s1 + $0x8] sm:$0xff]  ;;  %v26_v2 = vld [vmem:[%s459_s1 + $0x10] sm:$0xff] }
   0x2   :  { %v339_v3 = vpack.c.bf16 %v25_v1, %v24_v0  ;;  %v27_v4 = vld [vmem:[%s459_s1 + $0x18] sm:$0xff]  ;;  %v20_v5 = vld [vmem:[%s460_s0] sm:$0xff]  ;;  %v21_v7 = vld [vmem:[%s460_s0 + $0x8] sm:$0xff] }
   0x3   :  { %v343_v6 = vpack.c.bf16 %v27_v4, %v26_v2  ;;  %319 = vmatprep.mubr.msk.f32.mxu0 %vm35_vm0, %v20_v5  ;;  %v22_v8 = vld [vmem:[%s460_s0 + $0x10] sm:$0xff]  ;;  %v23_v9 = vld [vmem:[%s460_s0 + $0x18] sm:$0xff]  ;;  %v169_v10 = vld [vmem:[%s461_s3] sm:$0xff] }
   0x4   :  { %340 = vmatprep.subr.bf16.mxu0 %v339_v3  ;;  %v170_v11 = vld [vmem:[%s461_s3 + $0x8] sm:$0xff]  ;;  %v171_v12 = vld [vmem:[%s461_s3 + $0x10] sm:$0xff]  ;;  %v172_v14 = vld [vmem:[%s461_s3 + $0x18] sm:$0xff] }
   0x5   :  { %342 = vmatpush3.bf16.msra.mxu0 %v339_v3  ;;  %v347_v13 = vpack.c.bf16 %v170_v11, %v169_v10  ;;  %v351_v15 = vpack.c.bf16 %v172_v14, %v171_v12  ;;  %v285_v16 = vld [vmem:[%s462_s2] ss:$0 sm:$0xff] }
   0x6   :  { %344 = vmatprep.subr.bf16.mxu0 %v343_v6  ;;  %v290_v61 = vld [vmem:[%s463_s4] ss:$0 sm:$0xff] }
   0x7   :  { %348 = vmatprep.subr.bf16.mxu1 %v347_v13 }
   0x8   :  { %350 = vmatpush3.bf16.msra.mxu1 %v347_v13 }
   0x9   :  { %346 = vmatpush3.bf16.msra.mxu0 %v343_v6  ;;  %352 = vmatprep.subr.bf16.mxu1 %v351_v15 }
   0xc   :  { %320 = vmatmul.mubr.msk.f32.vlgmr.msra.gmra.mrb[0].mxu0 %vm35_vm0, %v21_v7  ;;  %354 = vmatpush3.bf16.msra.mxu1 %v351_v15 }
   0xd   :  { %322 = vmatprep.mubr.msk.f32.mxu0 %vm35_vm0, %v22_v8 }
  0x10   :  { %323 = vmatmul.mubr.msk.f32.gmra.mrb[2].mxu0 %vm35_vm0, %v23_v9 }
  0xdf   :  { %v321_v17 = vpop.f32.mrb[0].mxu0 }
  0xe0   :  { %v120_v18 = vadd.f32 %v321_v17, %v285_v16  ;;  %v114_v19 = vpop.f32.mrb[1].mxu0 }
  0xe1   :  { %v115_v20 = vadd.f32 %v285_v16, %v114_v19 }
  0xe2   :  { %v138_v21 = vmul.f32 0.044715, %v120_v18  ;;  %v134_v50 = vmul.f32 0.5, %v120_v18 }
  0xe3   :  { %v137_v22 = vmul.f32 0.044715, %v115_v20  ;;  %v324_v23 = vpop.f32.mrb[2].mxu0  ;;  %v133_v48 = vmul.f32 0.5, %v115_v20 }
  0xe4   :  { %v142_v24 = vmul.f32 %v138_v21, %v120_v18  ;;  %v130_v25 = vadd.f32 %v324_v23, %v285_v16  ;;  %v124_v26 = vpop.f32.mrb[3].mxu0 }
  0xe5   :  { %v125_v27 = vadd.f32 %v285_v16, %v124_v26  ;;  %v141_v28 = vmul.f32 %v137_v22, %v115_v20 }
  0xe6   :  { %v146_v29 = vmul.f32 %v142_v24, %v120_v18  ;;  %v140_v30 = vmul.f32 0.044715, %v130_v25  ;;  %v136_v58 = vmul.f32 0.5, %v130_v25 }
  0xe7   :  { %v139_v31 = vmul.f32 0.044715, %v125_v27  ;;  %v145_v32 = vmul.f32 %v141_v28, %v115_v20  ;;  %v135_v56 = vmul.f32 0.5, %v125_v27 }
  0xe8   :  { %v150_v33 = vadd.f32 %v146_v29, %v120_v18  ;;  %v144_v34 = vmul.f32 %v140_v30, %v130_v25 }
  0xe9   :  { %v143_v35 = vmul.f32 %v139_v31, %v125_v27  ;;  %v149_v36 = vadd.f32 %v145_v32, %v115_v20 }
  0xea   :  { %v148_v37 = vmul.f32 %v144_v34, %v130_v25  ;;  %v154_v38 = vmul.f32 0.7978846, %v150_v33 }
  0xeb   :  { %v147_v39 = vmul.f32 %v143_v35, %v125_v27  ;;  %v153_v40 = vmul.f32 0.7978846, %v149_v36 }
  0xec   :  { %v152_v41 = vadd.f32 %v148_v37, %v130_v25  ;;  %355 = vtanh.f32 %v154_v38 }
  0xed   :  { %v151_v42 = vadd.f32 %v147_v39, %v125_v27  ;;  %357 = vtanh.f32 %v153_v40 }
  0xee   :  { %v156_v43 = vmul.f32 0.7978846, %v152_v41 }
  0xef   :  { %v155_v44 = vmul.f32 0.7978846, %v151_v42 }
  0xf0   :  { %359 = vtanh.f32 %v156_v43 }
  0xf1   :  { %361 = vtanh.f32 %v155_v44 }
  0xf6   :  { %v356_v45 = vpop.eup %355 }
  0xf7   :  { %v358_v46 = vpop.eup %357  ;;  %v162_v47 = vadd.f32 1.0, %v356_v45 }
  0xf8   :  { %v161_v49 = vadd.f32 1.0, %v358_v46 }
  0xf9   :  { %v166_v54 = vmul.f32 %v162_v47, %v134_v50 }
  0xfa   :  { %v360_v51 = vpop.eup %359  ;;  %v165_v52 = vmul.f32 %v161_v49, %v133_v48 }
  0xfb   :  { %v362_v53 = vpop.eup %361  ;;  %v164_v55 = vadd.f32 1.0, %v360_v51 }
  0xfc   :  { %333 = vmatprep.mubr.msk.f32.mxu1 %vm35_vm0, %v165_v52  ;;  %v163_v57 = vadd.f32 1.0, %v362_v53 }
  0xfd   :  { %334 = vmatmul.mubr.msk.f32.vlgmr.msra.gmra.mrb[0].mxu1 %vm35_vm0, %v166_v54  ;;  %v168_v60 = vmul.f32 %v164_v55, %v136_v58 }
  0xfe   :  { %v167_v59 = vmul.f32 %v163_v57, %v135_v56 }
 0x100   :  { %336 = vmatprep.mubr.msk.f32.mxu1 %vm35_vm0, %v167_v59 }
 0x101   :  { %337 = vmatmul.mubr.msk.f32.gmra.mrb[2].mxu1 %vm35_vm0, %v168_v60 }
 0x1d0   :  { %v335_v62 = vpop.f32.mrb[0].mxu1 }
 0x1d1   :  { %v264_v63 = vadd.f32 %v335_v62, %v290_v61  ;;  %v258_v0 = vpop.f32.mrb[1].mxu1 }
 0x1d2   :  { %v259_v1 = vadd.f32 %v290_v61, %v258_v0 }
 0x1d3   :  { %278 = vst.msk [vmem:[%s464_s5 + $0x8] sm:$0xff] %vm35_vm0, %v264_v63 }
 0x1d4   :  { %277 = vst.msk [vmem:[%s464_s5] sm:$0xff] %vm35_vm0, %v259_v1  ;;  %v338_v2 = vpop.f32.mrb[2].mxu1 }
 0x1d5   :  { %v274_v3 = vadd.f32 %v338_v2, %v290_v61  ;;  %v268_v4 = vpop.f32.mrb[3].mxu1 }
 0x1d6   :  { %v269_v5 = vadd.f32 %v290_v61, %v268_v4 }
 0x1d7   :  { %280 = vst.msk [vmem:[%s464_s5 + $0x18] sm:$0xff] %vm35_vm0, %v274_v3 }
 0x1d8   :  { %279 = vst.msk [vmem:[%s464_s5 + $0x10] sm:$0xff] %vm35_vm0, %v269_v5 }

// kernel: informer_stack_forward.45
= control target key start
LH: loop header
LB: loop body
LE: loop exit
PB: predicated region body
PF: predicated region fallthrough
CT: control target
= control target key end

     0   :  { %vm37_vm0 = vcmask 785408   ;;  %vm135_vm1 = vcmask 261120   ;;  %s318_s1 = inlined_call_operand.vmem [shape: f32[96,32], index: 1, kind: input, shape index: {}]   ;;  %s319_s0 = inlined_call_operand.vmem [shape: f32[32,96], index: 0, kind: input, shape index: {}]   ;;  %s320_s2 = inlined_call_operand.vmem [shape: f32[1,32], index: 2, kind: input, shape index: {}]   ;;  %s321_s3 = inlined_call_operand.vmem [shape: f32[32,32], index: 3, kind: output, shape index: {}]  }
   0x1   :  { %v18_v0 = vld [vmem:[%s318_s1] sm:$0xff]  ;;  %v19_v1 = vld [vmem:[%s318_s1 + $0x8] sm:$0xff]  ;;  %v20_v2 = vld [vmem:[%s318_s1 + $0x10] sm:$0xff] }
   0x2   :  { %v195_v3 = vpack.c.bf16 %v19_v1, %v18_v0  ;;  %v21_v4 = vld [vmem:[%s318_s1 + $0x18] sm:$0xff]  ;;  %v22_v6 = vld [vmem:[%s318_s1 + $0x20] sm:$0xff]  ;;  %v23_v7 = vld [vmem:[%s318_s1 + $0x28] sm:$0xff] }
   0x3   :  { %v199_v5 = vpack.c.bf16 %v21_v4, %v20_v2  ;;  %v14_v8 = vld [vmem:[%s319_s0] sm:$0xff]  ;;  %v16_v9 = vld [vmem:[%s319_s0 + $0x10] sm:$0xff]  ;;  %v203_v10 = vpack.c.bf16 %v23_v7, %v22_v6  ;;  %v25_v12 = vld [vmem:[%s318_s1 + $0x38] sm:$0xff] }
   0x4   :  { %196 = vmatprep.subr.bf16.mxu0 %v195_v3  ;;  %219 = vmatprep.subr.bf16.mxu1 %v195_v3  ;;  %v24_v11 = vld [vmem:[%s318_s1 + $0x30] sm:$0xff]  ;;  %v26_v14 = vld [vmem:[%s318_s1 + $0x40] sm:$0xff]  ;;  %v27_v15 = vld [vmem:[%s318_s1 + $0x48] sm:$0xff] }
   0x5   :  { %198 = vmatpush3.bf16.msra.mxu0 %v195_v3  ;;  %225 = vmatpush3.bf16.msra.mxu1 %v195_v3  ;;  %v207_v13 = vpack.c.bf16 %v25_v12, %v24_v11  ;;  %v211_v16 = vpack.c.bf16 %v27_v15, %v26_v14  ;;  %v28_v17 = vld [vmem:[%s318_s1 + $0x50] sm:$0xff]  ;;  %v29_v18 = vld [vmem:[%s318_s1 + $0x58] sm:$0xff]  ;;  %v15_v20 = vld [vmem:[%s319_s0 + $0x8] sm:$0xff] }
   0x6   :  { %200 = vmatprep.subr.bf16.mxu0 %v199_v5  ;;  %220 = vmatprep.subr.bf16.mxu1 %v199_v5  ;;  %v215_v19 = vpack.c.bf16 %v29_v18, %v28_v17  ;;  %v17_v21 = vld [vmem:[%s319_s0 + $0x18] sm:$0xff]  ;;  %v144_v22 = vld [vmem:[%s320_s2] ss:$0 sm:$0xff] }
   0x7   :  { %189 = vmatprep.mubr.msk.f32.mxu0 %vm37_vm0, %v14_v8  ;;  %192 = vmatprep.mubr.msk.f32.mxu1 %vm37_vm0, %v16_v9 }
   0x9   :  { %202 = vmatpush3.bf16.msra.mxu0 %v199_v5  ;;  %226 = vmatpush3.bf16.msra.mxu1 %v199_v5 }
   0xa   :  { %204 = vmatprep.subr.bf16.mxu0 %v203_v10  ;;  %221 = vmatprep.subr.bf16.mxu1 %v203_v10 }
   0xd   :  { %206 = vmatpush3.bf16.msra.mxu0 %v203_v10  ;;  %227 = vmatpush3.bf16.msra.mxu1 %v203_v10 }
   0xe   :  { %208 = vmatprep.subr.bf16.mxu0 %v207_v13  ;;  %222 = vmatprep.subr.bf16.mxu1 %v207_v13 }
  0x11   :  { %210 = vmatpush3.bf16.msra.mxu0 %v207_v13  ;;  %228 = vmatpush3.bf16.msra.mxu1 %v207_v13 }
  0x12   :  { %212 = vmatprep.subr.bf16.mxu0 %v211_v16  ;;  %223 = vmatprep.subr.bf16.mxu1 %v211_v16 }
  0x15   :  { %214 = vmatpush3.bf16.msra.mxu0 %v211_v16  ;;  %229 = vmatpush3.bf16.msra.mxu1 %v211_v16 }
  0x16   :  { %216 = vmatprep.subr.bf16.mxu0 %v215_v19  ;;  %224 = vmatprep.subr.bf16.mxu1 %v215_v19 }
  0x19   :  { %218 = vmatpush3.bf16.msra.mxu0 %v215_v19  ;;  %230 = vmatpush3.bf16.msra.mxu1 %v215_v19 }
  0x1c   :  { %190 = vmatmul.mubr.msk.f32.vlgmr.msra.gmra.mrb[0].mxu0 %vm37_vm0, %v15_v20  ;;  %193 = vmatmul.mubr.msk.f32.vlgmr.msra.gmra.mrb[0].mxu1 %vm37_vm0, %v17_v21 }
  0xef   :  { %v191_v23 = vpop.f32.mrb[0].mxu0  ;;  %v194_v24 = vpop.f32.mrb[0].mxu1 }
  0xf0   :  { %v122_v25 = vadd.f32 %v191_v23, %v144_v22  ;;  %v132_v26 = vadd.f32 %v194_v24, %v144_v22  ;;  %v116_v27 = vpop.f32.mrb[1].mxu0  ;;  %v126_v28 = vpop.f32.mrb[1].mxu1 }
  0xf1   :  { %v117_v29 = vadd.f32 %v144_v22, %v116_v27  ;;  %v127_v30 = vadd.f32 %v144_v22, %v126_v28 }
  0xf2   :  { %137 = vst.msk [vmem:[%s321_s3 + $0x8] sm:$0xff] %vm135_vm1, %v122_v25  ;;  %139 = vst.msk [vmem:[%s321_s3 + $0x18] sm:$0xff] %vm135_vm1, %v132_v26 }
  0xf3   :  { %136 = vst.msk [vmem:[%s321_s3] sm:$0xff] %vm135_vm1, %v117_v29  ;;  %138 = vst.msk [vmem:[%s321_s3 + $0x10] sm:$0xff] %vm135_vm1, %v127_v30 }

// kernel: informer_stack_forward.46
= control target key start
LH: loop header
LB: loop body
LE: loop exit
PB: predicated region body
PF: predicated region fallthrough
CT: control target
= control target key end

     0   :  { %vm27_vm0 = vcmask 261120   ;;  %vm109_vm1 = vcmask 785408   ;;  %s191_s1 = inlined_call_operand.vmem [shape: f32[32,96], index: 1, kind: input, shape index: {}]   ;;  %s192_s0 = inlined_call_operand.vmem [shape: f32[16,32], index: 0, kind: input, shape index: {}]   ;;  %s193_s2 = inlined_call_operand.vmem [shape: f32[1,96], index: 2, kind: input, shape index: {}]   ;;  %s194_s3 = inlined_call_operand.vmem [shape: f32[16,96], index: 3, kind: output, shape index: {}]  }
   0x1   :  { %v16_v0 = vld [vmem:[%s191_s1] sm:$0xff]  ;;  %v17_v1 = vld [vmem:[%s191_s1 + $0x8] sm:$0xff]  ;;  %v18_v2 = vld [vmem:[%s191_s1 + $0x10] sm:$0xff] }
   0x2   :  { %v136_v3 = vpack.c.bf16 %v17_v1, %v16_v0  ;;  %v19_v4 = vld [vmem:[%s191_s1 + $0x18] sm:$0xff]  ;;  %v14_v5 = vld [vmem:[%s192_s0] sm:$0xff]  ;;  %v15_v7 = vld [vmem:[%s192_s0 + $0x8] sm:$0xff] }
   0x3   :  { %v140_v6 = vpack.c.bf16 %v19_v4, %v18_v2  ;;  %133 = vmatprep.mubr.msk.f32.mxu0 %vm27_vm0, %v14_v5  ;;  %v116_v8 = vld [vmem:[%s193_s2] ss:$0 sm:$0xff] }
   0x4   :  { %137 = vmatprep.subr.bf16.mxu0 %v136_v3 }
   0x5   :  { %139 = vmatpush3.bf16.msra.mxu0 %v136_v3 }
   0x6   :  { %141 = vmatprep.subr.bf16.mxu0 %v140_v6 }
   0x9   :  { %143 = vmatpush3.bf16.msra.mxu0 %v140_v6 }
   0xc   :  { %134 = vmatmul.mubr.msk.f32.vlgmr.msra.gmra.mrb[0].mxu0 %vm27_vm0, %v15_v7 }
  0xdf   :  { %v135_v9 = vpop.f32.mrb[0].mxu0 }
  0xe0   :  { %v106_v10 = vadd.f32 %v135_v9, %v116_v8  ;;  %v100_v11 = vpop.f32.mrb[1].mxu0 }
  0xe1   :  { %v101_v12 = vadd.f32 %v116_v8, %v100_v11 }
  0xe2   :  { %111 = vst.msk [vmem:[%s194_s3 + $0x8] sm:$0xff] %vm109_vm1, %v106_v10 }
  0xe3   :  { %110 = vst.msk [vmem:[%s194_s3] sm:$0xff] %vm109_vm1, %v101_v12 }

// kernel: informer_stack_forward.47
= control target key start
LH: loop header
LB: loop body
LE: loop exit
PB: predicated region body
PF: predicated region fallthrough
CT: control target
= control target key end

     0   :  { %vm27_vm0 = vcmask 261120   ;;  %s194_s1 = inlined_call_operand.vmem [shape: f32[32,32], index: 1, kind: input, shape index: {}]   ;;  %s195_s0 = inlined_call_operand.vmem [shape: f32[16,32], index: 0, kind: input, shape index: {}]   ;;  %s196_s2 = inlined_call_operand.vmem [shape: f32[1,32], index: 2, kind: input, shape index: {}]   ;;  %s197_s3 = inlined_call_operand.vmem [shape: f32[16,32], index: 3, kind: output, shape index: {}]  }
   0x1   :  { %v16_v0 = vld [vmem:[%s194_s1] sm:$0xff]  ;;  %v17_v1 = vld [vmem:[%s194_s1 + $0x8] sm:$0xff]  ;;  %v18_v2 = vld [vmem:[%s194_s1 + $0x10] sm:$0xff] }
   0x2   :  { %v135_v3 = vpack.c.bf16 %v17_v1, %v16_v0  ;;  %v19_v4 = vld [vmem:[%s194_s1 + $0x18] sm:$0xff]  ;;  %v14_v5 = vld [vmem:[%s195_s0] sm:$0xff]  ;;  %v15_v7 = vld [vmem:[%s195_s0 + $0x8] sm:$0xff] }
   0x3   :  { %v139_v6 = vpack.c.bf16 %v19_v4, %v18_v2  ;;  %132 = vmatprep.mubr.msk.f32.mxu0 %vm27_vm0, %v14_v5  ;;  %v115_v8 = vld [vmem:[%s196_s2] ss:$0 sm:$0xff] }
   0x4   :  { %136 = vmatprep.subr.bf16.mxu0 %v135_v3 }
   0x5   :  { %138 = vmatpush3.bf16.msra.mxu0 %v135_v3 }
   0x6   :  { %140 = vmatprep.subr.bf16.mxu0 %v139_v6 }
   0x9   :  { %142 = vmatpush3.bf16.msra.mxu0 %v139_v6 }
   0xc   :  { %133 = vmatmul.mubr.msk.f32.vlgmr.msra.gmra.mrb[0].mxu0 %vm27_vm0, %v15_v7 }
  0xdf   :  { %v134_v9 = vpop.f32.mrb[0].mxu0 }
  0xe0   :  { %v106_v10 = vadd.f32 %v134_v9, %v115_v8  ;;  %v100_v11 = vpop.f32.mrb[1].mxu0 }
  0xe1   :  { %v101_v12 = vadd.f32 %v115_v8, %v100_v11 }
  0xe2   :  { %110 = vst.msk [vmem:[%s197_s3 + $0x8] sm:$0xff] %vm27_vm0, %v106_v10 }
  0xe3   :  { %109 = vst.msk [vmem:[%s197_s3] sm:$0xff] %vm27_vm0, %v101_v12 }

// kernel: informer_stack_forward.48
= control target key start
LH: loop header
LB: loop body
LE: loop exit
PB: predicated region body
PF: predicated region fallthrough
CT: control target
= control target key end

     0   :  { %vm23_vm0 = vcmask 261120   ;;  %s136_s0 = inlined_call_operand.vmem [shape: f32[16,32], index: 0, kind: input, shape index: {}]   ;;  %s137_s1 = inlined_call_operand.vmem [shape: f32[16,32], index: 1, kind: input, shape index: {}]   ;;  %s138_s2 = inlined_call_operand.vmem [shape: f32[1,32], index: 2, kind: input, shape index: {}]   ;;  %s139_s3 = inlined_call_operand.vmem [shape: f32[1,32], index: 3, kind: input, shape index: {}]   ;;  %s140_s4 = inlined_call_operand.vmem [shape: f32[16,32], index: 4, kind: output, shape index: {}]  }
   0x1   :  { %v17_v0 = vld [vmem:[%s136_s0] sm:$0xff]  ;;  %v18_v2 = vld [vmem:[%s136_s0 + $0x8] sm:$0xff] }
   0x2   :  { %v19_v1 = vld [vmem:[%s137_s1] sm:$0xff]  ;;  %v20_v4 = vld [vmem:[%s137_s1 + $0x8] sm:$0xff] }
   0x3   :  { %v21_v3 = vadd.f32 %v19_v1, %v17_v0  ;;  %v22_v5 = vadd.f32 %v20_v4, %v18_v2  ;;  %v75_v25 = vld [vmem:[%s138_s2] ss:$0 sm:$0xff] }
   0x4   :  { %v76_v27 = vld [vmem:[%s139_s3] ss:$0 sm:$0xff] }
   0x5   :  { %v24_v6 = vsel %vm23_vm0, %v21_v3, 0.0  ;;  %v27_v7 = vsel %vm23_vm0, %v22_v5, 0.0 }
   0x6   :  { %25 = vadd.xlane.f32.xlu0 %v24_v6 }
   0xa   :  { %28 = vadd.xlane.f32.xlu0 %v27_v7 }
  0x93   :  { %v26_v8 = vpop.xlane.xlu0 %25 }
  0x94   :  { %v31_v9 = vmul.f32 0.03125, %v26_v8 }
  0x96   :  { %v33_v10 = vsub.f32 %v21_v3, %v31_v9 }
  0x97   :  { %v29_v11 = vpop.xlane.xlu0 %28 }
  0x98   :  { %v32_v12 = vmul.f32 0.03125, %v29_v11  ;;  %v35_v13 = vmul.f32 %v33_v10, %v33_v10 }
  0x9a   :  { %v34_v14 = vsub.f32 %v22_v5, %v32_v12  ;;  %v37_v15 = vsel %vm23_vm0, %v35_v13, 0.0 }
  0x9b   :  { %38 = vadd.xlane.f32.xlu1 %v37_v15 }
  0x9c   :  { %v36_v16 = vmul.f32 %v34_v14, %v34_v14 }
  0x9e   :  { %v40_v17 = vsel %vm23_vm0, %v36_v16, 0.0 }
  0x9f   :  { %41 = vadd.xlane.f32.xlu1 %v40_v17 }
 0x128   :  { %v39_v18 = vpop.xlane.xlu1 %38 }
 0x129   :  { %v43_v19 = vmul.f32 0.03125, %v39_v18 }
 0x12b   :  { %v45_v20 = vadd.f32 1e-05, %v43_v19 }
 0x12c   :  { %v42_v21 = vpop.xlane.xlu1 %41 }
 0x12d   :  { %77 = vrsqrt.f32 %v45_v20  ;;  %v44_v22 = vmul.f32 0.03125, %v42_v21 }
 0x12f   :  { %v46_v23 = vadd.f32 1e-05, %v44_v22 }
 0x131   :  { %79 = vrsqrt.f32 %v46_v23 }
 0x137   :  { %v78_v24 = vpop.eup %77 }
 0x138   :  { %v49_v26 = vmul.f32 %v78_v24, %v33_v10 }
 0x13a   :  { %v58_v28 = vmul.f32 %v75_v25, %v49_v26 }
 0x13b   :  { %v80_v29 = vpop.eup %79 }
 0x13c   :  { %v67_v30 = vadd.f32 %v76_v27, %v58_v28  ;;  %v50_v31 = vmul.f32 %v80_v29, %v34_v14 }
 0x13e   :  { %69 = vst.msk [vmem:[%s140_s4] sm:$0xff] %vm23_vm0, %v67_v30  ;;  %v59_v32 = vmul.f32 %v75_v25, %v50_v31 }
 0x140   :  { %v68_v33 = vadd.f32 %v76_v27, %v59_v32 }
 0x142   :  { %70 = vst.msk [vmem:[%s140_s4 + $0x8] sm:$0xff] %vm23_vm0, %v68_v33 }

// kernel: informer_stack_forward.51
= control target key start
LH: loop header
LB: loop body
LE: loop exit
PB: predicated region body
PF: predicated region fallthrough
CT: control target
= control target key end

     0   :  { %vm16_vm0 = vcmask 261120   ;;  %s118_s0 = inlined_call_operand.vmem [shape: f32[16,32], index: 0, kind: input, shape index: {}]   ;;  %s119_s1 = inlined_call_operand.vmem [shape: f32[1,32], index: 1, kind: input, shape index: {}]   ;;  %s120_s2 = inlined_call_operand.vmem [shape: f32[1,32], index: 2, kind: input, shape index: {}]   ;;  %s121_s3 = inlined_call_operand.vmem [shape: f32[16,32], index: 3, kind: output, shape index: {}]  }
   0x1   :  { %v14_v0 = vld [vmem:[%s118_s0] sm:$0xff]  ;;  %v15_v1 = vld [vmem:[%s118_s0 + $0x8] sm:$0xff] }
   0x2   :  { %v17_v2 = vsel %vm16_vm0, %v14_v0, 0.0  ;;  %v20_v3 = vsel %vm16_vm0, %v15_v1, 0.0  ;;  %v68_v21 = vld [vmem:[%s119_s1] ss:$0 sm:$0xff] }
   0x3   :  { %18 = vadd.xlane.f32.xlu0 %v17_v2  ;;  %v69_v23 = vld [vmem:[%s120_s2] ss:$0 sm:$0xff] }
   0x7   :  { %21 = vadd.xlane.f32.xlu0 %v20_v3 }
  0x90   :  { %v19_v4 = vpop.xlane.xlu0 %18 }
  0x91   :  { %v24_v5 = vmul.f32 0.03125, %v19_v4 }
  0x93   :  { %v26_v6 = vsub.f32 %v14_v0, %v24_v5 }
  0x94   :  { %v22_v7 = vpop.xlane.xlu0 %21 }
  0x95   :  { %v25_v8 = vmul.f32 0.03125, %v22_v7  ;;  %v28_v9 = vmul.f32 %v26_v6, %v26_v6 }
  0x97   :  { %v27_v10 = vsub.f32 %v15_v1, %v25_v8  ;;  %v30_v11 = vsel %vm16_vm0, %v28_v9, 0.0 }
  0x98   :  { %31 = vadd.xlane.f32.xlu1 %v30_v11 }
  0x99   :  { %v29_v12 = vmul.f32 %v27_v10, %v27_v10 }
  0x9b   :  { %v33_v13 = vsel %vm16_vm0, %v29_v12, 0.0 }
  0x9c   :  { %34 = vadd.xlane.f32.xlu1 %v33_v13 }
 0x125   :  { %v32_v14 = vpop.xlane.xlu1 %31 }
 0x126   :  { %v36_v15 = vmul.f32 0.03125, %v32_v14 }
 0x128   :  { %v38_v16 = vadd.f32 1e-05, %v36_v15 }
 0x129   :  { %v35_v17 = vpop.xlane.xlu1 %34 }
 0x12a   :  { %70 = vrsqrt.f32 %v38_v16  ;;  %v37_v18 = vmul.f32 0.03125, %v35_v17 }
 0x12c   :  { %v39_v19 = vadd.f32 1e-05, %v37_v18 }
 0x12e   :  { %72 = vrsqrt.f32 %v39_v19 }
 0x134   :  { %v71_v20 = vpop.eup %70 }
 0x135   :  { %v42_v22 = vmul.f32 %v71_v20, %v26_v6 }
 0x137   :  { %v51_v24 = vmul.f32 %v68_v21, %v42_v22 }
 0x138   :  { %v73_v25 = vpop.eup %72 }
 0x139   :  { %v60_v26 = vadd.f32 %v69_v23, %v51_v24  ;;  %v43_v27 = vmul.f32 %v73_v25, %v27_v10 }
 0x13b   :  { %62 = vst.msk [vmem:[%s121_s3] sm:$0xff] %vm16_vm0, %v60_v26  ;;  %v52_v28 = vmul.f32 %v68_v21, %v43_v27 }
 0x13d   :  { %v61_v29 = vadd.f32 %v69_v23, %v52_v28 }
 0x13f   :  { %63 = vst.msk [vmem:[%s121_s3 + $0x8] sm:$0xff] %vm16_vm0, %v61_v29 }

// kernel: informer_stack_forward.49
= control target key start
LH: loop header
LB: loop body
LE: loop exit
PB: predicated region body
PF: predicated region fallthrough
CT: control target
= control target key end

     0   :  { %vm33_vm0 = vcmask 261120   ;;  %s369_s1 = inlined_call_operand.vmem [shape: f32[32,32], index: 1, kind: input, shape index: {}]   ;;  %s370_s0 = inlined_call_operand.vmem [shape: f32[16,32], index: 0, kind: input, shape index: {}]   ;;  %s371_s3 = inlined_call_operand.vmem [shape: f32[32,32], index: 3, kind: input, shape index: {}]   ;;  %s372_s2 = inlined_call_operand.vmem [shape: f32[1,32], index: 2, kind: input, shape index: {}]   ;;  %s373_s4 = inlined_call_operand.vmem [shape: f32[1,32], index: 4, kind: input, shape index: {}]   ;;  %s374_s5 = inlined_call_operand.vmem [shape: f32[16,32], index: 5, kind: output, shape index: {}]  }
   0x1   :  { %v22_v0 = vld [vmem:[%s369_s1] sm:$0xff]  ;;  %v23_v1 = vld [vmem:[%s369_s1 + $0x8] sm:$0xff]  ;;  %v24_v2 = vld [vmem:[%s369_s1 + $0x10] sm:$0xff] }
   0x2   :  { %v271_v3 = vpack.c.bf16 %v23_v1, %v22_v0  ;;  %v25_v4 = vld [vmem:[%s369_s1 + $0x18] sm:$0xff]  ;;  %v20_v5 = vld [vmem:[%s370_s0] sm:$0xff]  ;;  %v21_v7 = vld [vmem:[%s370_s0 + $0x8] sm:$0xff] }
   0x3   :  { %v275_v6 = vpack.c.bf16 %v25_v4, %v24_v2  ;;  %257 = vmatprep.mubr.msk.f32.mxu0 %vm33_vm0, %v20_v5  ;;  %v133_v8 = vld [vmem:[%s371_s3] sm:$0xff]  ;;  %v134_v9 = vld [vmem:[%s371_s3 + $0x8] sm:$0xff]  ;;  %v135_v10 = vld [vmem:[%s371_s3 + $0x10] sm:$0xff] }
   0x4   :  { %272 = vmatprep.subr.bf16.mxu0 %v271_v3  ;;  %v279_v11 = vpack.c.bf16 %v134_v9, %v133_v8  ;;  %v136_v12 = vld [vmem:[%s371_s3 + $0x18] sm:$0xff]  ;;  %v231_v14 = vld [vmem:[%s372_s2] ss:$0 sm:$0xff] }
   0x5   :  { %274 = vmatpush3.bf16.msra.mxu0 %v271_v3  ;;  %v283_v13 = vpack.c.bf16 %v136_v12, %v135_v10  ;;  %v234_v37 = vld [vmem:[%s373_s4] ss:$0 sm:$0xff] }
   0x6   :  { %276 = vmatprep.subr.bf16.mxu0 %v275_v6  ;;  %280 = vmatprep.subr.bf16.mxu1 %v279_v11 }
   0x7   :  { %282 = vmatpush3.bf16.msra.mxu1 %v279_v11 }
   0x8   :  { %284 = vmatprep.subr.bf16.mxu1 %v283_v13 }
   0x9   :  { %278 = vmatpush3.bf16.msra.mxu0 %v275_v6 }
   0xb   :  { %286 = vmatpush3.bf16.msra.mxu1 %v283_v13 }
   0xc   :  { %258 = vmatmul.mubr.msk.f32.vlgmr.msra.gmra.mrb[0].mxu0 %vm33_vm0, %v21_v7 }
  0xdf   :  { %v259_v15 = vpop.f32.mrb[0].mxu0 }
  0xe0   :  { %v112_v16 = vadd.f32 %v259_v15, %v231_v14  ;;  %v106_v17 = vpop.f32.mrb[1].mxu0 }
  0xe1   :  { %v107_v18 = vadd.f32 %v231_v14, %v106_v17 }
  0xe2   :  { %v118_v19 = vmul.f32 0.044715, %v112_v16  ;;  %v116_v34 = vmul.f32 0.5, %v112_v16 }
  0xe3   :  { %v117_v20 = vmul.f32 0.044715, %v107_v18  ;;  %v115_v32 = vmul.f32 0.5, %v107_v18 }
  0xe4   :  { %v120_v21 = vmul.f32 %v118_v19, %v112_v16 }
  0xe5   :  { %v119_v22 = vmul.f32 %v117_v20, %v107_v18 }
  0xe6   :  { %v122_v23 = vmul.f32 %v120_v21, %v112_v16 }
  0xe7   :  { %v121_v24 = vmul.f32 %v119_v22, %v107_v18 }
  0xe8   :  { %v124_v25 = vadd.f32 %v122_v23, %v112_v16 }
  0xe9   :  { %v123_v26 = vadd.f32 %v121_v24, %v107_v18 }
  0xea   :  { %v126_v27 = vmul.f32 0.7978846, %v124_v25 }
  0xeb   :  { %v125_v28 = vmul.f32 0.7978846, %v123_v26 }
  0xec   :  { %287 = vtanh.f32 %v126_v27 }
  0xed   :  { %289 = vtanh.f32 %v125_v28 }
  0xf6   :  { %v288_v29 = vpop.eup %287 }
  0xf7   :  { %v290_v30 = vpop.eup %289  ;;  %v130_v31 = vadd.f32 1.0, %v288_v29 }
  0xf8   :  { %v129_v33 = vadd.f32 1.0, %v290_v30 }
  0xf9   :  { %v132_v36 = vmul.f32 %v130_v31, %v116_v34 }
  0xfa   :  { %v131_v35 = vmul.f32 %v129_v33, %v115_v32 }
  0xfc   :  { %268 = vmatprep.mubr.msk.f32.mxu1 %vm33_vm0, %v131_v35 }
  0xfd   :  { %269 = vmatmul.mubr.msk.f32.vlgmr.msra.gmra.mrb[0].mxu1 %vm33_vm0, %v132_v36 }
 0x1d0   :  { %v270_v38 = vpop.f32.mrb[0].mxu1 }
 0x1d1   :  { %v222_v39 = vadd.f32 %v270_v38, %v234_v37  ;;  %v216_v40 = vpop.f32.mrb[1].mxu1 }
 0x1d2   :  { %v217_v41 = vadd.f32 %v234_v37, %v216_v40 }
 0x1d3   :  { %226 = vst.msk [vmem:[%s374_s5 + $0x8] sm:$0xff] %vm33_vm0, %v222_v39 }
 0x1d4   :  { %225 = vst.msk [vmem:[%s374_s5] sm:$0xff] %vm33_vm0, %v217_v41 }

// kernel: informer_stack_forward.58
= control target key start
LH: loop header
LB: loop body
LE: loop exit
PB: predicated region body
PF: predicated region fallthrough
CT: control target
= control target key end

     0   :  { %vm29_vm0 = vcmask 261120   ;;  %vm127_vm1 = vcmask 523264   ;;  %s238_s1 = inlined_call_operand.vmem [shape: f32[32,64], index: 1, kind: input, shape index: {}]   ;;  %s239_s0 = inlined_call_operand.vmem [shape: f32[32,32], index: 0, kind: input, shape index: {}]   ;;  %s240_s2 = inlined_call_operand.vmem [shape: f32[1,64], index: 2, kind: input, shape index: {}]   ;;  %s241_s3 = inlined_call_operand.vmem [shape: f32[32,64], index: 3, kind: output, shape index: {}]  }
   0x1   :  { %v18_v0 = vld [vmem:[%s238_s1] sm:$0xff]  ;;  %v19_v1 = vld [vmem:[%s238_s1 + $0x8] sm:$0xff]  ;;  %v20_v2 = vld [vmem:[%s238_s1 + $0x10] sm:$0xff] }
   0x2   :  { %v163_v3 = vpack.c.bf16 %v19_v1, %v18_v0  ;;  %v21_v4 = vld [vmem:[%s238_s1 + $0x18] sm:$0xff]  ;;  %v14_v5 = vld [vmem:[%s239_s0] sm:$0xff]  ;;  %v16_v6 = vld [vmem:[%s239_s0 + $0x10] sm:$0xff] }
   0x3   :  { %v167_v7 = vpack.c.bf16 %v21_v4, %v20_v2  ;;  %157 = vmatprep.mubr.msk.f32.mxu0 %vm29_vm0, %v14_v5  ;;  %160 = vmatprep.mubr.msk.f32.mxu1 %vm29_vm0, %v16_v6  ;;  %v15_v8 = vld [vmem:[%s239_s0 + $0x8] sm:$0xff]  ;;  %v17_v9 = vld [vmem:[%s239_s0 + $0x18] sm:$0xff]  ;;  %v136_v10 = vld [vmem:[%s240_s2] ss:$0 sm:$0xff] }
   0x4   :  { %164 = vmatprep.subr.bf16.mxu0 %v163_v3  ;;  %171 = vmatprep.subr.bf16.mxu1 %v163_v3 }
   0x5   :  { %166 = vmatpush3.bf16.msra.mxu0 %v163_v3  ;;  %173 = vmatpush3.bf16.msra.mxu1 %v163_v3 }
   0x6   :  { %168 = vmatprep.subr.bf16.mxu0 %v167_v7  ;;  %172 = vmatprep.subr.bf16.mxu1 %v167_v7 }
   0x9   :  { %170 = vmatpush3.bf16.msra.mxu0 %v167_v7  ;;  %174 = vmatpush3.bf16.msra.mxu1 %v167_v7 }
   0xc   :  { %158 = vmatmul.mubr.msk.f32.vlgmr.msra.gmra.mrb[0].mxu0 %vm29_vm0, %v15_v8  ;;  %161 = vmatmul.mubr.msk.f32.vlgmr.msra.gmra.mrb[0].mxu1 %vm29_vm0, %v17_v9 }
  0xdf   :  { %v159_v11 = vpop.f32.mrb[0].mxu0  ;;  %v162_v12 = vpop.f32.mrb[0].mxu1 }
  0xe0   :  { %v114_v13 = vadd.f32 %v159_v11, %v136_v10  ;;  %v124_v14 = vadd.f32 %v162_v12, %v136_v10  ;;  %v108_v15 = vpop.f32.mrb[1].mxu0  ;;  %v118_v16 = vpop.f32.mrb[1].mxu1 }
  0xe1   :  { %v109_v17 = vadd.f32 %v136_v10, %v108_v15  ;;  %v119_v18 = vadd.f32 %v136_v10, %v118_v16 }
  0xe2   :  { %129 = vst.msk [vmem:[%s241_s3 + $0x8] sm:$0xff] %vm127_vm1, %v114_v13  ;;  %131 = vst.msk [vmem:[%s241_s3 + $0x18] sm:$0xff] %vm127_vm1, %v124_v14 }
  0xe3   :  { %128 = vst.msk [vmem:[%s241_s3] sm:$0xff] %vm127_vm1, %v109_v17  ;;  %130 = vst.msk [vmem:[%s241_s3 + $0x10] sm:$0xff] %vm127_vm1, %v119_v18 }

// kernel: informer_stack_forward.64
= control target key start
LH: loop header
LB: loop body
LE: loop exit
PB: predicated region body
PF: predicated region fallthrough
CT: control target
= control target key end

     0   :  { %vm18_vm0 = vcmask 261120   ;;  %s174_s0 = inlined_call_operand.vmem [shape: f32[32,32], index: 0, kind: input, shape index: {}]   ;;  %s175_s1 = inlined_call_operand.vmem [shape: f32[1,32], index: 1, kind: input, shape index: {}]   ;;  %s176_s2 = inlined_call_operand.vmem [shape: f32[1,32], index: 2, kind: input, shape index: {}]   ;;  %s177_s3 = inlined_call_operand.vmem [shape: f32[32,32], index: 3, kind: output, shape index: {}]  }
   0x1   :  { %v14_v0 = vld [vmem:[%s174_s0] sm:$0xff]  ;;  %v16_v1 = vld [vmem:[%s174_s0 + $0x10] sm:$0xff]  ;;  %v15_v2 = vld [vmem:[%s174_s0 + $0x8] sm:$0xff] }
   0x2   :  { %v19_v3 = vsel %vm18_vm0, %v14_v0, 0.0  ;;  %v25_v4 = vsel %vm18_vm0, %v16_v1, 0.0  ;;  %v17_v5 = vld [vmem:[%s174_s0 + $0x18] sm:$0xff]  ;;  %v22_v6 = vsel %vm18_vm0, %v15_v2, 0.0  ;;  %v102_v41 = vld [vmem:[%s175_s1] ss:$0 sm:$0xff] }
   0x3   :  { %20 = vadd.xlane.f32.xlu0 %v19_v3  ;;  %26 = vadd.xlane.f32.xlu1 %v25_v4  ;;  %v28_v7 = vsel %vm18_vm0, %v17_v5, 0.0  ;;  %v103_v43 = vld [vmem:[%s176_s2] ss:$0 sm:$0xff] }
   0x7   :  { %23 = vadd.xlane.f32.xlu0 %v22_v6  ;;  %29 = vadd.xlane.f32.xlu1 %v28_v7 }
  0x90   :  { %v21_v8 = vpop.xlane.xlu0 %20  ;;  %v27_v9 = vpop.xlane.xlu1 %26 }
  0x91   :  { %v32_v10 = vmul.f32 0.03125, %v21_v8  ;;  %v34_v11 = vmul.f32 0.03125, %v27_v9 }
  0x93   :  { %v36_v12 = vsub.f32 %v14_v0, %v32_v10  ;;  %v38_v13 = vsub.f32 %v16_v1, %v34_v11 }
  0x94   :  { %v24_v14 = vpop.xlane.xlu0 %23  ;;  %v30_v15 = vpop.xlane.xlu1 %29 }
  0x95   :  { %v33_v16 = vmul.f32 0.03125, %v24_v14  ;;  %v35_v17 = vmul.f32 0.03125, %v30_v15  ;;  %v40_v18 = vmul.f32 %v36_v12, %v36_v12  ;;  %v42_v19 = vmul.f32 %v38_v13, %v38_v13 }
  0x97   :  { %v37_v20 = vsub.f32 %v15_v2, %v33_v16  ;;  %v39_v21 = vsub.f32 %v17_v5, %v35_v17  ;;  %v44_v22 = vsel %vm18_vm0, %v40_v18, 0.0  ;;  %v50_v23 = vsel %vm18_vm0, %v42_v19, 0.0 }
  0x98   :  { %45 = vadd.xlane.f32.xlu0 %v44_v22 }
  0x99   :  { %v41_v24 = vmul.f32 %v37_v20, %v37_v20  ;;  %v43_v25 = vmul.f32 %v39_v21, %v39_v21 }
  0x9b   :  { %v47_v26 = vsel %vm18_vm0, %v41_v24, 0.0  ;;  %v53_v27 = vsel %vm18_vm0, %v43_v25, 0.0 }
  0x9c   :  { %51 = vadd.xlane.f32.xlu0 %v50_v23  ;;  %48 = vadd.xlane.f32.xlu1 %v47_v26 }
  0xa0   :  { %54 = vadd.xlane.f32.xlu1 %v53_v27 }
 0x125   :  { %v46_v28 = vpop.xlane.xlu0 %45 }
 0x126   :  { %v56_v29 = vmul.f32 0.03125, %v46_v28 }
 0x128   :  { %v60_v30 = vadd.f32 1e-05, %v56_v29 }
 0x129   :  { %v49_v31 = vpop.xlane.xlu1 %48  ;;  %v52_v32 = vpop.xlane.xlu0 %51 }
 0x12a   :  { %104 = vrsqrt.f32 %v60_v30  ;;  %v57_v33 = vmul.f32 0.03125, %v49_v31  ;;  %v58_v34 = vmul.f32 0.03125, %v52_v32 }
 0x12c   :  { %v61_v35 = vadd.f32 1e-05, %v57_v33  ;;  %v62_v36 = vadd.f32 1e-05, %v58_v34 }
 0x12d   :  { %v55_v37 = vpop.xlane.xlu1 %54 }
 0x12e   :  { %106 = vrsqrt.f32 %v61_v35  ;;  %v59_v38 = vmul.f32 0.03125, %v55_v37 }
 0x12f   :  { %108 = vrsqrt.f32 %v62_v36 }
 0x130   :  { %v63_v39 = vadd.f32 1e-05, %v59_v38 }
 0x132   :  { %110 = vrsqrt.f32 %v63_v39 }
 0x134   :  { %v105_v40 = vpop.eup %104 }
 0x135   :  { %v68_v42 = vmul.f32 %v105_v40, %v36_v12 }
 0x137   :  { %v79_v44 = vmul.f32 %v102_v41, %v68_v42 }
 0x138   :  { %v107_v45 = vpop.eup %106 }
 0x139   :  { %v109_v46 = vpop.eup %108  ;;  %v90_v47 = vadd.f32 %v103_v43, %v79_v44  ;;  %v69_v48 = vmul.f32 %v107_v45, %v37_v20 }
 0x13a   :  { %v70_v49 = vmul.f32 %v109_v46, %v38_v13 }
 0x13b   :  { %94 = vst.msk [vmem:[%s177_s3] sm:$0xff] %vm18_vm0, %v90_v47  ;;  %v80_v50 = vmul.f32 %v102_v41, %v69_v48 }
 0x13c   :  { %v111_v51 = vpop.eup %110  ;;  %v81_v52 = vmul.f32 %v102_v41, %v70_v49 }
 0x13d   :  { %v91_v53 = vadd.f32 %v103_v43, %v80_v50  ;;  %v71_v54 = vmul.f32 %v111_v51, %v39_v21 }
 0x13e   :  { %v92_v55 = vadd.f32 %v103_v43, %v81_v52 }
 0x13f   :  { %95 = vst.msk [vmem:[%s177_s3 + $0x8] sm:$0xff] %vm18_vm0, %v91_v53  ;;  %v82_v56 = vmul.f32 %v102_v41, %v71_v54 }
 0x140   :  { %96 = vst.msk [vmem:[%s177_s3 + $0x10] sm:$0xff] %vm18_vm0, %v92_v55 }
 0x141   :  { %v93_v57 = vadd.f32 %v103_v43, %v82_v56 }
 0x143   :  { %97 = vst.msk [vmem:[%s177_s3 + $0x18] sm:$0xff] %vm18_vm0, %v93_v57 }

// kernel: informer_stack_forward.59
= control target key start
LH: loop header
LB: loop body
LE: loop exit
PB: predicated region body
PF: predicated region fallthrough
CT: control target
= control target key end

     0   :  { %vm62_vm0 = vcmask 64512   ;;  %vm775_vm2 = vcmask 130048   ;;  %s2446_s1 = inlined_call_operand.vmem [shape: f32[8,16,8], index: 1, kind: input, shape index: {}]   ;;  %s2447_s0 = inlined_call_operand.vmem [shape: f32[8,16,8], index: 0, kind: input, shape index: {}]   ;;  %s2448_s2 = inlined_call_operand.vmem [shape: f32[8,16,8], index: 2, kind: input, shape index: {}]   ;;  %s2449_s3 = inlined_call_operand.vmem [shape: f32[8,16,8], index: 3, kind: output, shape index: {}]  }
   0x1   :  { %v30_v0 = vld [vmem:[%s2446_s1] sm:$0xff]  ;;  %v31_v1 = vld [vmem:[%s2446_s1 + $0x8] sm:$0xff]  ;;  %vm2016_vm1 = vmpackc.low %vm62_vm0, %vm62_vm0 }
   0x2   :  { %v1844_v3 = vpack.c.bf16 %v31_v1, %v30_v0  ;;  %v32_v4 = vld [vmem:[%s2446_s1 + $0x10] sm:$0xff]  ;;  %v33_v5 = vld [vmem:[%s2446_s1 + $0x18] sm:$0xff]  ;;  %v14_v6 = vld [vmem:[%s2447_s0] sm:$0xff] }
   0x3   :  { %v1850_v7 = vpack.c.bf16 %v33_v5, %v32_v4  ;;  %1736 = vmatprep.mubr.msk.f32.mxu0 %vm62_vm0, %v14_v6  ;;  %v16_v8 = vld [vmem:[%s2447_s0 + $0x10] sm:$0xff]  ;;  %v34_v9 = vld [vmem:[%s2446_s1 + $0x20] sm:$0xff]  ;;  %v35_v10 = vld [vmem:[%s2446_s1 + $0x28] sm:$0xff] }
   0x4   :  { %1846 = vmatprep.subr.msk.bf16.mxu0 %vm2016_vm1, %v1844_v3  ;;  %1743 = vmatprep.mubr.msk.f32.mxu1 %vm62_vm0, %v16_v8  ;;  %v36_v11 = vld [vmem:[%s2446_s1 + $0x30] sm:$0xff]  ;;  %v37_v12 = vld [vmem:[%s2446_s1 + $0x38] sm:$0xff]  ;;  %v1856_v13 = vpack.c.bf16 %v35_v10, %v34_v9  ;;  %v38_v15 = vld [vmem:[%s2446_s1 + $0x40] sm:$0xff] }
   0x5   :  { %1852 = vmatprep.subr.msk.bf16.mxu1 %vm2016_vm1, %v1850_v7  ;;  %1849 = vmatpush3.bf16.xpose.msk.msra.mxu0 %vm2016_vm1, %v1844_v3  ;;  %v1862_v14 = vpack.c.bf16 %v37_v12, %v36_v11  ;;  %v39_v16 = vld [vmem:[%s2446_s1 + $0x48] sm:$0xff]  ;;  %v40_v18 = vld [vmem:[%s2446_s1 + $0x50] sm:$0xff]  ;;  %v41_v19 = vld [vmem:[%s2446_s1 + $0x58] sm:$0xff] }
   0x6   :  { %1855 = vmatpush3.bf16.xpose.msk.msra.mxu1 %vm2016_vm1, %v1850_v7  ;;  %1858 = vmatprep.subr.msk.bf16.mxu0 %vm2016_vm1, %v1856_v13  ;;  %v15_v17 = vld [vmem:[%s2447_s0 + $0x8] sm:$0xff]  ;;  %v17_v20 = vld [vmem:[%s2447_s0 + $0x18] sm:$0xff]  ;;  %v20_v21 = vld [vmem:[%s2447_s0 + $0x30] sm:$0xff]  ;;  %v1868_v22 = vpack.c.bf16 %v39_v16, %v38_v15  ;;  %v1874_v24 = vpack.c.bf16 %v41_v19, %v40_v18 }
   0x7   :  { %1864 = vmatprep.subr.msk.bf16.mxu1 %vm2016_vm1, %v1862_v14  ;;  %v18_v23 = vld [vmem:[%s2447_s0 + $0x20] sm:$0xff]  ;;  %v43_v26 = vld [vmem:[%s2446_s1 + $0x68] sm:$0xff]  ;;  %v44_v28 = vld [vmem:[%s2446_s1 + $0x70] sm:$0xff] }
   0x8   :  { %v42_v25 = vld [vmem:[%s2446_s1 + $0x60] sm:$0xff]  ;;  %v19_v27 = vld [vmem:[%s2447_s0 + $0x28] sm:$0xff]  ;;  %v45_v29 = vld [vmem:[%s2446_s1 + $0x78] sm:$0xff] }
   0x9   :  { %v21_v30 = vld [vmem:[%s2447_s0 + $0x38] sm:$0xff]  ;;  %v24_v31 = vld [vmem:[%s2447_s0 + $0x50] sm:$0xff]  ;;  %v1880_v32 = vpack.c.bf16 %v43_v26, %v42_v25  ;;  %v22_v33 = vld [vmem:[%s2447_s0 + $0x40] sm:$0xff]  ;;  %v1886_v34 = vpack.c.bf16 %v45_v29, %v44_v28 }
   0xa   :  { %v23_v35 = vld [vmem:[%s2447_s0 + $0x48] sm:$0xff]  ;;  %v25_v36 = vld [vmem:[%s2447_s0 + $0x58] sm:$0xff]  ;;  %v26_v37 = vld [vmem:[%s2447_s0 + $0x60] sm:$0xff] }
   0xb   :  { %v28_v38 = vld [vmem:[%s2447_s0 + $0x70] sm:$0xff]  ;;  %v27_v39 = vld [vmem:[%s2447_s0 + $0x68] sm:$0xff]  ;;  %v29_v40 = vld [vmem:[%s2447_s0 + $0x78] sm:$0xff] }
   0xc   :  { %1737 = vmatmul.mubr.msk.f32.vlgmr.msra.gmra.mrb[0].mxu0 %vm62_vm0, %v15_v17 }
   0xd   :  { %1744 = vmatmul.mubr.msk.f32.vlgmr.msra.gmra.mrb[0].mxu1 %vm62_vm0, %v17_v20  ;;  %1861 = vmatpush3.bf16.xpose.msk.msra.mxu0 %vm2016_vm1, %v1856_v13 }
   0xe   :  { %1867 = vmatpush3.bf16.xpose.msk.msra.mxu1 %vm2016_vm1, %v1862_v14  ;;  %1757 = vmatprep.mubr.msk.f32.mxu1 %vm62_vm0, %v20_v21 }
   0xf   :  { %1750 = vmatprep.mubr.msk.f32.mxu0 %vm62_vm0, %v18_v23  ;;  %1870 = vmatprep.subr.msk.bf16.mxu0 %vm2016_vm1, %v1868_v22 }
  0x10   :  { %1876 = vmatprep.subr.msk.bf16.mxu1 %vm2016_vm1, %v1874_v24 }
  0x14   :  { %1751 = vmatmul.mubr.msk.f32.vlgmr.msra.gmra.mrb[2].mxu0 %vm62_vm0, %v19_v27 }
  0x15   :  { %1758 = vmatmul.mubr.msk.f32.vlgmr.msra.gmra.mrb[2].mxu1 %vm62_vm0, %v21_v30  ;;  %1873 = vmatpush3.bf16.xpose.msk.msra.mxu0 %vm2016_vm1, %v1868_v22 }
  0x16   :  { %1879 = vmatpush3.bf16.xpose.msk.msra.mxu1 %vm2016_vm1, %v1874_v24  ;;  %1771 = vmatprep.mubr.msk.f32.mxu1 %vm62_vm0, %v24_v31 }
  0x17   :  { %1764 = vmatprep.mubr.msk.f32.mxu0 %vm62_vm0, %v22_v33  ;;  %1882 = vmatprep.subr.msk.bf16.mxu0 %vm2016_vm1, %v1880_v32 }
  0x18   :  { %1888 = vmatprep.subr.msk.bf16.mxu1 %vm2016_vm1, %v1886_v34 }
  0x1c   :  { %1765 = vmatmul.mubr.msk.f32.vlgmr.msra.gmra.mrb[4].mxu0 %vm62_vm0, %v23_v35 }
  0x1d   :  { %1772 = vmatmul.mubr.msk.f32.vlgmr.msra.gmra.mrb[4].mxu1 %vm62_vm0, %v25_v36  ;;  %1885 = vmatpush3.bf16.xpose.msk.msra.mxu0 %vm2016_vm1, %v1880_v32 }
  0x1e   :  { %1891 = vmatpush3.bf16.xpose.msk.msra.mxu1 %vm2016_vm1, %v1886_v34  ;;  %1778 = vmatprep.mubr.msk.f32.mxu0 %vm62_vm0, %v26_v37 }
  0x1f   :  { %1785 = vmatprep.mubr.msk.f32.mxu1 %vm62_vm0, %v28_v38 }
  0x24   :  { %1779 = vmatmul.mubr.msk.f32.vlgmr.msra.gmra.mrb[6].mxu0 %vm62_vm0, %v27_v39 }
  0x25   :  { %1786 = vmatmul.mubr.msk.f32.vlgmr.msra.gmra.mrb[6].mxu1 %vm62_vm0, %v29_v40 }
  0xdf   :  { %v1738_v41 = vpop.f32.mrb[0].mxu0 }
  0xe0   :  { %v2158_v42 = vmul.f32 0.35355338, %v1738_v41  ;;  %v141_v43 = vpop.f32.mrb[1].mxu0  ;;  %v1745_v44 = vpop.f32.mrb[0].mxu1 }
  0xe1   :  { %v2160_v45 = vmul.f32 0.35355338, %v141_v43  ;;  %v2162_v46 = vmul.f32 0.35355338, %v1745_v44  ;;  %v228_v47 = vpop.f32.mrb[1].mxu1 }
  0xe2   :  { %v2164_v48 = vmul.f32 0.35355338, %v228_v47  ;;  %v779_v49 = vsel %vm775_vm2, %v2158_v42, -inf }
  0xe3   :  { %780 = vmax.xlane.f32.xlu1 %v779_v49  ;;  %v776_v50 = vsel %vm775_vm2, %v2160_v45, -inf  ;;  %v785_v51 = vsel %vm775_vm2, %v2162_v46, -inf }
  0xe4   :  { %777 = vmax.xlane.f32.xlu0 %v776_v50  ;;  %v782_v52 = vsel %vm775_vm2, %v2164_v48, -inf }
  0xe7   :  { %786 = vmax.xlane.f32.xlu1 %v785_v51  ;;  %v1752_v53 = vpop.f32.mrb[2].mxu0 }
  0xe8   :  { %v1759_v54 = vpop.f32.mrb[2].mxu1  ;;  %783 = vmax.xlane.f32.xlu0 %v782_v52  ;;  %v2174_v55 = vmul.f32 0.35355338, %v1752_v53  ;;  %v315_v56 = vpop.f32.mrb[3].mxu0 }
  0xe9   :  { %v2176_v57 = vmul.f32 0.35355338, %v1759_v54  ;;  %v402_v58 = vpop.f32.mrb[3].mxu1  ;;  %v2178_v59 = vmul.f32 0.35355338, %v315_v56 }
  0xea   :  { %v2180_v60 = vmul.f32 0.35355338, %v402_v58  ;;  %v791_v61 = vsel %vm775_vm2, %v2174_v55, -inf }
  0xeb   :  { %v797_v62 = vsel %vm775_vm2, %v2176_v57, -inf  ;;  %v788_v0 = vsel %vm775_vm2, %v2178_v59, -inf }
  0xec   :  { %798 = vmax.xlane.f32.xlu1 %v797_v62  ;;  %792 = vmax.xlane.f32.xlu0 %v791_v61  ;;  %v794_v63 = vsel %vm775_vm2, %v2180_v60, -inf }
  0xef   :  { %v1766_v1 = vpop.f32.mrb[4].mxu0 }
  0xf0   :  { %v1773_v2 = vpop.f32.mrb[4].mxu1  ;;  %795 = vmax.xlane.f32.xlu1 %v794_v63  ;;  %789 = vmax.xlane.f32.xlu0 %v788_v0  ;;  %v2190_v3 = vmul.f32 0.35355338, %v1766_v1  ;;  %v489_v4 = vpop.f32.mrb[5].mxu0 }
  0xf1   :  { %v2192_v5 = vmul.f32 0.35355338, %v1773_v2  ;;  %v576_v6 = vpop.f32.mrb[5].mxu1  ;;  %v2194_v7 = vmul.f32 0.35355338, %v489_v4 }
  0xf2   :  { %v2196_v8 = vmul.f32 0.35355338, %v576_v6  ;;  %v803_v9 = vsel %vm775_vm2, %v2190_v3, -inf }
  0xf3   :  { %v809_v10 = vsel %vm775_vm2, %v2192_v5, -inf  ;;  %v800_v12 = vsel %vm775_vm2, %v2194_v7, -inf }
  0xf4   :  { %810 = vmax.xlane.f32.xlu1 %v809_v10  ;;  %804 = vmax.xlane.f32.xlu0 %v803_v9  ;;  %v806_v11 = vsel %vm775_vm2, %v2196_v8, -inf }
  0xf7   :  { %v1780_v13 = vpop.f32.mrb[6].mxu0 }
  0xf8   :  { %v1787_v14 = vpop.f32.mrb[6].mxu1  ;;  %807 = vmax.xlane.f32.xlu1 %v806_v11  ;;  %801 = vmax.xlane.f32.xlu0 %v800_v12  ;;  %v663_v15 = vpop.f32.mrb[7].mxu0  ;;  %v2210_v19 = vmul.f32 0.35355338, %v1780_v13 }
  0xf9   :  { %v750_v16 = vpop.f32.mrb[7].mxu1  ;;  %v2206_v17 = vmul.f32 0.35355338, %v663_v15  ;;  %v2214_v21 = vmul.f32 0.35355338, %v1787_v14 }
  0xfa   :  { %v2208_v18 = vmul.f32 0.35355338, %v750_v16  ;;  %v815_v23 = vsel %vm775_vm2, %v2210_v19, -inf }
  0xfb   :  { %v812_v20 = vsel %vm775_vm2, %v2206_v17, -inf  ;;  %v821_v24 = vsel %vm775_vm2, %v2214_v21, -inf }
  0xfc   :  { %v818_v22 = vsel %vm775_vm2, %v2208_v18, -inf  ;;  %813 = vmax.xlane.f32.xlu0 %v812_v20 }
  0xfd   :  { %819 = vmax.xlane.f32.xlu1 %v818_v22 }
 0x100   :  { %816 = vmax.xlane.f32.xlu0 %v815_v23 }
 0x101   :  { %822 = vmax.xlane.f32.xlu1 %v821_v24 }
 0x170   :  { %v781_v25 = vpop.xlane.xlu1 %780 }
 0x171   :  { %v825_v26 = vsub.f32 %v2158_v42, %v781_v25  ;;  %v778_v27 = vpop.xlane.xlu0 %777 }
 0x172   :  { %v824_v28 = vsub.f32 %v2160_v45, %v778_v27 }
 0x173   :  { %v842_v29 = vmul.f32 1.442695, %v825_v26 }
 0x174   :  { %v840_v30 = vmul.f32 1.442695, %v824_v28  ;;  %v787_v31 = vpop.xlane.xlu1 %786 }
 0x175   :  { %1924 = vpow2.f32 %v842_v29  ;;  %v827_v32 = vsub.f32 %v2162_v46, %v787_v31  ;;  %v784_v33 = vpop.xlane.xlu0 %783 }
 0x176   :  { %v826_v34 = vsub.f32 %v2164_v48, %v784_v33  ;;  %1926 = vpow2.f32 %v840_v30 }
 0x177   :  { %v846_v35 = vmul.f32 1.442695, %v827_v32 }
 0x178   :  { %v844_v36 = vmul.f32 1.442695, %v826_v34 }
 0x179   :  { %1928 = vpow2.f32 %v846_v35  ;;  %v799_v37 = vpop.xlane.xlu1 %798  ;;  %v793_v38 = vpop.xlane.xlu0 %792 }
 0x17a   :  { %v831_v39 = vsub.f32 %v2176_v57, %v799_v37  ;;  %v829_v40 = vsub.f32 %v2174_v55, %v793_v38  ;;  %1930 = vpow2.f32 %v844_v36  ;;  %v46_v36 = vld [vmem:[%s2448_s2] sm:$0xff]  ;;  %v47_v37 = vld [vmem:[%s2448_s2 + $0x8] sm:$0xff] }
 0x17c   :  { %v854_v41 = vmul.f32 1.442695, %v831_v39  ;;  %v850_v42 = vmul.f32 1.442695, %v829_v40  ;;  %v1892_v40 = vpack.c.bf16 %v47_v37, %v46_v36 }
 0x17d   :  { %v796_v43 = vpop.xlane.xlu1 %795  ;;  %v790_v44 = vpop.xlane.xlu0 %789 }
 0x17e   :  { %1932 = vpow2.f32 %v854_v41  ;;  %v830_v45 = vsub.f32 %v2180_v60, %v796_v43  ;;  %v828_v46 = vsub.f32 %v2178_v59, %v790_v44  ;;  %1893 = vmatprep.subr.bf16.mxu0 %v1892_v40  ;;  %v48_v43 = vld [vmem:[%s2448_s2 + $0x10] sm:$0xff]  ;;  %v49_v44 = vld [vmem:[%s2448_s2 + $0x18] sm:$0xff] }
 0x17f   :  { %v2230_v47 = vpop.eup %1924  ;;  %1934 = vpow2.f32 %v850_v42  ;;  %1895 = vmatpush3.bf16.msra.mxu0 %v1892_v40 }
 0x180   :  { %v852_v48 = vmul.f32 1.442695, %v830_v45  ;;  %v848_v49 = vmul.f32 1.442695, %v828_v46  ;;  %v875_v50 = vsel %vm775_vm2, %v2230_v47, 0.0  ;;  %v2234_v51 = vpop.eup %1926  ;;  %v1896_v46 = vpack.c.bf16 %v49_v44, %v48_v43 }
 0x181   :  { %v811_v52 = vpop.xlane.xlu1 %810  ;;  %v805_v53 = vpop.xlane.xlu0 %804  ;;  %876 = vadd.xlane.f32.xlu0 %v875_v50  ;;  %v872_v60 = vsel %vm775_vm2, %v2234_v51, 0.0 }
 0x182   :  { %1936 = vpow2.f32 %v852_v48  ;;  %v835_v54 = vsub.f32 %v2192_v5, %v811_v52  ;;  %v833_v55 = vsub.f32 %v2190_v3, %v805_v53  ;;  %1897 = vmatprep.subr.bf16.mxu1 %v1896_v46  ;;  %v50_v48 = vld [vmem:[%s2448_s2 + $0x20] sm:$0xff]  ;;  %v52_v52 = vld [vmem:[%s2448_s2 + $0x30] sm:$0xff]  ;;  %v53_v53 = vld [vmem:[%s2448_s2 + $0x38] sm:$0xff] }
 0x183   :  { %v2238_v56 = vpop.eup %1928  ;;  %1938 = vpow2.f32 %v848_v49  ;;  %1899 = vmatpush3.bf16.msra.mxu1 %v1896_v46  ;;  %v51_v49 = vld [vmem:[%s2448_s2 + $0x28] sm:$0xff] }
 0x184   :  { %v862_v57 = vmul.f32 1.442695, %v835_v54  ;;  %v858_v58 = vmul.f32 1.442695, %v833_v55  ;;  %v881_v59 = vsel %vm775_vm2, %v2238_v56, 0.0  ;;  %v2244_v61 = vpop.eup %1930  ;;  %v1900_v50 = vpack.c.bf16 %v51_v49, %v50_v48 }
 0x185   :  { %v808_v62 = vpop.xlane.xlu1 %807  ;;  %882 = vadd.xlane.f32.xlu1 %v881_v59  ;;  %v802_v63 = vpop.xlane.xlu0 %801  ;;  %873 = vadd.xlane.f32.xlu0 %v872_v60  ;;  %v878_v5 = vsel %vm775_vm2, %v2244_v61, 0.0  ;;  %v1904_v54 = vpack.c.bf16 %v53_v53, %v52_v52 }
 0x186   :  { %1940 = vpow2.f32 %v862_v57  ;;  %v834_v0 = vsub.f32 %v2196_v8, %v808_v62  ;;  %v832_v1 = vsub.f32 %v2194_v7, %v802_v63  ;;  %1901 = vmatprep.subr.bf16.mxu0 %v1900_v50 }
 0x187   :  { %1942 = vpow2.f32 %v858_v58  ;;  %1905 = vmatprep.subr.bf16.mxu1 %v1904_v54 }
 0x188   :  { %v2248_v2 = vpop.eup %1932  ;;  %v860_v3 = vmul.f32 1.442695, %v834_v0  ;;  %v856_v4 = vmul.f32 1.442695, %v832_v1  ;;  %v54_v1 = vld [vmem:[%s2448_s2 + $0x40] sm:$0xff] }
 0x189   :  { %v2252_v6 = vpop.eup %1934  ;;  %879 = vadd.xlane.f32.xlu1 %v878_v5  ;;  %v814_v9 = vpop.xlane.xlu0 %813  ;;  %v893_v14 = vsel %vm775_vm2, %v2248_v2, 0.0 }
 0x18a   :  { %1944 = vpow2.f32 %v860_v3  ;;  %v820_v10 = vpop.xlane.xlu1 %819  ;;  %v836_v11 = vsub.f32 %v2206_v17, %v814_v9  ;;  %v887_v8 = vsel %vm775_vm2, %v2252_v6, 0.0  ;;  %v55_v3 = vld [vmem:[%s2448_s2 + $0x48] sm:$0xff] }
 0x18b   :  { %1946 = vpow2.f32 %v856_v4  ;;  %v838_v7 = vsub.f32 %v2208_v18, %v820_v10  ;;  %888 = vadd.xlane.f32.xlu0 %v887_v8 }
 0x18c   :  { %v2258_v12 = vpop.eup %1936  ;;  %v864_v13 = vmul.f32 1.442695, %v836_v11 }
 0x18d   :  { %v2262_v15 = vpop.eup %1938  ;;  %v868_v16 = vmul.f32 1.442695, %v838_v7  ;;  %894 = vadd.xlane.f32.xlu1 %v893_v14  ;;  %v817_v20 = vpop.xlane.xlu0 %816  ;;  %v890_v26 = vsel %vm775_vm2, %v2258_v12, 0.0  ;;  %v1908_v7 = vpack.c.bf16 %v55_v3, %v54_v1  ;;  %v57_v14 = vld [vmem:[%s2448_s2 + $0x58] sm:$0xff] }
 0x18e   :  { %1948 = vpow2.f32 %v864_v13  ;;  %v823_v17 = vpop.xlane.xlu1 %822  ;;  %v837_v22 = vsub.f32 %v2210_v19, %v817_v20  ;;  %v884_v23 = vsel %vm775_vm2, %v2262_v15, 0.0  ;;  %v56_v13 = vld [vmem:[%s2448_s2 + $0x50] sm:$0xff] }
 0x18f   :  { %1950 = vpow2.f32 %v868_v16  ;;  %v839_v18 = vsub.f32 %v2214_v21, %v823_v17  ;;  %885 = vadd.xlane.f32.xlu0 %v884_v23  ;;  %v1912_v17 = vpack.c.bf16 %v57_v14, %v56_v13 }
 0x190   :  { %v2268_v24 = vpop.eup %1940  ;;  %v866_v25 = vmul.f32 1.442695, %v837_v22 }
 0x191   :  { %v2272_v27 = vpop.eup %1942  ;;  %v870_v28 = vmul.f32 1.442695, %v839_v18  ;;  %891 = vadd.xlane.f32.xlu1 %v890_v26  ;;  %v905_v21 = vsel %vm775_vm2, %v2268_v24, 0.0 }
 0x192   :  { %1952 = vpow2.f32 %v866_v25  ;;  %v899_v19 = vsel %vm775_vm2, %v2272_v27, 0.0 }
 0x193   :  { %1954 = vpow2.f32 %v870_v28  ;;  %900 = vadd.xlane.f32.xlu0 %v899_v19 }
 0x194   :  { %v2276_v29 = vpop.eup %1944 }
 0x195   :  { %v2280_v30 = vpop.eup %1946  ;;  %906 = vadd.xlane.f32.xlu1 %v905_v21  ;;  %v902_v33 = vsel %vm775_vm2, %v2276_v29, 0.0  ;;  %v60_v21 = vld [vmem:[%s2448_s2 + $0x70] sm:$0xff] }
 0x196   :  { %v896_v31 = vsel %vm775_vm2, %v2280_v30, 0.0 }
 0x197   :  { %897 = vadd.xlane.f32.xlu0 %v896_v31  ;;  %v61_v31 = vld [vmem:[%s2448_s2 + $0x78] sm:$0xff] }
 0x198   :  { %v2284_v32 = vpop.eup %1948  ;;  %v1920_v40 = vpack.c.bf16 %v61_v31, %v60_v21 }
 0x199   :  { %v2288_v34 = vpop.eup %1950  ;;  %903 = vadd.xlane.f32.xlu1 %v902_v33  ;;  %v908_v35 = vsel %vm775_vm2, %v2284_v32, 0.0 }
 0x19a   :  { %v914_v39 = vsel %vm775_vm2, %v2288_v34, 0.0 }
 0x19b   :  { %909 = vadd.xlane.f32.xlu0 %v908_v35 }
 0x19c   :  { %v2298_v38 = vpop.eup %1952 }
 0x19d   :  { %v2302_v41 = vpop.eup %1954  ;;  %915 = vadd.xlane.f32.xlu1 %v914_v39  ;;  %v911_v42 = vsel %vm775_vm2, %v2298_v38, 0.0 }
 0x19e   :  { %v917_v45 = vsel %vm775_vm2, %v2302_v41, 0.0 }
 0x19f   :  { %912 = vadd.xlane.f32.xlu0 %v911_v42 }
 0x1a1   :  { %918 = vadd.xlane.f32.xlu1 %v917_v45 }
 0x20e   :  { %v877_v55 = vpop.xlane.xlu0 %876 }
 0x20f   :  { %1956 = vrcp.f32 %v877_v55 }
 0x212   :  { %v883_v57 = vpop.xlane.xlu1 %882  ;;  %v874_v58 = vpop.xlane.xlu0 %873 }
 0x213   :  { %1958 = vrcp.f32 %v874_v58 }
 0x214   :  { %1960 = vrcp.f32 %v883_v57 }
 0x216   :  { %v880_v59 = vpop.xlane.xlu1 %879 }
 0x217   :  { %1962 = vrcp.f32 %v880_v59 }
 0x218   :  { %v889_v60 = vpop.xlane.xlu0 %888 }
 0x219   :  { %1964 = vrcp.f32 %v889_v60  ;;  %v1957_v0 = vpop.eup %1956 }
 0x21a   :  { %v895_v62 = vpop.xlane.xlu1 %894  ;;  %v923_v11 = vmul.f32 %v1957_v0, %v2230_v47 }
 0x21c   :  { %v886_v63 = vpop.xlane.xlu0 %885 }
 0x21d   :  { %1966 = vrcp.f32 %v886_v63  ;;  %v1959_v4 = vpop.eup %1958 }
 0x21e   :  { %1968 = vrcp.f32 %v895_v62  ;;  %v892_v5 = vpop.xlane.xlu1 %891  ;;  %v921_v9 = vmul.f32 %v1959_v4, %v2234_v51  ;;  %v1961_v10 = vpop.eup %1960 }
 0x21f   :  { %1970 = vrcp.f32 %v892_v5  ;;  %v927_v47 = vmul.f32 %v1961_v10, %v2238_v56  ;;  %v59_v56 = vld [vmem:[%s2448_s2 + $0x68] sm:$0xff] }
 0x220   :  { %v901_v8 = vpop.xlane.xlu0 %900  ;;  %1792 = vmatprep.mubr.msk.f32.mxu0 %vm775_vm2, %v921_v9 }
 0x221   :  { %v1963_v16 = vpop.eup %1962  ;;  %1793 = vmatmul.mubr.msk.f32.vlgmr.msra.gmra.mrb[8].mxu0 %vm775_vm2, %v923_v11  ;;  %1972 = vrcp.f32 %v901_v8 }
 0x222   :  { %v907_v20 = vpop.xlane.xlu1 %906  ;;  %v925_v51 = vmul.f32 %v1963_v16, %v2244_v61  ;;  %1903 = vmatpush3.bf16.msra.mxu0 %v1900_v50  ;;  %v58_v61 = vld [vmem:[%s2448_s2 + $0x60] sm:$0xff] }
 0x223   :  { %1909 = vmatprep.subr.bf16.mxu0 %v1908_v7  ;;  %v1965_v23 = vpop.eup %1964  ;;  %v1916_v36 = vpack.c.bf16 %v59_v56, %v58_v61 }
 0x224   :  { %v898_v22 = vpop.xlane.xlu0 %897  ;;  %1799 = vmatprep.mubr.msk.f32.mxu1 %vm775_vm2, %v925_v51  ;;  %v931_v35 = vmul.f32 %v1965_v23, %v2252_v6 }
 0x225   :  { %1974 = vrcp.f32 %v898_v22  ;;  %1800 = vmatmul.mubr.msk.f32.vlgmr.msra.gmra.mrb[8].mxu1 %vm775_vm2, %v927_v47 }
 0x226   :  { %1976 = vrcp.f32 %v907_v20  ;;  %v904_v18 = vpop.xlane.xlu1 %903  ;;  %1907 = vmatpush3.bf16.msra.mxu1 %v1904_v54 }
 0x227   :  { %v1967_v25 = vpop.eup %1966  ;;  %1978 = vrcp.f32 %v904_v18  ;;  %1913 = vmatprep.subr.bf16.mxu1 %v1912_v17 }
 0x228   :  { %v1969_v26 = vpop.eup %1968  ;;  %v910_v28 = vpop.xlane.xlu0 %909  ;;  %v929_v19 = vmul.f32 %v1967_v25, %v2262_v15 }
 0x229   :  { %v1971_v33 = vpop.eup %1970  ;;  %1980 = vrcp.f32 %v910_v28  ;;  %v935_v15 = vmul.f32 %v1969_v26, %v2248_v2 }
 0x22a   :  { %1806 = vmatprep.mubr.msk.f32.mxu0 %vm775_vm2, %v929_v19  ;;  %v916_v37 = vpop.xlane.xlu1 %915  ;;  %v933_v39 = vmul.f32 %v1971_v33, %v2258_v12 }
 0x22b   :  { %1982 = vrcp.f32 %v916_v37  ;;  %1807 = vmatmul.mubr.msk.f32.vlgmr.msra.gmra.mrb[10].mxu0 %vm775_vm2, %v931_v35  ;;  %v1973_v6 = vpop.eup %1972 }
 0x22c   :  { %v913_v42 = vpop.xlane.xlu0 %912  ;;  %1813 = vmatprep.mubr.msk.f32.mxu1 %vm775_vm2, %v933_v39  ;;  %1911 = vmatpush3.bf16.msra.mxu0 %v1908_v7  ;;  %v939_v46 = vmul.f32 %v1973_v6, %v2272_v27 }
 0x22d   :  { %1984 = vrcp.f32 %v913_v42  ;;  %1814 = vmatmul.mubr.msk.f32.vlgmr.msra.gmra.mrb[10].mxu1 %vm775_vm2, %v935_v15  ;;  %1917 = vmatprep.subr.bf16.mxu0 %v1916_v36 }
 0x22e   :  { %v919_v43 = vpop.xlane.xlu1 %918  ;;  %1915 = vmatpush3.bf16.msra.mxu1 %v1912_v17 }
 0x22f   :  { %v1975_v44 = vpop.eup %1974  ;;  %1986 = vrcp.f32 %v919_v43  ;;  %1921 = vmatprep.subr.bf16.mxu1 %v1920_v40 }
 0x230   :  { %v1977_v12 = vpop.eup %1976  ;;  %v937_v2 = vmul.f32 %v1975_v44, %v2280_v30 }
 0x231   :  { %v1979_v45 = vpop.eup %1978  ;;  %v943_v50 = vmul.f32 %v1977_v12, %v2268_v24 }
 0x232   :  { %1820 = vmatprep.mubr.msk.f32.mxu0 %vm775_vm2, %v937_v2  ;;  %v941_v48 = vmul.f32 %v1979_v45, %v2276_v29 }
 0x233   :  { %v1981_v49 = vpop.eup %1980  ;;  %1821 = vmatmul.mubr.msk.f32.vlgmr.msra.gmra.mrb[12].mxu0 %vm775_vm2, %v939_v46 }
 0x234   :  { %1827 = vmatprep.mubr.msk.f32.mxu1 %vm775_vm2, %v941_v48  ;;  %v945_v52 = vmul.f32 %v1981_v49, %v2284_v32  ;;  %1919 = vmatpush3.bf16.msra.mxu0 %v1916_v36 }
 0x235   :  { %v1983_v53 = vpop.eup %1982  ;;  %1828 = vmatmul.mubr.msk.f32.vlgmr.msra.gmra.mrb[12].mxu1 %vm775_vm2, %v943_v50 }
 0x236   :  { %1834 = vmatprep.mubr.msk.f32.mxu0 %vm775_vm2, %v945_v52  ;;  %1923 = vmatpush3.bf16.msra.mxu1 %v1920_v40  ;;  %v949_v27 = vmul.f32 %v1983_v53, %v2288_v34 }
 0x237   :  { %v1985_v30 = vpop.eup %1984 }
 0x238   :  { %v947_v29 = vmul.f32 %v1985_v30, %v2298_v38  ;;  %1841 = vmatprep.mubr.msk.f32.mxu1 %vm775_vm2, %v949_v27 }
 0x239   :  { %v1987_v24 = vpop.eup %1986 }
 0x23a   :  { %v951_v54 = vmul.f32 %v1987_v24, %v2302_v41  ;;  %1835 = vmatmul.mubr.msk.f32.vlgmr.msra.gmra.mrb[14].mxu0 %vm775_vm2, %v947_v29 }
 0x23c   :  { %1842 = vmatmul.mubr.msk.f32.vlgmr.msra.gmra.mrb[14].mxu1 %vm775_vm2, %v951_v54 }
 0x2f4   :  { %v1794_v32 = vpop.f32.mrb[8].mxu0 }
 0x2f5   :  { %1601 = vst.msk [vmem:[%s2449_s3 + $0x8] sm:$0xff] %vm62_vm0, %v1794_v32  ;;  %v1024_v55 = vpop.f32.mrb[9].mxu0 }
 0x2f6   :  { %1600 = vst.msk [vmem:[%s2449_s3] sm:$0xff] %vm62_vm0, %v1024_v55 }
 0x2f8   :  { %v1801_v34 = vpop.f32.mrb[8].mxu1 }
 0x2f9   :  { %1603 = vst.msk [vmem:[%s2449_s3 + $0x18] sm:$0xff] %vm62_vm0, %v1801_v34  ;;  %v1105_v38 = vpop.f32.mrb[9].mxu1 }
 0x2fa   :  { %1602 = vst.msk [vmem:[%s2449_s3 + $0x10] sm:$0xff] %vm62_vm0, %v1105_v38 }
 0x2fe   :  { %v1808_v41 = vpop.f32.mrb[10].mxu0 }
 0x2ff   :  { %1605 = vst.msk [vmem:[%s2449_s3 + $0x28] sm:$0xff] %vm62_vm0, %v1808_v41  ;;  %v1186_v57 = vpop.f32.mrb[11].mxu0 }
 0x300   :  { %1604 = vst.msk [vmem:[%s2449_s3 + $0x20] sm:$0xff] %vm62_vm0, %v1186_v57  ;;  %v1815_v58 = vpop.f32.mrb[10].mxu1 }
 0x301   :  { %1607 = vst.msk [vmem:[%s2449_s3 + $0x38] sm:$0xff] %vm62_vm0, %v1815_v58  ;;  %v1267_v59 = vpop.f32.mrb[11].mxu1 }
 0x302   :  { %1606 = vst.msk [vmem:[%s2449_s3 + $0x30] sm:$0xff] %vm62_vm0, %v1267_v59 }
 0x306   :  { %v1822_v60 = vpop.f32.mrb[12].mxu0 }
 0x307   :  { %1609 = vst.msk [vmem:[%s2449_s3 + $0x48] sm:$0xff] %vm62_vm0, %v1822_v60  ;;  %v1348_v62 = vpop.f32.mrb[13].mxu0 }
 0x308   :  { %1608 = vst.msk [vmem:[%s2449_s3 + $0x40] sm:$0xff] %vm62_vm0, %v1348_v62  ;;  %v1829_v63 = vpop.f32.mrb[12].mxu1 }
 0x309   :  { %1611 = vst.msk [vmem:[%s2449_s3 + $0x58] sm:$0xff] %vm62_vm0, %v1829_v63  ;;  %v1429_v0 = vpop.f32.mrb[13].mxu1 }
 0x30a   :  { %1610 = vst.msk [vmem:[%s2449_s3 + $0x50] sm:$0xff] %vm62_vm0, %v1429_v0 }
 0x30d   :  { %v1836_v1 = vpop.f32.mrb[14].mxu0 }
 0x30e   :  { %1613 = vst.msk [vmem:[%s2449_s3 + $0x68] sm:$0xff] %vm62_vm0, %v1836_v1  ;;  %v1510_v3 = vpop.f32.mrb[15].mxu0 }
 0x30f   :  { %1612 = vst.msk [vmem:[%s2449_s3 + $0x60] sm:$0xff] %vm62_vm0, %v1510_v3  ;;  %v1843_v4 = vpop.f32.mrb[14].mxu1 }
 0x310   :  { %1615 = vst.msk [vmem:[%s2449_s3 + $0x78] sm:$0xff] %vm62_vm0, %v1843_v4  ;;  %v1591_v5 = vpop.f32.mrb[15].mxu1 }
 0x311   :  { %1614 = vst.msk [vmem:[%s2449_s3 + $0x70] sm:$0xff] %vm62_vm0, %v1591_v5 }

// kernel: informer_stack_forward.65
= control target key start
LH: loop header
LB: loop body
LE: loop exit
PB: predicated region body
PF: predicated region fallthrough
CT: control target
= control target key end

     0   :  { %vm29_vm0 = vcmask 261120   ;;  %vm127_vm1 = vcmask 56320   ;;  %s238_s1 = inlined_call_operand.vmem [shape: f32[32,7], index: 1, kind: input, shape index: {}]   ;;  %s239_s0 = inlined_call_operand.vmem [shape: f32[32,32], index: 0, kind: input, shape index: {}]   ;;  %s240_s2 = inlined_call_operand.vmem [shape: f32[1,7], index: 2, kind: input, shape index: {}]   ;;  %s241_s3 = inlined_call_operand.vmem [shape: f32[32,7], index: 3, kind: output, shape index: {}]  }
   0x1   :  { %v18_v0 = vld [vmem:[%s238_s1] sm:$0xff]  ;;  %v19_v1 = vld [vmem:[%s238_s1 + $0x8] sm:$0xff]  ;;  %v20_v2 = vld [vmem:[%s238_s1 + $0x10] sm:$0xff] }
   0x2   :  { %v163_v3 = vpack.c.bf16 %v19_v1, %v18_v0  ;;  %v21_v4 = vld [vmem:[%s238_s1 + $0x18] sm:$0xff]  ;;  %v14_v5 = vld [vmem:[%s239_s0] sm:$0xff]  ;;  %v16_v6 = vld [vmem:[%s239_s0 + $0x10] sm:$0xff] }
   0x3   :  { %v167_v7 = vpack.c.bf16 %v21_v4, %v20_v2  ;;  %157 = vmatprep.mubr.msk.f32.mxu0 %vm29_vm0, %v14_v5  ;;  %160 = vmatprep.mubr.msk.f32.mxu1 %vm29_vm0, %v16_v6  ;;  %v15_v8 = vld [vmem:[%s239_s0 + $0x8] sm:$0xff]  ;;  %v17_v9 = vld [vmem:[%s239_s0 + $0x18] sm:$0xff]  ;;  %v136_v10 = vld [vmem:[%s240_s2] ss:$0 sm:$0xff] }
   0x4   :  { %164 = vmatprep.subr.bf16.mxu0 %v163_v3  ;;  %171 = vmatprep.subr.bf16.mxu1 %v163_v3 }
   0x5   :  { %166 = vmatpush3.bf16.msra.mxu0 %v163_v3  ;;  %173 = vmatpush3.bf16.msra.mxu1 %v163_v3 }
   0x6   :  { %168 = vmatprep.subr.bf16.mxu0 %v167_v7  ;;  %172 = vmatprep.subr.bf16.mxu1 %v167_v7 }
   0x9   :  { %170 = vmatpush3.bf16.msra.mxu0 %v167_v7  ;;  %174 = vmatpush3.bf16.msra.mxu1 %v167_v7 }
   0xc   :  { %158 = vmatmul.mubr.msk.f32.vlgmr.msra.gmra.mrb[0].mxu0 %vm29_vm0, %v15_v8  ;;  %161 = vmatmul.mubr.msk.f32.vlgmr.msra.gmra.mrb[0].mxu1 %vm29_vm0, %v17_v9 }
  0xdf   :  { %v159_v11 = vpop.f32.mrb[0].mxu0  ;;  %v162_v12 = vpop.f32.mrb[0].mxu1 }
  0xe0   :  { %v114_v13 = vadd.f32 %v159_v11, %v136_v10  ;;  %v124_v14 = vadd.f32 %v162_v12, %v136_v10  ;;  %v108_v15 = vpop.f32.mrb[1].mxu0  ;;  %v118_v16 = vpop.f32.mrb[1].mxu1 }
  0xe1   :  { %v109_v17 = vadd.f32 %v136_v10, %v108_v15  ;;  %v119_v18 = vadd.f32 %v136_v10, %v118_v16 }
  0xe2   :  { %129 = vst.msk [vmem:[%s241_s3 + $0x8] sm:$0xff] %vm127_vm1, %v114_v13  ;;  %131 = vst.msk [vmem:[%s241_s3 + $0x18] sm:$0xff] %vm127_vm1, %v124_v14 }
  0xe3   :  { %128 = vst.msk [vmem:[%s241_s3] sm:$0xff] %vm127_vm1, %v109_v17  ;;  %130 = vst.msk [vmem:[%s241_s3 + $0x10] sm:$0xff] %vm127_vm1, %v119_v18 }

</bundles_post_ra>
